<compile_context>
chip_gen: v5e
topology: v5e:2x2
jax: 0.10.0
libtpu: 0.0.40
codegen_flags: <defaults>
</compile_context>

<pallas_src>
import functools

import jax
import jax.numpy as jnp
from jax.experimental import pallas as pl
from jax.experimental.pallas import tpu as pltpu


# ----------------------------------------------------------------------------
# Helpers
# ----------------------------------------------------------------------------
def _pick_row_tile(hw, preferred=1024):
    """Row tile (multiple of 8, capped at `preferred`) and number of spatial tiles.

    The spatial extent is padded up to tm * t_blocks in the wrapper; padded rows
    are masked inside the kernel, so no "tm = total" VMEM hazard.
    """
    tm = min(preferred, ((hw + 7) // 8) * 8)
    t_blocks = -(-hw // tm)  # cdiv
    return tm, t_blocks


def _silu(y):
    # sigmoid(y) == 0.5*(1+tanh(y/2)): one EUP push (tanh) instead of exp+recip.
    return y * (0.5 * (1.0 + jnp.tanh(0.5 * y)))


# ----------------------------------------------------------------------------
# Fused kernel: stem conv -> SiLU -> conv_head -> SiLU -> GAP -> classifier
# ----------------------------------------------------------------------------
def _fused_kernel(x_ref, sw_ref, sb_ref, hw_ref, hb_ref, cw_ref, cb_ref,
                  o_ref, acc_ref, *, hw, inv_hw, tm, masked):
    t = pl.program_id(1)

    @pl.when(t == 0)
    def _():
        acc_ref[...] = jnp.zeros_like(acc_ref)

    # stem conv (im2col matmul) + folded-BN bias + SiLU; bf16 operands, f32 MXU acc.
    y0 = jnp.dot(x_ref[...], sw_ref[...], preferred_element_type=jnp.float32)
    y0 = y0 + sb_ref[...]
    h0 = _silu(y0).astype(jnp.bfloat16)                       # (tm, 32) bf16

    # conv_head 1x1 (matmul) + folded-BN bias + SiLU; stays in VMEM.
    y1 = jnp.dot(h0, hw_ref[...], preferred_element_type=jnp.float32)
    y1 = y1 + hb_ref[...]
    h1 = _silu(y1)                                            # (tm, 1280) f32

    if masked:  # static: only when hw is not a multiple of tm (padded rows exist)
        row = t * tm + jax.lax.broadcasted_iota(jnp.int32, (tm, 1), 0)
        h1 = jnp.where(row < hw, h1, 0.0)

    # Global average pool partial: cheap VPU/XLU sublane reduction (no MXU dot).
    acc_ref[...] += jnp.sum(h1, axis=0, keepdims=True)

    # Classifier epilogue on the last spatial tile; pooled vector never leaves VMEM.
    @pl.when(t == pl.num_programs(1) - 1)
    def _():
        pooled = acc_ref[...] * inv_hw                        # (1, 1280) f32
        logits = jnp.dot(pooled, cw_ref[...],
                         preferred_element_type=jnp.float32)  # f32 classifier
        logits = logits + cb_ref[...]                         # (1, 128) f32
        o_ref[...] = jnp.broadcast_to(logits[None], o_ref.shape)


def card_classifier_fused(patches_flat, prep, *, n_batch, hw, hw_pad, tm):
    K = patches_flat.shape[1]            # 32 (im2col 27 padded to 32)
    C0 = prep["stem_w"].shape[1]         # 32 stem channels
    C1 = prep["head_w"].shape[1]         # 1280 head channels
    NC = prep["cls_w"].shape[1]          # 128 (padded classes)
    t_blocks = hw_pad // tm
    kernel = functools.partial(_fused_kernel, hw=hw, inv_hw=1.0 / hw, tm=tm,
                               masked=(hw_pad != hw))
    out = pl.pallas_call(
        kernel,
        out_shape=jax.ShapeDtypeStruct((n_batch, 8, NC), jnp.float32),
        grid_spec=pltpu.PrefetchScalarGridSpec(
            num_scalar_prefetch=0,
            grid=(n_batch, t_blocks),
            in_specs=[
                pl.BlockSpec((tm, K), lambda n, t: (n * t_blocks + t, 0)),
                pl.BlockSpec((K, C0), lambda n, t: (0, 0)),
                pl.BlockSpec((1, C0), lambda n, t: (0, 0)),
                pl.BlockSpec((C0, C1), lambda n, t: (0, 0)),
                pl.BlockSpec((1, C1), lambda n, t: (0, 0)),
                pl.BlockSpec((C1, NC), lambda n, t: (0, 0)),
                pl.BlockSpec((1, NC), lambda n, t: (0, 0)),
            ],
            out_specs=pl.BlockSpec((1, 8, NC), lambda n, t: (n, 0, 0)),
            scratch_shapes=[pltpu.VMEM((1, C1), jnp.float32)],  # pooled accumulator
        ),
        compiler_params=pltpu.CompilerParams(
            dimension_semantics=("parallel", "arbitrary"),
            vmem_limit_bytes=48 << 20,   # <= v7x 64 MiB physical; ample on v5e/v6e
        ),
    )(patches_flat, prep["stem_w"], prep["stem_b"], prep["head_w"],
      prep["head_b"], prep["cls_w"], prep["cls_b"])
    return out[:, 0, :]                  # (n_batch, 128) padded logits


# ----------------------------------------------------------------------------
# Glue (pure data movement / parameter setup in plain JAX)
# ----------------------------------------------------------------------------
def im2col_3x3_s2_bf16(x_nhwc, k_pad=32):
    """3x3, stride-2, pad-1 patch extraction; emits bf16 with K padded in-concat."""
    N, H, W, C = x_nhwc.shape
    Ho, Wo = H // 2, W // 2
    xp = jnp.pad(x_nhwc, ((0, 0), (1, 1), (1, 1), (0, 0))).astype(jnp.bfloat16)
    cols = []
    for kh in range(3):
        for kw in range(3):
            cols.append(xp[:, kh:kh + 2 * Ho:2, kw:kw + 2 * Wo:2, :])
    k = 9 * C
    if k_pad > k:
        cols.append(jnp.zeros((N, Ho, Wo, k_pad - k), jnp.bfloat16))
    patches = jnp.concatenate(cols, axis=-1)       # (N, Ho, Wo, k_pad)
    return patches.reshape(N, Ho * Wo, k_pad), (N, Ho, Wo)


def init_params(key, in_ch=3, stem_ch=32, head_ch=1280, num_classes=53):
    ks = jax.random.split(key, 8)
    p = {}
    # stem conv: (kh, kw, Cin, Cout) == HWIO, matches im2col patch ordering
    p["stem_w"] = 0.1 * jax.random.normal(ks[0], (3, 3, in_ch, stem_ch), jnp.float32)
    # folded BN params (gamma/sqrt(var+eps), beta - mean*scale) generated directly
    p["stem_scale"] = 1.0 + 0.05 * jax.random.normal(ks[1], (1, stem_ch), jnp.float32)
    p["stem_bias"] = 0.05 * jax.random.normal(ks[2], (1, stem_ch), jnp.float32)
    # conv_head: 1x1 pointwise -> 1280 channels
    p["head_w"] = 0.1 * jax.random.normal(ks[3], (stem_ch, head_ch), jnp.float32)
    p["head_scale"] = 1.0 + 0.05 * jax.random.normal(ks[4], (1, head_ch), jnp.float32)
    p["head_bias"] = 0.05 * jax.random.normal(ks[5], (1, head_ch), jnp.float32)
    # classifier Linear(1280 -> 53)
    p["cls_w"] = 0.05 * jax.random.normal(ks[6], (head_ch, num_classes), jnp.float32)
    p["cls_b"] = 0.05 * jax.random.normal(ks[7], (1, num_classes), jnp.float32)
    return p


def prepare_params(p, k_pad=32, cls_pad=128):
    """One-time static fold/pad/cast of parameters for the kernel.

    - BN scale folded into conv weights (epilogue becomes bias + SiLU only).
    - im2col K padded 27 -> 32; stem output stays at its real 32 channels.
    - Classifier columns padded to 128 lanes; classifier kept in f32.
    - Matmul operands for stem/head cast to bf16; biases stay f32.
    """
    stem_w = p["stem_w"].reshape(-1, p["stem_w"].shape[-1]) * p["stem_scale"]  # (27,32)
    stem_w = jnp.pad(stem_w, ((0, k_pad - stem_w.shape[0]), (0, 0)))           # (32,32)
    head_w = p["head_w"] * p["head_scale"]                                     # (32,1280)
    cls_w = jnp.pad(p["cls_w"], ((0, 0), (0, cls_pad - p["cls_w"].shape[1])))
    cls_b = jnp.pad(p["cls_b"], ((0, 0), (0, cls_pad - p["cls_b"].shape[1])))
    return {
        "stem_w": stem_w.astype(jnp.bfloat16),
        "stem_b": p["stem_bias"].astype(jnp.float32),
        "head_w": head_w.astype(jnp.bfloat16),
        "head_b": p["head_bias"].astype(jnp.float32),
        "cls_w": cls_w.astype(jnp.float32),      # f32 classifier (tiny, keeps accuracy)
        "cls_b": cls_b.astype(jnp.float32),
        "num_classes": p["cls_w"].shape[1],
    }


def card_classifier_forward(x_nchw, prep):
    """Forward pass of CardClassifier.  Input: NCHW float32.  Output: (N, 53)."""
    x_nhwc = jnp.transpose(x_nchw, (0, 2, 3, 1))            # NCHW -> NHWC (layout glue)

    # im2col for the stem 3x3/s2 conv (pure slicing, already bf16 / K-padded)
    patches, (N, Ho, Wo) = im2col_3x3_s2_bf16(x_nhwc, k_pad=prep["stem_w"].shape[0])
    hw = Ho * Wo
    tm, t_blocks = _pick_row_tile(hw, preferred=1024)
    hw_pad = tm * t_blocks
    if hw_pad > hw:
        patches = jnp.pad(patches, ((0, 0), (0, hw_pad - hw), (0, 0)))
    patches_flat = patches.reshape(N * hw_pad, patches.shape[-1])

    # TODO(synk): MBConv blocks of EfficientNet-B0 omitted (see header comment).

    # stem + conv_head + BN + SiLU + global average pool + classifier — one fused kernel
    logits_pad = card_classifier_fused(
        patches_flat, prep, n_batch=N, hw=hw, hw_pad=hw_pad, tm=tm)
    return logits_pad[:, : prep["num_classes"]]             # (N, 53)


# ----------------------------------------------------------------------------
if __name__ == "__main__":
    key = jax.random.PRNGKey(0)
    k_x, k_p = jax.random.split(key)

    # small shapes: batch=2, 3 input channels (RGB cards), 32x32 spatial
    x = jax.random.normal(k_x, (2, 3, 32, 32), jnp.float32)
    params = init_params(k_p)
    prep = prepare_params(params)

    out = card_classifier_forward(x, prep)
    out = jax.block_until_ready(out)

    assert out.shape == (2, 53), out.shape
    assert out.dtype == jnp.float32
    assert bool(jnp.all(jnp.isfinite(out)))
    print("KERNEL_OK")
</pallas_src>

<mosaic_0001>
module attributes {stable_mosaic.version = 11 : i64} {
  func.func @_fused_kernel(%arg0: i32, %arg1: i32, %arg2: memref<256x32xbf16, #tpu.memory_space<vmem>>, %arg3: memref<32x32xbf16, #tpu.memory_space<vmem>>, %arg4: memref<1x32xf32, #tpu.memory_space<vmem>>, %arg5: memref<32x1280xbf16, #tpu.memory_space<vmem>>, %arg6: memref<1x1280xf32, #tpu.memory_space<vmem>>, %arg7: memref<1280x128xf32, #tpu.memory_space<vmem>>, %arg8: memref<1x128xf32, #tpu.memory_space<vmem>>, %arg9: memref<1x8x128xf32, #tpu.memory_space<vmem>>, %arg10: memref<1x1280xf32, #tpu.memory_space<vmem>>) attributes {dimension_semantics = [#tpu.dimension_semantics<parallel>, #tpu.dimension_semantics<arbitrary>], iteration_bounds = array<i64: 2, 1>, scalar_prefetch = 0 : i64, scratch_operands = 1 : i64, tpu.core_type = #tpu.core_type<tc>, window_params = [{transform_indices = @transform_0, window_bounds = array<i64: 256, 32>}, {pipeline_mode = #tpu.pipeline_mode<synchronous>, transform_indices = @transform_1, window_bounds = array<i64: 32, 32>}, {pipeline_mode = #tpu.pipeline_mode<synchronous>, transform_indices = @transform_2, window_bounds = array<i64: 1, 32>}, {pipeline_mode = #tpu.pipeline_mode<synchronous>, transform_indices = @transform_3, window_bounds = array<i64: 32, 1280>}, {pipeline_mode = #tpu.pipeline_mode<synchronous>, transform_indices = @transform_4, window_bounds = array<i64: 1, 1280>}, {pipeline_mode = #tpu.pipeline_mode<synchronous>, transform_indices = @transform_5, window_bounds = array<i64: 1280, 128>}, {pipeline_mode = #tpu.pipeline_mode<synchronous>, transform_indices = @transform_6, window_bounds = array<i64: 1, 128>}, {transform_indices = @transform_7, window_bounds = array<i64: 1, 8, 128>}]} {
    %c0_i32 = arith.constant 0 : i32
    %0 = arith.cmpi eq, %arg1, %c0_i32 : i32
    %1 = arith.extui %0 : i1 to i32
    %c0_i32_0 = arith.constant 0 : i32
    %2 = arith.cmpi ne, %1, %c0_i32_0 : i32
    scf.if %2 {
      %cst_24 = arith.constant 0.000000e+00 : f32
      %39 = vector.broadcast %cst_24 : f32 to vector<1x1280xf32>
      %c0_25 = arith.constant 0 : index
      %c0_26 = arith.constant 0 : index
      %40 = vector.load %arg10[%c0_25, %c0_26] : memref<1x1280xf32, #tpu.memory_space<vmem>>, vector<1x1280xf32>
      tpu.vector_store %arg10[%c0_25, %c0_26], %39 {strides = array<i32>} : memref<1x1280xf32, #tpu.memory_space<vmem>>, vector<1x1280xf32>,
    } else {
    }
    %c0 = arith.constant 0 : index
    %c0_1 = arith.constant 0 : index
    %3 = vector.load %arg2[%c0, %c0_1] : memref<256x32xbf16, #tpu.memory_space<vmem>>, vector<256x32xbf16>
    %c0_2 = arith.constant 0 : index
    %c0_3 = arith.constant 0 : index
    %4 = vector.load %arg3[%c0_2, %c0_3] : memref<32x32xbf16, #tpu.memory_space<vmem>>, vector<32x32xbf16>
    %cst = arith.constant dense<0.000000e+00> : vector<256x32xf32>
    %5 = tpu.matmul %3, %4, %cst {dimension_numbers = #tpu.dot_dimension_numbers<[1], [0], [0], [1], [0, 0, 1, 1], [], []>} : vector<256x32xbf16>, vector<32x32xbf16>, vector<256x32xf32> -> vector<256x32xf32>
    %c0_4 = arith.constant 0 : index
    %c0_5 = arith.constant 0 : index
    %6 = vector.load %arg4[%c0_4, %c0_5] : memref<1x32xf32, #tpu.memory_space<vmem>>, vector<1x32xf32>
    %7 = vector.broadcast %6 : vector<1x32xf32> to vector<256x32xf32>
    %8 = arith.addf %5, %7 : vector<256x32xf32>
    %cst_6 = arith.constant 5.000000e-01 : f32
    %9 = vector.broadcast %cst_6 : f32 to vector<256x32xf32>
    %10 = arith.mulf %9, %8 : vector<256x32xf32>
    %11 = math.tanh %10 : vector<256x32xf32>
    %cst_7 = arith.constant 1.000000e+00 : f32
    %12 = vector.broadcast %cst_7 : f32 to vector<256x32xf32>
    %13 = arith.addf %12, %11 : vector<256x32xf32>
    %cst_8 = arith.constant 5.000000e-01 : f32
    %14 = vector.broadcast %cst_8 : f32 to vector<256x32xf32>
    %15 = arith.mulf %14, %13 : vector<256x32xf32>
    %16 = arith.mulf %8, %15 : vector<256x32xf32>
    %17 = arith.truncf %16 : vector<256x32xf32> to vector<256x32xbf16>
    %c0_9 = arith.constant 0 : index
    %c0_10 = arith.constant 0 : index
    %18 = vector.load %arg5[%c0_9, %c0_10] : memref<32x1280xbf16, #tpu.memory_space<vmem>>, vector<32x1280xbf16>
    %cst_11 = arith.constant dense<0.000000e+00> : vector<256x1280xf32>
    %19 = tpu.matmul %17, %18, %cst_11 {dimension_numbers = #tpu.dot_dimension_numbers<[1], [0], [0], [1], [0, 0, 1, 1], [], []>} : vector<256x32xbf16>, vector<32x1280xbf16>, vector<256x1280xf32> -> vector<256x1280xf32>
    %c0_12 = arith.constant 0 : index
    %c0_13 = arith.constant 0 : index
    %20 = vector.load %arg6[%c0_12, %c0_13] : memref<1x1280xf32, #tpu.memory_space<vmem>>, vector<1x1280xf32>
    %21 = vector.broadcast %20 : vector<1x1280xf32> to vector<256x1280xf32>
    %22 = arith.addf %19, %21 : vector<256x1280xf32>
    %cst_14 = arith.constant 5.000000e-01 : f32
    %23 = vector.broadcast %cst_14 : f32 to vector<256x1280xf32>
    %24 = arith.mulf %23, %22 : vector<256x1280xf32>
    %25 = math.tanh %24 : vector<256x1280xf32>
    %cst_15 = arith.constant 1.000000e+00 : f32
    %26 = vector.broadcast %cst_15 : f32 to vector<256x1280xf32>
    %27 = arith.addf %26, %25 : vector<256x1280xf32>
    %cst_16 = arith.constant 5.000000e-01 : f32
    %28 = vector.broadcast %cst_16 : f32 to vector<256x1280xf32>
    %29 = arith.mulf %28, %27 : vector<256x1280xf32>
    %30 = arith.mulf %22, %29 : vector<256x1280xf32>
    %c0_17 = arith.constant 0 : index
    %c0_18 = arith.constant 0 : index
    %31 = vector.load %arg10[%c0_17, %c0_18] : memref<1x1280xf32, #tpu.memory_space<vmem>>, vector<1x1280xf32>
    %cst_19 = arith.constant dense<0.000000e+00> : vector<1280xf32>
    %32 = vector.multi_reduction <add>, %30, %cst_19 [0] : vector<256x1280xf32> to vector<1280xf32>
    %33 = vector.shape_cast %32 : vector<1280xf32> to vector<1x1280xf32>
    %34 = arith.addf %31, %33 : vector<1x1280xf32>
    %c0_20 = arith.constant 0 : index
    %c0_21 = arith.constant 0 : index
    %35 = vector.load %arg10[%c0_20, %c0_21] : memref<1x1280xf32, #tpu.memory_space<vmem>>, vector<1x1280xf32>
    tpu.vector_store %arg10[%c0_20, %c0_21], %34 {strides = array<i32>} : memref<1x1280xf32, #tpu.memory_space<vmem>>, vector<1x1280xf32>,
    %c0_i32_22 = arith.constant 0 : i32
    %36 = arith.cmpi eq, %arg1, %c0_i32_22 : i32
    %37 = arith.extui %36 : i1 to i32
    %c0_i32_23 = arith.constant 0 : i32
    %38 = arith.cmpi ne, %37, %c0_i32_23 : i32
    scf.if %38 {
      %c0_24 = arith.constant 0 : index
      %c0_25 = arith.constant 0 : index
      %39 = vector.load %arg10[%c0_24, %c0_25] : memref<1x1280xf32, #tpu.memory_space<vmem>>, vector<1x1280xf32>
      %cst_26 = arith.constant 3.906250e-03 : f32
      %40 = vector.broadcast %cst_26 : f32 to vector<1x1280xf32>
      %41 = arith.mulf %39, %40 : vector<1x1280xf32>
      %c0_27 = arith.constant 0 : index
      %c0_28 = arith.constant 0 : index
      %42 = vector.load %arg7[%c0_27, %c0_28] : memref<1280x128xf32, #tpu.memory_space<vmem>>, vector<1280x128xf32>
      %cst_29 = arith.constant dense<0.000000e+00> : vector<1x128xf32>
      %43 = tpu.matmul %41, %42, %cst_29 {dimension_numbers = #tpu.dot_dimension_numbers<[1], [0], [0], [1], [0, 0, 1, 1], [], []>} : vector<1x1280xf32>, vector<1280x128xf32>, vector<1x128xf32> -> vector<1x128xf32>
      %c0_30 = arith.constant 0 : index
      %c0_31 = arith.constant 0 : index
      %44 = vector.load %arg8[%c0_30, %c0_31] : memref<1x128xf32, #tpu.memory_space<vmem>>, vector<1x128xf32>
      %45 = arith.addf %43, %44 : vector<1x128xf32>
      %46 = vector.shape_cast %45 : vector<1x128xf32> to vector<1x1x128xf32>
      %47 = vector.shape_cast %46 : vector<1x1x128xf32> to vector<1x1x128xf32>
      %48 = vector.broadcast %47 : vector<1x1x128xf32> to vector<1x8x128xf32>
      %c0_32 = arith.constant 0 : index
      %c0_33 = arith.constant 0 : index
      %c0_34 = arith.constant 0 : index
      %49 = vector.load %arg9[%c0_32, %c0_33, %c0_34] : memref<1x8x128xf32, #tpu.memory_space<vmem>>, vector<1x8x128xf32>
      tpu.vector_store %arg9[%c0_32, %c0_33, %c0_34], %48 {strides = array<i32>} : memref<1x8x128xf32, #tpu.memory_space<vmem>>, vector<1x8x128xf32>,
    } else {
    }
    return
  }
  func.func @transform_0(%arg0: i32, %arg1: i32) -> (i32, i32) {
    %c1_i32 = arith.constant 1 : i32
    %0 = arith.muli %arg0, %c1_i32 : i32
    %1 = arith.addi %0, %arg1 : i32
    %c0_i32 = arith.constant 0 : i32
    %c0_i32_0 = arith.constant 0 : i32
    return %1, %c0_i32 : i32, i32
  }
  func.func @transform_1(%arg0: i32, %arg1: i32) -> (i32, i32) {
    %c0_i32 = arith.constant 0 : i32
    %c0_i32_0 = arith.constant 0 : i32
    %c0_i32_1 = arith.constant 0 : i32
    return %c0_i32, %c0_i32_0 : i32, i32
  }
  func.func @transform_2(%arg0: i32, %arg1: i32) -> (i32, i32) {
    %c0_i32 = arith.constant 0 : i32
    %c0_i32_0 = arith.constant 0 : i32
    %c0_i32_1 = arith.constant 0 : i32
    return %c0_i32, %c0_i32_0 : i32, i32
  }
  func.func @transform_3(%arg0: i32, %arg1: i32) -> (i32, i32) {
    %c0_i32 = arith.constant 0 : i32
    %c0_i32_0 = arith.constant 0 : i32
    %c0_i32_1 = arith.constant 0 : i32
    return %c0_i32, %c0_i32_0 : i32, i32
  }
  func.func @transform_4(%arg0: i32, %arg1: i32) -> (i32, i32) {
    %c0_i32 = arith.constant 0 : i32
    %c0_i32_0 = arith.constant 0 : i32
    %c0_i32_1 = arith.constant 0 : i32
    return %c0_i32, %c0_i32_0 : i32, i32
  }
  func.func @transform_5(%arg0: i32, %arg1: i32) -> (i32, i32) {
    %c0_i32 = arith.constant 0 : i32
    %c0_i32_0 = arith.constant 0 : i32
    %c0_i32_1 = arith.constant 0 : i32
    return %c0_i32, %c0_i32_0 : i32, i32
  }
  func.func @transform_6(%arg0: i32, %arg1: i32) -> (i32, i32) {
    %c0_i32 = arith.constant 0 : i32
    %c0_i32_0 = arith.constant 0 : i32
    %c0_i32_1 = arith.constant 0 : i32
    return %c0_i32, %c0_i32_0 : i32, i32
  }
  func.func @transform_7(%arg0: i32, %arg1: i32) -> (i32, i32, i32) {
    %c0_i32 = arith.constant 0 : i32
    %c0_i32_0 = arith.constant 0 : i32
    %c0_i32_1 = arith.constant 0 : i32
    return %arg0, %c0_i32, %c0_i32_0 : i32, i32, i32
  }
}

</mosaic_0001>

<bundles_post_ra>
// kernel: tpu_custom_call.1
= control target key start
LH: loop header
LB: loop body
LE: loop exit
PB: predicated region body
PF: predicated region fallthrough
CT: control target
= control target key end

     0   :  { %12 = vsyncpa [#allocation4], 0  ;;  %s7988_s0 = inlined_call_operand.vmem [shape: bf16[512,32], index: 0, kind: input, shape index: {}]   ;;  %s7989_s1 = inlined_call_operand.vmem [shape: bf16[32,32], index: 1, kind: input, shape index: {}]   ;;  %s7990_s2 = inlined_call_operand.vmem [shape: f32[1,32], index: 2, kind: input, shape index: {}]   ;;  %s7991_s3 = inlined_call_operand.vmem [shape: bf16[32,1280], index: 3, kind: input, shape index: {}]   ;;  %s7992_s4 = inlined_call_operand.vmem [shape: f32[1,1280], index: 4, kind: input, shape index: {}]   ;;  %s7993_s5 = inlined_call_operand.hbm [shape: f32[1280,128], index: 5, kind: input, shape index: {}]   ;;  %s7994_s6 = inlined_call_operand.vmem [shape: f32[1,128], index: 6, kind: input, shape index: {}]   ;;  %s7995_s7 = inlined_call_operand.hbm [shape: f32[2,8,128], index: 7, kind: output, shape index: {}]  }
   0x1   :  { %13 = vsyncpa [#allocation5], 0 }
   0x2   :  { %15 = vsyncpa [#allocation5 + $0x1], 0  ;;  %s5670_s24 = smov 0   ;;  %s5672_s25 = smov 0  }
   0x3   :  { %s5674_s26 = smov 0   ;;  %s5676_s27 = smov 0  }
   0x4   :  { %s5678_s28 = smov 0   ;;  %s5680_s29 = smov 0  }
   0x5 LB: > { %s4356_s30 = sadd.s32 4294967295, %s5624_s29   ;;  %s4357_s8 = sadd.s32 4294967294, %s5624_s29   ;;  %s5624_s29 = sphi %s5680_s29, %s21_s29   ;;  %s5620_s28 = sphi %s5678_s28, %s8004_s28   ;;  %s5616_s27 = sphi %s5676_s27, %s8003_s27   ;;  %s5612_s26 = sphi %s5674_s26, %s8002_s26   ;;  %s5608_s25 = sphi %s5672_s25, %s8001_s25   ;;  %s5604_s24 = sphi %s5670_s24, %s8000_s24  }
   0x6   : > { %s33_s9 = sadd.s32 1, %s5620_s28  ;;  %s194_s10 = sadd.s32 1, %s5612_s26 }
   0x7   : > { %p35_p0 = scmp.ge.s32.totalorder %s33_s9, 2  ;;  %p204_p1 = scmp.ne.s32.totalorder %s5612_s26, %s5608_s25 }
   0x8   : > { %p205_p2 = scmp.eq.s32.totalorder %s4356_s30, 1  ;;  %p210_p3 = scmp.ne.s32.totalorder %s5608_s25, %s5604_s24 }
   0x9   : > { %s8006_s9 = smov (%p35_p0, %s33_s9), 0  ;;  %p211_p5 = scmp.eq.s32.totalorder %s4357_s8, 1 }
   0xa   : > { %p5710_p4 = por %p205_p2, %p204_p1  ;;  %s191_s12 = ssub.s32 %s5620_s28, %s8006_s9 }
   0xb   : > { %p4358_p6 = scmp.ge.s32.totalorder %s5624_s29, 1  ;;  %p192_p7 = scmp.eq.s32.totalorder %s191_s12, 0 }
   0xc   : > { %p5717_p8 = por %p211_p5, %p210_p3  ;;  %p218_p9 = scmp.lt.s32.totalorder %s5624_s29, 3 }
   0xd   : > { %s5723_s14 = scalar_select %p192_p7, %s5612_s26, %s194_s10  }
   0xe   : > { %p219_p10 = pnand %p4358_p6, %p218_p9  ;;  %p4750_p11 = scmp.eq.s32.totalorder %s4356_s30, 0 }
   0xf   : > { %s241_s17 = sshll.u32 %s7993_s5, 4  ;;  %s5626_s18 = smov [#allocation3]   ;;  %s242_s17 = int_to_ptr.hbm [resolvable:$true] %s241_s17 }
  0x10   : > { %p4742_p12 = pneg %p219_p10  ;;  %s243_s19 = sshll.u32 %s5626_s18, 4  ;;  %s244_s19 = int_to_ptr.vmem [resolvable:$true] %s243_s19 }
  0x11   : > { %s5627_s20 = smov 128   ;;  %s5628_s21 = smov 8  }
  0x12   : > { %p4743_p13 = pnand %p4750_p11, %p4742_p12  ;;  %273 = sbr.rel (%p219_p10) target bundleno = 1295 (0x50f), region = 48 }
  0x14   : > { %4745 = dma.hbm_to_vmem [thread:$0]  (!%p4743_p13), %s242_s17, 20480, %s244_s19, [#allocation4], %s5627_s20, %s5627_s20, %s5628_s21  }
  0x17   : > { %5595 = dma.done.wait (%p4750_p11), [#allocation4], 20480  }
  0x18   : > { %5597 = vsyncadd (%p4750_p11), [#allocation4], 4294946816  ;;  %s4364_s22 = sshll.u32 %s5616_s27, 5  ;;  %v4715_v0 = vld [vmem:[%s7989_s1 + $0x8] sm:$0xff]  ;;  %v4714_v1 = vld [vmem:[%s7989_s1] sm:$0xff]  ;;  %vm458_vm0 = vcmask 261120  }
  0x19   : > { %p309_p0 = scmp.lt.s32.totalorder %s4364_s22, 63  ;;  %513 = vmatpush.bf16.msra.mxu0 %v4715_v0  ;;  %v4727_v6 = vld [vmem:[%s7991_s3 + $0x5c] sm:$0xf]  ;;  %v4506_v7 = vld [vmem:[%s7991_s3 + $0x80] sm:$0xf0]  ;;  %vm3844_vm1 = vcmask 1040384  }
  0x1a   : > { %v4509_v8 = vor.u32 %v4727_v6, %v4506_v7  ;;  %v4496_v13 = vld [vmem:[%s7991_s3 + $0x50] sm:$0xf]  ;;  %v4731_v14 = vld [vmem:[%s7991_s3 + $0x74] sm:$0xf0]  ;;  %v4726_v15 = vld [vmem:[%s7991_s3 + $0x54] sm:$0xf] }
  0x1b   : > { %s8008_s22 = smov (!%p309_p0, %s4364_s22), 63  ;;  %v4497_v16 = vor.u32 %v4731_v14, %v4496_v13  ;;  %v4498_v17 = vld [vmem:[%s7991_s3 + $0x78] sm:$0xf0]  ;;  %v4504_v18 = vld [vmem:[%s7991_s3 + $0x58] sm:$0xf]  ;;  %vm3846_vm2 = vcmask 1042434  }
  0x1c   : > { %s4365_s23 = sshll.u32 %s8008_s22, 2  ;;  %v4732_v19 = vld [vmem:[%s7991_s3 + $0x7c] sm:$0xf0]  ;;  %v4501_v20 = vor.u32 %v4726_v15, %v4498_v17  ;;  %v4721_v23 = vld [vmem:[%s7991_s3 + $0x24] sm:$0xf0]  ;;  %vm3848_vm3 = vcmask 1041408  }
  0x1d   : > { %s5738_s17 = scalar_lea.vmem %s7988_s0, %s4365_s23  ;;  %514 = vmatpush.bf16.msra.mxu0 %v4714_v1  ;;  %v4505_v21 = vor.u32 %v4732_v19, %v4504_v18  ;;  %970 = vmatpush.bf16.msra.mxu1 %v4497_v16  ;;  %v4456_v22 = vld [vmem:[%s7991_s3] sm:$0xf]  ;;  %v4716_v24 = vld [vmem:[%s7991_s3 + $0x4] sm:$0xf]  ;;  %v4458_v26 = vld [vmem:[%s7991_s3 + $0x28] sm:$0xf0] }
  0x1e   : > { %v4698_v2 = vld [vmem:[%s5738_s17] sm:$0xff]  ;;  %v4699_v3 = vld [vmem:[%s5738_s17 + $0x8] sm:$0xff]  ;;  %v4700_v4 = vld [vmem:[%s5738_s17 + $0x10] sm:$0xff]  ;;  %1059 = vmatpush.bf16.msra.mxu2 %v4501_v20  ;;  %v4457_v25 = vor.u32 %v4721_v23, %v4456_v22  ;;  %v4461_v29 = vor.u32 %v4716_v24, %v4458_v26  ;;  %vm3850_vm4 = vcmask 1044484   ;;  %vm3852_vm5 = vcmask 1046534   ;;  %s304_s22 = sand.u32 1, %s5608_s25  }
  0x1f   : > { %v4701_v5 = vld [vmem:[%s5738_s17 + $0x18] sm:$0xff]  ;;  %v4702_v9 = vld [vmem:[%s5738_s17 + $0x20] sm:$0xff]  ;;  %v4703_v10 = vld [vmem:[%s5738_s17 + $0x28] sm:$0xff]  ;;  %1148 = vmatpush.bf16.msra.mxu3 %v4505_v21  ;;  %vm3854_vm6 = vcmask 1045508   ;;  %vm3856_vm7 = vcmask 1043456   ;;  %s4363_s23 = sshll.u32 %s304_s22, 3 }
  0x20   : > { %4438 = vmatmul.msk.bf16.vlgmr.msra.gmra.mxu0 %vm458_vm0, %v4698_v2  ;;  %v4704_v11 = vld [vmem:[%s5738_s17 + $0x30] sm:$0xff]  ;;  %v4705_v12 = vld [vmem:[%s5738_s17 + $0x38] sm:$0xff]  ;;  %v4464_v27 = vld [vmem:[%s7991_s3 + $0x8] sm:$0xf]  ;;  %s306_s12 = scalar_lea.vmem [#allocation6], %s4363_s23 }
  0x21   : > { %1237 = vmatpush.bf16.msrb.mxu0 %v4509_v8  ;;  %v4722_v28 = vld [vmem:[%s7991_s3 + $0x2c] sm:$0xf0]  ;;  %971 = vmatpush.bf16.msra.mxu1 %v4457_v25  ;;  %v5801_v31 = vld [vmem:[%s7990_s2] ss:$0 sm:$0xff]  ;;  %v4707_v40 = vld [vmem:[%s5738_s17 + $0x48] sm:$0xff]  ;;  %s4274_s15 = sshll.u32 %s306_s12, 4  ;;  %s4275_s15 = int_to_ptr.vmem [resolvable:$true] %s4274_s15 }
  0x22   : > { %v4465_v30 = vor.u32 %v4722_v28, %v4464_v27  ;;  %1060 = vmatpush.bf16.msra.mxu2 %v4461_v29  ;;  %v4706_v32 = vld [vmem:[%s5738_s17 + $0x40] sm:$0xff]  ;;  %v4708_v56 = vld [vmem:[%s5738_s17 + $0x50] sm:$0xff]  ;;  %v4709_v8 = vld [vmem:[%s5738_s17 + $0x58] sm:$0xff] }
  0x23   : > { %v4512_v25 = vld [vmem:[%s7991_s3 + $0x60] sm:$0xf]  ;;  %v4733_v26 = vld [vmem:[%s7991_s3 + $0x84] sm:$0xf0] }
  0x24   : > { %1149 = vmatpush.bf16.msra.mxu3 %v4465_v30  ;;  %v4513_v28 = vor.u32 %v4733_v26, %v4512_v25  ;;  %v4710_v30 = vld [vmem:[%s5738_s17 + $0x60] sm:$0xff] }
  0x26   : > { %1326 = vmatpush.bf16.msrb.mxu1 %v4513_v28 }
  0x30   : > { %4439 = vmatmul.msk.bf16.gmra.mxu0 %vm458_vm0, %v4699_v3 }
  0x40   : > { %4440 = vmatmul.msk.bf16.gmra.mxu0 %vm458_vm0, %v4700_v4 }
  0x50   : > { %4441 = vmatmul.msk.bf16.gmra.mxu0 %vm458_vm0, %v4701_v5 }
  0x60   : > { %4442 = vmatmul.msk.bf16.gmra.mxu0 %vm458_vm0, %v4702_v9 }
  0x70   : > { %4443 = vmatmul.msk.bf16.gmra.mxu0 %vm458_vm0, %v4703_v10 }
  0x80   : > { %4444 = vmatmul.msk.bf16.gmra.mxu0 %vm458_vm0, %v4704_v11  ;;  %v4728_v11 = vld [vmem:[%s7991_s3 + $0x64] sm:$0xf] }
  0x90   : > { %4445 = vmatmul.msk.bf16.gmra.mxu0 %vm458_vm0, %v4705_v12  ;;  %v4514_v12 = vld [vmem:[%s7991_s3 + $0x88] sm:$0xf0] }
  0x91   : > { %v4517_v14 = vor.u32 %v4728_v11, %v4514_v12 }
  0x93   : > { %1415 = vmatpush.bf16.msrb.mxu2 %v4517_v14 }
  0x9d   : > { %v516_v33 = vpop.f32.mrf.mxu0 }
  0x9e   : > { %v517_v34 = vadd.f32 %v5801_v31, %v516_v33 }
  0xa0   : > { %v596_v35 = vmul.f32 0.5, %v517_v34  ;;  %4446 = vmatmul.msk.bf16.gmra.mxu0 %vm458_vm0, %v4706_v32 }
  0xa2   : > { %4806 = vtanh.f32 %v596_v35  ;;  %v4466_v35 = vld [vmem:[%s7991_s3 + $0x30] sm:$0xf0] }
  0xa5   : > { %v518_v36 = vpop.f32.mrf.mxu0 }
  0xa6   : > { %v519_v37 = vadd.f32 %v5801_v31, %v518_v36 }
  0xa8   : > { %v597_v38 = vmul.f32 0.5, %v519_v37  ;;  %v4807_v39 = vpop.eup %4806 }
  0xa9   : > { %v660_v41 = vadd.f32 1.0, %v4807_v39 }
  0xaa   : > { %4808 = vtanh.f32 %v597_v38 }
  0xab   : > { %v692_v46 = vmul.f32 0.5, %v660_v41 }
  0xad   : > { %v521_v42 = vpop.f32.mrf.mxu0  ;;  %v724_v49 = vmul.f32 %v692_v46, %v517_v34  ;;  %v4717_v34 = vld [vmem:[%s7991_s3 + $0xc] sm:$0xf] }
  0xae   : > { %v522_v43 = vadd.f32 %v5801_v31, %v521_v42 }
  0xb0   : > { %v4809_v44 = vpop.eup %4808  ;;  %v598_v45 = vmul.f32 0.5, %v522_v43  ;;  %4447 = vmatmul.msk.bf16.gmra.mxu0 %vm458_vm0, %v4707_v40 }
  0xb1   : > { %v661_v47 = vadd.f32 1.0, %v4809_v44 }
  0xb2   : > { %4810 = vtanh.f32 %v598_v45 }
  0xb3   : > { %v693_v48 = vmul.f32 0.5, %v661_v47 }
  0xb5   : > { %v725_v50 = vmul.f32 %v693_v48, %v519_v37  ;;  %v523_v51 = vpop.f32.mrf.mxu0  ;;  %v4469_v37 = vor.u32 %v4717_v34, %v4466_v35 }
  0xb6   : > { %v524_v52 = vadd.f32 %v5801_v31, %v523_v51 }
  0xb7   : > { %v5811_v53 = vpack.c.bf16 %v725_v50, %v724_v49  ;;  %1238 = vmatpush.bf16.msrb.mxu0 %v4469_v37  ;;  %v4711_v50 = vld [vmem:[%s5738_s17 + $0x68] sm:$0xff] }
  0xb8   : > { %v599_v54 = vmul.f32 0.5, %v524_v52  ;;  %v4811_v55 = vpop.eup %4810 }
  0xb9   : > { %4534 = vmatmul.msk.bf16.vlgmr.msra.gmra.mxu1 %vm458_vm0, %v5811_v53  ;;  %4550 = vmatmul.msk.bf16.vlgmr.msra.gmra.mxu2 %vm458_vm0, %v5811_v53  ;;  %v662_v57 = vadd.f32 1.0, %v4811_v55 }
  0xba   : > { %4812 = vtanh.f32 %v599_v54  ;;  %4566 = vmatmul.msk.bf16.vlgmr.msra.gmra.mxu3 %vm458_vm0, %v5811_v53 }
  0xbb   : > { %v694_v62 = vmul.f32 0.5, %v662_v57 }
  0xbd   : > { %v526_v58 = vpop.f32.mrf.mxu0  ;;  %v726_v1 = vmul.f32 %v694_v62, %v522_v43 }
  0xbe   : > { %v527_v59 = vadd.f32 %v5801_v31, %v526_v58 }
  0xc0   : > { %v4813_v60 = vpop.eup %4812  ;;  %v600_v61 = vmul.f32 0.5, %v527_v59  ;;  %4448 = vmatmul.msk.bf16.gmra.mxu0 %vm458_vm0, %v4708_v56 }
  0xc1   : > { %v663_v63 = vadd.f32 1.0, %v4813_v60 }
  0xc2   : > { %4814 = vtanh.f32 %v600_v61 }
  0xc3   : > { %v695_v0 = vmul.f32 0.5, %v663_v63 }
  0xc5   : > { %v727_v2 = vmul.f32 %v695_v0, %v524_v52  ;;  %v528_v3 = vpop.f32.mrf.mxu0 }
  0xc6   : > { %v529_v4 = vadd.f32 %v5801_v31, %v528_v3  ;;  %v4712_v3 = vld [vmem:[%s5738_s17 + $0x70] sm:$0xff] }
  0xc7   : > { %v5823_v5 = vpack.c.bf16 %v727_v2, %v726_v1 }
  0xc8   : > { %v601_v6 = vmul.f32 0.5, %v529_v4  ;;  %v4815_v7 = vpop.eup %4814 }
  0xc9   : > { %4535 = vmatmul.msk.bf16.gmra.mxu1 %vm458_vm0, %v5823_v5  ;;  %4551 = vmatmul.msk.bf16.gmra.mxu2 %vm458_vm0, %v5823_v5  ;;  %v664_v9 = vadd.f32 1.0, %v4815_v7 }
  0xca   : > { %4816 = vtanh.f32 %v601_v6  ;;  %4567 = vmatmul.msk.bf16.gmra.mxu3 %vm458_vm0, %v5823_v5 }
  0xcb   : > { %v696_v17 = vmul.f32 0.5, %v664_v9 }
  0xcd   : > { %v531_v10 = vpop.f32.mrf.mxu0  ;;  %v728_v20 = vmul.f32 %v696_v17, %v527_v59 }
  0xce   : > { %v532_v13 = vadd.f32 %v5801_v31, %v531_v10 }
  0xd0   : > { %v4817_v15 = vpop.eup %4816  ;;  %v602_v16 = vmul.f32 0.5, %v532_v13  ;;  %4449 = vmatmul.msk.bf16.gmra.mxu0 %vm458_vm0, %v4709_v8 }
  0xd1   : > { %v665_v18 = vadd.f32 1.0, %v4817_v15 }
  0xd2   : > { %4818 = vtanh.f32 %v602_v16 }
  0xd3   : > { %v697_v19 = vmul.f32 0.5, %v665_v18 }
  0xd5   : > { %v729_v21 = vmul.f32 %v697_v19, %v529_v4  ;;  %v533_v22 = vpop.f32.mrf.mxu0 }
  0xd6   : > { %v534_v23 = vadd.f32 %v5801_v31, %v533_v22 }
  0xd7   : > { %v5841_v24 = vpack.c.bf16 %v729_v21, %v728_v20  ;;  %v4713_v20 = vld [vmem:[%s5738_s17 + $0x78] sm:$0xff]  ;;  %s4695_s17 = sshll.u32 %s5616_s27, 3  ;;  %s4262_s27 = scalar_lea.sflag [#allocation5], %s304_s22 }
  0xd8   : > { %v603_v27 = vmul.f32 0.5, %v534_v23  ;;  %v4819_v29 = vpop.eup %4818  ;;  %s4272_s10 = scalar_lea.hbm %s7995_s7, %s4695_s17  ;;  %s5562_s17 = scalar_lea.hbm %s7995_s7, 16 }
  0xd9   : > { %4536 = vmatmul.msk.bf16.gmra.mxu1 %vm458_vm0, %v5841_v24  ;;  %4552 = vmatmul.msk.bf16.gmra.mxu2 %vm458_vm0, %v5841_v24  ;;  %v666_v32 = vadd.f32 1.0, %v4819_v29  ;;  %s4276_s16 = sshll.u32 %s4272_s10, 4  ;;  %s4277_s16 = int_to_ptr.hbm [resolvable:$true] %s4276_s16 }
  0xda   : > { %4820 = vtanh.f32 %v603_v27  ;;  %4568 = vmatmul.msk.bf16.gmra.mxu3 %vm458_vm0, %v5841_v24  ;;  %s5556_s18 = sshra.s32 %s4277_s16, 4  ;;  %s5557_s18 = int_to_ptr.hbm [resolvable:$true] %s5556_s18 }
  0xdb   : > { %v698_v40 = vmul.f32 0.5, %v666_v32  ;;  %s5558_s19 = scalar_lea.hbm %s5557_s18, 8  ;;  %p5563_p5 = scmp.lt.s32.totalorder %s5557_s18, %s7995_s7 }
  0xdc   : > { %p5559_p1 = scmp.ne.s32.totalorder %s5557_s18, %s5558_s19  ;;  %p5564_p6 = scmp.lt.s32.totalorder %s5562_s17, %s5558_s19 }
  0xdd   : > { %v536_v33 = vpop.f32.mrf.mxu0  ;;  %v730_v43 = vmul.f32 %v698_v40, %v532_v13 }
  0xde   : > { %v537_v36 = vadd.f32 %v5801_v31, %v536_v33  ;;  %p5560_p2 = pnand %p5559_p1, %p5710_p4  ;;  %p5565_p7 = por %p5564_p6, %p5563_p5 }
  0xe0   : > { %v4821_v38 = vpop.eup %4820  ;;  %v604_v39 = vmul.f32 0.5, %v537_v36  ;;  %4450 = vmatmul.msk.bf16.gmra.mxu0 %vm458_vm0, %v4710_v30  ;;  %p5561_p3 = pneg %p5560_p2 }
  0xe1   : > { %v667_v41 = vadd.f32 1.0, %v4821_v38 }
  0xe2   : > { %4822 = vtanh.f32 %v604_v39  ;;  %p5566_p9 = pnand %p5565_p7, %p5561_p3 }
  0xe3   : > { %v699_v42 = vmul.f32 0.5, %v667_v41 }
  0xe5   : > { %v731_v44 = vmul.f32 %v699_v42, %v534_v23  ;;  %v538_v45 = vpop.f32.mrf.mxu0 }
  0xe6   : > { %v539_v46 = vadd.f32 %v5801_v31, %v538_v45 }
  0xe7   : > { %v5865_v47 = vpack.c.bf16 %v731_v44, %v730_v43 }
  0xe8   : > { %v605_v48 = vmul.f32 0.5, %v539_v46  ;;  %v4823_v49 = vpop.eup %4822 }
  0xe9   : > { %4537 = vmatmul.msk.bf16.gmra.mxu1 %vm458_vm0, %v5865_v47  ;;  %4553 = vmatmul.msk.bf16.gmra.mxu2 %vm458_vm0, %v5865_v47  ;;  %v668_v51 = vadd.f32 1.0, %v4823_v49 }
  0xea   : > { %4824 = vtanh.f32 %v605_v48  ;;  %4569 = vmatmul.msk.bf16.gmra.mxu3 %vm458_vm0, %v5865_v47 }
  0xeb   : > { %v700_v57 = vmul.f32 0.5, %v668_v51 }
  0xed   : > { %v541_v52 = vpop.f32.mrf.mxu0  ;;  %v732_v60 = vmul.f32 %v700_v57, %v537_v36 }
  0xee   : > { %v542_v54 = vadd.f32 %v5801_v31, %v541_v52 }
  0xf0   : > { %v4825_v55 = vpop.eup %4824  ;;  %v606_v56 = vmul.f32 0.5, %v542_v54  ;;  %4451 = vmatmul.msk.bf16.gmra.mxu0 %vm458_vm0, %v4711_v50 }
  0xf1   : > { %v669_v58 = vadd.f32 1.0, %v4825_v55 }
  0xf2   : > { %4826 = vtanh.f32 %v606_v56 }
  0xf3   : > { %v701_v59 = vmul.f32 0.5, %v669_v58 }
  0xf5   : > { %v733_v61 = vmul.f32 %v701_v59, %v539_v46  ;;  %v543_v62 = vpop.f32.mrf.mxu0 }
  0xf6   : > { %v544_v63 = vadd.f32 %v5801_v31, %v543_v62 }
  0xf7   : > { %v5877_v0 = vpack.c.bf16 %v733_v61, %v732_v60  ;;  %v5927_v60 = vld [vmem:[%s7992_s4] sm:$0xff] }
  0xf8   : > { %v607_v1 = vmul.f32 0.5, %v544_v63  ;;  %v4827_v2 = vpop.eup %4826 }
  0xf9   : > { %4538 = vmatmul.msk.bf16.gmra.mxu1 %vm458_vm0, %v5877_v0  ;;  %4554 = vmatmul.msk.bf16.gmra.mxu2 %vm458_vm0, %v5877_v0  ;;  %v670_v4 = vadd.f32 1.0, %v4827_v2 }
  0xfa   : > { %4828 = vtanh.f32 %v607_v1  ;;  %4570 = vmatmul.msk.bf16.gmra.mxu3 %vm458_vm0, %v5877_v0  ;;  %v5930_v1 = vperm.slane %v5927_v60, 0 }
  0xfb   : > { %v702_v10 = vmul.f32 0.5, %v670_v4 }
  0xfd   : > { %v546_v6 = vpop.f32.mrf.mxu0  ;;  %v734_v13 = vmul.f32 %v702_v10, %v542_v54 }
  0xfe   : > { %v547_v7 = vadd.f32 %v5801_v31, %v546_v6 }
 0x100   : > { %v4829_v8 = vpop.eup %4828  ;;  %v608_v9 = vmul.f32 0.5, %v547_v7  ;;  %4452 = vmatmul.msk.bf16.gmra.mxu0 %vm458_vm0, %v4712_v3 }
 0x101   : > { %v671_v11 = vadd.f32 1.0, %v4829_v8 }
 0x102   : > { %4830 = vtanh.f32 %v608_v9 }
 0x103   : > { %v703_v12 = vmul.f32 0.5, %v671_v11 }
 0x105   : > { %v735_v14 = vmul.f32 %v703_v12, %v544_v63  ;;  %v548_v15 = vpop.f32.mrf.mxu0  ;;  %v5944_v12 = vperm.slane %v5927_v60, 1 }
 0x106   : > { %v549_v16 = vadd.f32 %v5801_v31, %v548_v15 }
 0x107   : > { %v5889_v17 = vpack.c.bf16 %v735_v14, %v734_v13  ;;  %v5949_v14 = vperm.slane %v5927_v60, 2 }
 0x108   : > { %v609_v18 = vmul.f32 0.5, %v549_v16  ;;  %v4831_v19 = vpop.eup %4830 }
 0x109   : > { %4539 = vmatmul.msk.bf16.gmra.mxu1 %vm458_vm0, %v5889_v17  ;;  %4555 = vmatmul.msk.bf16.gmra.mxu2 %vm458_vm0, %v5889_v17  ;;  %v672_v21 = vadd.f32 1.0, %v4831_v19 }
 0x10a   : > { %4832 = vtanh.f32 %v609_v18  ;;  %4571 = vmatmul.msk.bf16.gmra.mxu3 %vm458_vm0, %v5889_v17 }
 0x10b   : > { %v704_v27 = vmul.f32 0.5, %v672_v21 }
 0x10d   : > { %v551_v22 = vpop.f32.mrf.mxu0  ;;  %v736_v30 = vmul.f32 %v704_v27, %v547_v7 }
 0x10e   : > { %v552_v23 = vadd.f32 %v5801_v31, %v551_v22 }
 0x110   : > { %v4833_v25 = vpop.eup %4832  ;;  %v610_v26 = vmul.f32 0.5, %v552_v23  ;;  %4453 = vmatmul.msk.bf16.gmra.mxu0 %vm458_vm0, %v4713_v20 }
 0x111   : > { %v673_v28 = vadd.f32 1.0, %v4833_v25 }
 0x112   : > { %4834 = vtanh.f32 %v610_v26 }
 0x113   : > { %v705_v29 = vmul.f32 0.5, %v673_v28 }
 0x115   : > { %v737_v32 = vmul.f32 %v705_v29, %v549_v16  ;;  %v553_v33 = vpop.f32.mrf.mxu0 }
 0x116   : > { %v554_v34 = vadd.f32 %v5801_v31, %v553_v33 }
 0x117   : > { %v5901_v35 = vpack.c.bf16 %v737_v32, %v736_v30 }
 0x118   : > { %v611_v36 = vmul.f32 0.5, %v554_v34  ;;  %v4835_v37 = vpop.eup %4834 }
 0x119   : > { %4540 = vmatmul.msk.bf16.gmra.mxu1 %vm458_vm0, %v5901_v35  ;;  %4556 = vmatmul.msk.bf16.gmra.mxu2 %vm458_vm0, %v5901_v35  ;;  %v674_v38 = vadd.f32 1.0, %v4835_v37 }
 0x11a   : > { %4836 = vtanh.f32 %v611_v36  ;;  %4572 = vmatmul.msk.bf16.gmra.mxu3 %vm458_vm0, %v5901_v35 }
 0x11b   : > { %v706_v43 = vmul.f32 0.5, %v674_v38 }
 0x11d   : > { %v556_v39 = vpop.f32.mrf.mxu0  ;;  %v738_v46 = vmul.f32 %v706_v43, %v552_v23 }
 0x11e   : > { %v557_v40 = vadd.f32 %v5801_v31, %v556_v39 }
 0x120   : > { %v4837_v41 = vpop.eup %4836  ;;  %v612_v42 = vmul.f32 0.5, %v557_v40  ;;  %4582 = vmatmul.msk.bf16.vlgmr.msrb.gmra.mxu0 %vm458_vm0, %v5811_v53 }
 0x121   : > { %v675_v44 = vadd.f32 1.0, %v4837_v41 }
 0x122   : > { %4838 = vtanh.f32 %v612_v42 }
 0x123   : > { %v707_v45 = vmul.f32 0.5, %v675_v44 }
 0x125   : > { %v739_v48 = vmul.f32 %v707_v45, %v554_v34  ;;  %v558_v49 = vpop.f32.mrf.mxu0 }
 0x126   : > { %v559_v50 = vadd.f32 %v5801_v31, %v558_v49 }
 0x127   : > { %v5913_v51 = vpack.c.bf16 %v739_v48, %v738_v46 }
 0x128   : > { %v613_v52 = vmul.f32 0.5, %v559_v50  ;;  %v4839_v54 = vpop.eup %4838 }
 0x129   : > { %4541 = vmatmul.msk.bf16.gmra.mxu1 %vm458_vm0, %v5913_v51  ;;  %4557 = vmatmul.msk.bf16.gmra.mxu2 %vm458_vm0, %v5913_v51  ;;  %v676_v55 = vadd.f32 1.0, %v4839_v54 }
 0x12a   : > { %4840 = vtanh.f32 %v613_v52  ;;  %4573 = vmatmul.msk.bf16.gmra.mxu3 %vm458_vm0, %v5913_v51 }
 0x12b   : > { %v708_v61 = vmul.f32 0.5, %v676_v55 }
 0x12d   : > { %v561_v56 = vpop.f32.mrf.mxu0  ;;  %v740_v2 = vmul.f32 %v708_v61, %v557_v40 }
 0x12e   : > { %v562_v57 = vadd.f32 %v5801_v31, %v561_v56 }
 0x130   : > { %v4841_v58 = vpop.eup %4840  ;;  %v614_v59 = vmul.f32 0.5, %v562_v57  ;;  %4583 = vmatmul.msk.bf16.gmra.mxu0 %vm458_vm0, %v5823_v5 }
 0x131   : > { %v677_v62 = vadd.f32 1.0, %v4841_v58 }
 0x132   : > { %4842 = vtanh.f32 %v614_v59 }
 0x133   : > { %v709_v63 = vmul.f32 0.5, %v677_v62 }
 0x135   : > { %v741_v3 = vmul.f32 %v709_v63, %v559_v50  ;;  %v563_v4 = vpop.f32.mrf.mxu0 }
 0x136   : > { %v564_v6 = vadd.f32 %v5801_v31, %v563_v4  ;;  %v973_v7 = vpop.f32.mrf.mxu1 }
 0x137   : > { %v5933_v8 = vpack.c.bf16 %v741_v3, %v740_v2  ;;  %v5936_v9 = vadd.f32 %v973_v7, %v5930_v1 }
 0x138   : > { %v615_v10 = vmul.f32 0.5, %v564_v6  ;;  %v4843_v13 = vpop.eup %4842 }
 0x139   : > { %v1854_v11 = vmul.f32 0.5, %v5936_v9  ;;  %4542 = vmatmul.msk.bf16.gmra.mxu1 %vm458_vm0, %v5933_v8  ;;  %4558 = vmatmul.msk.bf16.gmra.mxu2 %vm458_vm0, %v5933_v8  ;;  %v678_v16 = vadd.f32 1.0, %v4843_v13 }
 0x13a   : > { %4844 = vtanh.f32 %v615_v10  ;;  %4574 = vmatmul.msk.bf16.gmra.mxu3 %vm458_vm0, %v5933_v8 }
 0x13b   : > { %4846 = vtanh.f32 %v1854_v11  ;;  %v710_v30 = vmul.f32 0.5, %v678_v16 }
 0x13c   : > { %v1062_v15 = vpop.f32.mrf.mxu2 }
 0x13d   : > { %v5952_v18 = vadd.f32 %v1062_v15, %v5944_v12  ;;  %v1151_v19 = vpop.f32.mrf.mxu3  ;;  %v566_v20 = vpop.f32.mrf.mxu0  ;;  %v742_v38 = vmul.f32 %v710_v30, %v562_v57 }
 0x13e   : > { %v5955_v21 = vadd.f32 %v1151_v19, %v5949_v14  ;;  %v5958_v22 = vadd.f32 %v5801_v31, %v566_v20  ;;  %v975_v23 = vpop.f32.mrf.mxu1 }
 0x13f   : > { %v1855_v25 = vmul.f32 0.5, %v5952_v18  ;;  %v976_v26 = vadd.f32 %v975_v23, %v5930_v1 }
 0x140   : > { %v4845_v27 = vpop.eup %4844  ;;  %v1856_v28 = vmul.f32 0.5, %v5955_v21  ;;  %v616_v29 = vmul.f32 0.5, %v5958_v22  ;;  %4584 = vmatmul.msk.bf16.gmra.mxu0 %vm458_vm0, %v5841_v24 }
 0x141   : > { %v679_v32 = vadd.f32 1.0, %v4845_v27  ;;  %4848 = vtanh.f32 %v1855_v25  ;;  %v1864_v33 = vmul.f32 0.5, %v976_v26  ;;  %v4847_v34 = vpop.eup %4846 }
 0x142   : > { %4850 = vtanh.f32 %v1856_v28  ;;  %v2494_v43 = vadd.f32 1.0, %v4847_v34 }
 0x143   : > { %v711_v36 = vmul.f32 0.5, %v679_v32  ;;  %4852 = vtanh.f32 %v616_v29 }
 0x144   : > { %4854 = vtanh.f32 %v1864_v33  ;;  %v1064_v37 = vpop.f32.mrf.mxu2  ;;  %v2814_v61 = vmul.f32 0.5, %v2494_v43 }
 0x145   : > { %v743_v39 = vmul.f32 %v711_v36, %v564_v6  ;;  %v5967_v40 = vadd.f32 %v1064_v37, %v5944_v12  ;;  %v1153_v41 = vpop.f32.mrf.mxu3  ;;  %v568_v42 = vpop.f32.mrf.mxu0 }
 0x146   : > { %v5970_v44 = vadd.f32 %v1153_v41, %v5949_v14  ;;  %v5973_v45 = vadd.f32 %v5801_v31, %v568_v42  ;;  %v978_v46 = vpop.f32.mrf.mxu1  ;;  %v3134_v13 = vmul.f32 %v2814_v61, %v5936_v9  ;;  %v4474_v41 = vld [vmem:[%s7991_s3 + $0x38] sm:$0xf0] }
 0x147   : > { %v4849_v48 = vpop.eup %4848  ;;  %v5975_v49 = vpack.c.bf16 %v743_v39, %v742_v38  ;;  %v1865_v50 = vmul.f32 0.5, %v5967_v40  ;;  %v5979_v52 = vadd.f32 %v978_v46, %v5930_v1  ;;  %v4718_v39 = vld [vmem:[%s7991_s3 + $0x14] sm:$0xf] }
 0x148   : > { %v4851_v54 = vpop.eup %4850  ;;  %v1866_v55 = vmul.f32 0.5, %v5970_v44  ;;  %v617_v56 = vmul.f32 0.5, %v5973_v45  ;;  %v2495_v62 = vadd.f32 1.0, %v4849_v48  ;;  %v4477_v48 = vor.u32 %v4718_v39, %v4474_v41 }
 0x149   : > { %v4853_v57 = vpop.eup %4852  ;;  %4856 = vtanh.f32 %v1865_v50  ;;  %v1874_v58 = vmul.f32 0.5, %v5979_v52  ;;  %4543 = vmatmul.msk.bf16.gmra.mxu1 %vm458_vm0, %v5975_v49  ;;  %4559 = vmatmul.msk.bf16.gmra.mxu2 %vm458_vm0, %v5975_v49  ;;  %v2496_v63 = vadd.f32 1.0, %v4851_v54 }
 0x14a   : > { %v4855_v59 = vpop.eup %4854  ;;  %4858 = vtanh.f32 %v1866_v55  ;;  %4575 = vmatmul.msk.bf16.gmra.mxu3 %vm458_vm0, %v5975_v49  ;;  %v680_v3 = vadd.f32 1.0, %v4853_v57  ;;  %v2815_v15 = vmul.f32 0.5, %v2495_v62  ;;  %1416 = vmatpush.bf16.msrb.mxu2 %v4477_v48 }
 0x14b   : > { %v2504_v2 = vadd.f32 1.0, %v4855_v59  ;;  %4860 = vtanh.f32 %v617_v56  ;;  %v2816_v25 = vmul.f32 0.5, %v2496_v63 }
 0x14c   : > { %4862 = vtanh.f32 %v1874_v58  ;;  %v1067_v4 = vpop.f32.mrf.mxu2  ;;  %v712_v32 = vmul.f32 0.5, %v680_v3  ;;  %v3135_v50 = vmul.f32 %v2815_v15, %v5952_v18 }
 0x14d   : > { %v2824_v6 = vmul.f32 0.5, %v2504_v2  ;;  %v5991_v7 = vadd.f32 %v1067_v4, %v5944_v12  ;;  %v1156_v10 = vpop.f32.mrf.mxu3  ;;  %v571_v11 = vpop.f32.mrf.mxu0  ;;  %v3136_v56 = vmul.f32 %v2816_v25, %v5955_v21 }
 0x14e   : > { %v5995_v16 = vadd.f32 %v1156_v10, %v5949_v14  ;;  %v5998_v19 = vadd.f32 %v5801_v31, %v571_v11  ;;  %v980_v20 = vpop.f32.mrf.mxu1  ;;  %v744_v61 = vmul.f32 %v712_v32, %v5958_v22 }
 0x14f   : > { %v4857_v23 = vpop.eup %4856  ;;  %v3144_v27 = vmul.f32 %v2824_v6, %v976_v26  ;;  %v1875_v28 = vmul.f32 0.5, %v5991_v7  ;;  %v6002_v29 = vadd.f32 %v980_v20, %v5930_v1 }
 0x150   : > { %v4859_v30 = vpop.eup %4858  ;;  %v2505_v33 = vadd.f32 1.0, %v4857_v23  ;;  %v1876_v9 = vmul.f32 0.5, %v5995_v16  ;;  %v618_v34 = vmul.f32 0.5, %v5998_v19  ;;  %4585 = vmatmul.msk.bf16.gmra.mxu0 %vm458_vm0, %v5865_v47 }
 0x151   : > { %v4861_v36 = vpop.eup %4860  ;;  %v3456_v37 = vadd.f32 %v3144_v27, %v3134_v13  ;;  %v2506_v38 = vadd.f32 1.0, %v4859_v30  ;;  %4864 = vtanh.f32 %v1875_v28  ;;  %v1884_v26 = vmul.f32 0.5, %v6002_v29 }
 0x152   : > { %v4863_v42 = vpop.eup %4862  ;;  %v2825_v43 = vmul.f32 0.5, %v2505_v33  ;;  %v681_v46 = vadd.f32 1.0, %v4861_v36  ;;  %4866 = vtanh.f32 %v1876_v9  ;;  %v4723_v9 = vld [vmem:[%s7991_s3 + $0x34] sm:$0xf0] }
 0x153   : > { %v2826_v54 = vmul.f32 0.5, %v2506_v38  ;;  %v2514_v55 = vadd.f32 1.0, %v4863_v42  ;;  %4868 = vtanh.f32 %v618_v34 }
 0x154   : > { %v3145_v57 = vmul.f32 %v2825_v43, %v5967_v40  ;;  %v713_v58 = vmul.f32 0.5, %v681_v46  ;;  %4870 = vtanh.f32 %v1884_v26  ;;  %v1069_v59 = vpop.f32.mrf.mxu2 }
 0x155   : > { %v3146_v62 = vmul.f32 %v2826_v54, %v5970_v44  ;;  %v2834_v63 = vmul.f32 0.5, %v2514_v55  ;;  %v6021_v2 = vadd.f32 %v1069_v59, %v5944_v12  ;;  %v1158_v18 = vpop.f32.mrf.mxu3  ;;  %v573_v3 = vpop.f32.mrf.mxu0 }
 0x156   : > { %v3493_v4 = vadd.f32 %v3145_v57, %v3135_v50  ;;  %v745_v6 = vmul.f32 %v713_v58, %v5973_v45  ;;  %v6025_v21 = vadd.f32 %v1158_v18, %v5949_v14  ;;  %v6028_v40 = vadd.f32 %v5801_v31, %v573_v3  ;;  %v983_v10 = vpop.f32.mrf.mxu1  ;;  %v4520_v18 = vld [vmem:[%s7991_s3 + $0x68] sm:$0xf]  ;;  %v4734_v3 = vld [vmem:[%s7991_s3 + $0x8c] sm:$0xf0] }
 0x157   : > { %v4865_v11 = vpop.eup %4864  ;;  %v3530_v22 = vadd.f32 %v3146_v62, %v3136_v56  ;;  %v3154_v44 = vmul.f32 %v2834_v63, %v5979_v52  ;;  %v1885_v13 = vmul.f32 0.5, %v6021_v2  ;;  %v6033_v15 = vadd.f32 %v983_v10, %v5930_v1  ;;  %v4472_v52 = vld [vmem:[%s7991_s3 + $0x10] sm:$0xf] }
 0x158   : > { %v4867_v20 = vpop.eup %4866  ;;  %v6035_v23 = vpack.c.bf16 %v745_v6, %v744_v61  ;;  %v2515_v45 = vadd.f32 1.0, %v4865_v11  ;;  %v1886_v25 = vmul.f32 0.5, %v6025_v21  ;;  %v619_v27 = vmul.f32 0.5, %v6028_v40 }
 0x159   : > { %v4869_v28 = vpop.eup %4868  ;;  %v3457_v30 = vadd.f32 %v3456_v37, %v3154_v44  ;;  %v2516_v32 = vadd.f32 1.0, %v4867_v20  ;;  %4872 = vtanh.f32 %v1885_v13  ;;  %v1894_v33 = vmul.f32 0.5, %v6033_v15 }
 0x15a   : > { %v4871_v34 = vpop.eup %4870  ;;  %v2835_v36 = vmul.f32 0.5, %v2515_v45  ;;  %v682_v38 = vadd.f32 1.0, %v4869_v28  ;;  %4874 = vtanh.f32 %v1886_v25  ;;  %4544 = vmatmul.msk.bf16.gmra.mxu1 %vm458_vm0, %v6035_v23  ;;  %4560 = vmatmul.msk.bf16.gmra.mxu2 %vm458_vm0, %v6035_v23  ;;  %v4473_v37 = vor.u32 %v4723_v9, %v4472_v52  ;;  %v4729_v45 = vld [vmem:[%s7991_s3 + $0x6c] sm:$0xf]  ;;  %v4522_v25 = vld [vmem:[%s7991_s3 + $0x90] sm:$0xf0] }
 0x15b   : > { %v2836_v26 = vmul.f32 0.5, %v2516_v32  ;;  %v2524_v39 = vadd.f32 1.0, %v4871_v34  ;;  %4876 = vtanh.f32 %v619_v27  ;;  %4576 = vmatmul.msk.bf16.gmra.mxu3 %vm458_vm0, %v6035_v23 }
 0x15c   : > { %v3155_v41 = vmul.f32 %v2835_v36, %v5991_v7  ;;  %4878 = vtanh.f32 %v1894_v33  ;;  %v1072_v42 = vpop.f32.mrf.mxu2  ;;  %1327 = vmatpush.bf16.msrb.mxu1 %v4473_v37  ;;  %v714_v56 = vmul.f32 0.5, %v682_v38  ;;  %v4525_v33 = vor.u32 %v4729_v45, %v4522_v25 }
 0x15d   : > { %v3156_v43 = vmul.f32 %v2836_v26, %v5995_v16  ;;  %v2844_v46 = vmul.f32 0.5, %v2524_v39  ;;  %v6055_v48 = vadd.f32 %v1072_v42, %v5944_v12  ;;  %v1161_v50 = vpop.f32.mrf.mxu3  ;;  %v576_v54 = vpop.f32.mrf.mxu0 }
 0x15e   : > { %v3494_v55 = vadd.f32 %v3493_v4, %v3155_v41  ;;  %v6058_v57 = vadd.f32 %v1161_v50, %v5949_v14  ;;  %v6061_v58 = vadd.f32 %v5801_v31, %v576_v54  ;;  %v985_v7 = vpop.f32.mrf.mxu1  ;;  %1593 = vmatpush.bf16.msra.mxu0 %v4525_v33  ;;  %v746_v38 = vmul.f32 %v714_v56, %v5998_v19 }
 0x15f   : > { %v4873_v59 = vpop.eup %4872  ;;  %v3531_v61 = vadd.f32 %v3530_v22, %v3156_v43  ;;  %v3164_v62 = vmul.f32 %v2844_v46, %v6002_v29  ;;  %v1895_v16 = vmul.f32 0.5, %v6055_v48  ;;  %v6066_v63 = vadd.f32 %v985_v7, %v5930_v1 }
 0x160   : > { %v4875_v4 = vpop.eup %4874  ;;  %v2525_v6 = vadd.f32 1.0, %v4873_v59  ;;  %v1896_v10 = vmul.f32 0.5, %v6058_v57  ;;  %v620_v11 = vmul.f32 0.5, %v6061_v58  ;;  %4586 = vmatmul.msk.bf16.gmra.mxu0 %vm458_vm0, %v5877_v0  ;;  %v4521_v29 = vor.u32 %v4734_v3, %v4520_v18 }
 0x161   : > { %v4877_v22 = vpop.eup %4876  ;;  %v3458_v44 = vadd.f32 %v3457_v30, %v3164_v62  ;;  %v2526_v13 = vadd.f32 1.0, %v4875_v4  ;;  %4880 = vtanh.f32 %v1895_v16  ;;  %v1904_v20 = vmul.f32 0.5, %v6066_v63 }
 0x162   : > { %v4879_v27 = vpop.eup %4878  ;;  %v2845_v28 = vmul.f32 0.5, %v2525_v6  ;;  %v683_v32 = vadd.f32 1.0, %v4877_v22  ;;  %4882 = vtanh.f32 %v1896_v10  ;;  %1504 = vmatpush.bf16.msrb.mxu3 %v4521_v29 }
 0x163   : > { %v2846_v52 = vmul.f32 0.5, %v2526_v13  ;;  %v2534_v30 = vadd.f32 1.0, %v4879_v27  ;;  %4884 = vtanh.f32 %v620_v11 }
 0x164   : > { %v3165_v9 = vmul.f32 %v2845_v28, %v6021_v2  ;;  %v715_v34 = vmul.f32 0.5, %v683_v32  ;;  %4886 = vtanh.f32 %v1904_v20  ;;  %v1074_v36 = vpop.f32.mrf.mxu2 }
 0x165   : > { %v3166_v37 = vmul.f32 %v2846_v52, %v6025_v21  ;;  %v2854_v26 = vmul.f32 0.5, %v2534_v30  ;;  %v6089_v39 = vadd.f32 %v1074_v36, %v5944_v12  ;;  %v1163_v41 = vpop.f32.mrf.mxu3  ;;  %v578_v42 = vpop.f32.mrf.mxu0 }
 0x166   : > { %v3495_v43 = vadd.f32 %v3494_v55, %v3165_v9  ;;  %v747_v46 = vmul.f32 %v715_v34, %v6028_v40  ;;  %v6093_v50 = vadd.f32 %v1163_v41, %v5949_v14  ;;  %v6096_v2 = vadd.f32 %v5801_v31, %v578_v42  ;;  %v988_v54 = vpop.f32.mrf.mxu1 }
 0x167   : > { %v4881_v7 = vpop.eup %4880  ;;  %v3532_v19 = vadd.f32 %v3531_v61, %v3166_v37  ;;  %v3174_v21 = vmul.f32 %v2854_v26, %v6033_v15  ;;  %v1905_v56 = vmul.f32 0.5, %v6089_v39  ;;  %v6101_v59 = vadd.f32 %v988_v54, %v5930_v1 }
 0x168   : > { %v4883_v62 = vpop.eup %4882  ;;  %v6103_v55 = vpack.c.bf16 %v747_v46, %v746_v38  ;;  %v2535_v40 = vadd.f32 1.0, %v4881_v7  ;;  %v1906_v16 = vmul.f32 0.5, %v6093_v50  ;;  %v621_v18 = vmul.f32 0.5, %v6096_v2 }
 0x169   : > { %v4885_v3 = vpop.eup %4884  ;;  %v3459_v4 = vadd.f32 %v3458_v44, %v3174_v21  ;;  %v2536_v6 = vadd.f32 1.0, %v4883_v62  ;;  %4888 = vtanh.f32 %v1905_v56  ;;  %v1914_v61 = vmul.f32 0.5, %v6101_v59 }
 0x16a   : > { %v4887_v15 = vpop.eup %4886  ;;  %v2855_v10 = vmul.f32 0.5, %v2535_v40  ;;  %4890 = vtanh.f32 %v1906_v16  ;;  %4545 = vmatmul.msk.bf16.gmra.mxu1 %vm458_vm0, %v6103_v55  ;;  %4561 = vmatmul.msk.bf16.gmra.mxu2 %vm458_vm0, %v6103_v55  ;;  %v684_v44 = vadd.f32 1.0, %v4885_v3 }
 0x16b   : > { %v2856_v11 = vmul.f32 0.5, %v2536_v6  ;;  %v2544_v29 = vadd.f32 1.0, %v4887_v15  ;;  %4892 = vtanh.f32 %v621_v18  ;;  %4577 = vmatmul.msk.bf16.gmra.mxu3 %vm458_vm0, %v6103_v55 }
 0x16c   : > { %v3175_v22 = vmul.f32 %v2855_v10, %v6055_v48  ;;  %4894 = vtanh.f32 %v1914_v61  ;;  %v1077_v13 = vpop.f32.mrf.mxu2  ;;  %v716_v37 = vmul.f32 0.5, %v684_v44 }
 0x16d   : > { %v3176_v20 = vmul.f32 %v2856_v11, %v6058_v57  ;;  %v2864_v45 = vmul.f32 0.5, %v2544_v29  ;;  %v6117_v25 = vadd.f32 %v1077_v13, %v5944_v12  ;;  %v1166_v27 = vpop.f32.mrf.mxu3  ;;  %v581_v28 = vpop.f32.mrf.mxu0 }
 0x16e   : > { %v3496_v32 = vadd.f32 %v3495_v43, %v3175_v22  ;;  %v6120_v33 = vadd.f32 %v1166_v27, %v5949_v14  ;;  %v6123_v52 = vadd.f32 %v5801_v31, %v581_v28  ;;  %v990_v30 = vpop.f32.mrf.mxu1  ;;  %v748_v3 = vmul.f32 %v716_v37, %v6061_v58 }
 0x16f   : > { %v4889_v48 = vpop.eup %4888  ;;  %v3533_v9 = vadd.f32 %v3532_v19, %v3176_v20  ;;  %v3184_v34 = vmul.f32 %v2864_v45, %v6066_v63  ;;  %v1915_v57 = vmul.f32 0.5, %v6117_v25  ;;  %v6128_v36 = vadd.f32 %v990_v30, %v5930_v1 }
 0x170   : > { %v4891_v38 = vpop.eup %4890  ;;  %v2545_v26 = vadd.f32 1.0, %v4889_v48  ;;  %v1916_v41 = vmul.f32 0.5, %v6120_v33  ;;  %v622_v42 = vmul.f32 0.5, %v6123_v52  ;;  %4587 = vmatmul.msk.bf16.gmra.mxu0 %vm458_vm0, %v5889_v17 }
 0x171   : > { %v4893_v43 = vpop.eup %4892  ;;  %v3460_v46 = vadd.f32 %v3459_v4, %v3184_v34  ;;  %v2546_v54 = vadd.f32 1.0, %v4891_v38  ;;  %4896 = vtanh.f32 %v1915_v57  ;;  %v1924_v63 = vmul.f32 0.5, %v6128_v36 }
 0x172   : > { %v4895_v7 = vpop.eup %4894  ;;  %v2865_v19 = vmul.f32 0.5, %v2545_v26  ;;  %v685_v21 = vadd.f32 1.0, %v4893_v43  ;;  %4898 = vtanh.f32 %v1916_v41 }
 0x173   : > { %v2866_v56 = vmul.f32 0.5, %v2546_v54  ;;  %v2554_v62 = vadd.f32 1.0, %v4895_v7  ;;  %4900 = vtanh.f32 %v622_v42 }
 0x174   : > { %v3185_v40 = vmul.f32 %v2865_v19, %v6089_v39  ;;  %v717_v16 = vmul.f32 0.5, %v685_v21  ;;  %4902 = vtanh.f32 %v1924_v63  ;;  %v1079_v18 = vpop.f32.mrf.mxu2 }
 0x175   : > { %v3186_v4 = vmul.f32 %v2866_v56, %v6093_v50  ;;  %v2874_v6 = vmul.f32 0.5, %v2554_v62  ;;  %v6139_v61 = vadd.f32 %v1079_v18, %v5944_v12  ;;  %v1168_v15 = vpop.f32.mrf.mxu3  ;;  %v583_v10 = vpop.f32.mrf.mxu0  ;;  %v6175_v56 = vld [vmem:[%s7990_s2] ss:$0 sm:$0xff] }
 0x176   : > { %v3497_v11 = vadd.f32 %v3496_v32, %v3185_v40  ;;  %v749_v29 = vmul.f32 %v717_v16, %v6096_v2  ;;  %v6143_v22 = vadd.f32 %v1168_v15, %v5949_v14  ;;  %v6146_v39 = vadd.f32 %v5801_v31, %v583_v10  ;;  %v993_v44 = vpop.f32.mrf.mxu1 }
 0x177   : > { %v4897_v13 = vpop.eup %4896  ;;  %v3534_v58 = vadd.f32 %v3533_v9, %v3186_v4  ;;  %v3194_v50 = vmul.f32 %v2874_v6, %v6101_v59  ;;  %v1925_v20 = vmul.f32 0.5, %v6139_v61  ;;  %v6151_v45 = vadd.f32 %v993_v44, %v5930_v1 }
 0x178   : > { %v4899_v27 = vpop.eup %4898  ;;  %v6153_v28 = vpack.c.bf16 %v749_v29, %v748_v3  ;;  %v2555_v2 = vadd.f32 1.0, %v4897_v13  ;;  %v1926_v32 = vmul.f32 0.5, %v6143_v22  ;;  %v623_v30 = vmul.f32 0.5, %v6146_v39 }
 0x179   : > { %v4901_v31 = vpop.eup %4900  ;;  %v3461_v48 = vadd.f32 %v3460_v46, %v3194_v50  ;;  %v2556_v34 = vadd.f32 1.0, %v4899_v27  ;;  %4904 = vtanh.f32 %v1925_v20  ;;  %v1934_v9 = vmul.f32 0.5, %v6151_v45 }
 0x17a   : > { %v4903_v59 = vpop.eup %4902  ;;  %v2875_v57 = vmul.f32 0.5, %v2555_v2  ;;  %4906 = vtanh.f32 %v1926_v32  ;;  %4546 = vmatmul.msk.bf16.gmra.mxu1 %vm458_vm0, %v6153_v28  ;;  %4562 = vmatmul.msk.bf16.gmra.mxu2 %vm458_vm0, %v6153_v28  ;;  %v686_v41 = vadd.f32 1.0, %v4901_v31 }
 0x17b   : > { %v2876_v38 = vmul.f32 0.5, %v2556_v34  ;;  %v2564_v37 = vadd.f32 1.0, %v4903_v59  ;;  %4908 = vtanh.f32 %v623_v30  ;;  %4578 = vmatmul.msk.bf16.gmra.mxu3 %vm458_vm0, %v6153_v28 }
 0x17c   : > { %v3195_v26 = vmul.f32 %v2875_v57, %v6117_v25  ;;  %4910 = vtanh.f32 %v1934_v9  ;;  %v1082_v42 = vpop.f32.mrf.mxu2  ;;  %v718_v6 = vmul.f32 0.5, %v686_v41 }
 0x17d   : > { %v3196_v43 = vmul.f32 %v2876_v38, %v6120_v33  ;;  %v2884_v46 = vmul.f32 0.5, %v2564_v37  ;;  %v6167_v54 = vadd.f32 %v1082_v42, %v5944_v12  ;;  %v1171_v63 = vpop.f32.mrf.mxu3  ;;  %v586_v7 = vpop.f32.mrf.mxu0 }
 0x17e   : > { %v3498_v19 = vadd.f32 %v3497_v11, %v3195_v26  ;;  %v6170_v21 = vadd.f32 %v1171_v63, %v5949_v14  ;;  %v6178_v25 = vadd.f32 %v6175_v56, %v586_v7  ;;  %v995_v62 = vpop.f32.mrf.mxu1  ;;  %v750_v34 = vmul.f32 %v718_v6, %v6123_v52 }
 0x17f   : > { %v4905_v33 = vpop.eup %4904  ;;  %v3535_v40 = vadd.f32 %v3534_v58, %v3196_v43  ;;  %v3204_v16 = vmul.f32 %v2884_v46, %v6128_v36  ;;  %v1935_v18 = vmul.f32 0.5, %v6167_v54  ;;  %v6183_v3 = vadd.f32 %v995_v62, %v5930_v1 }
 0x180   : > { %v4907_v4 = vpop.eup %4906  ;;  %v2565_v15 = vadd.f32 1.0, %v4905_v33  ;;  %v1936_v10 = vmul.f32 0.5, %v6170_v21  ;;  %v624_v11 = vmul.f32 0.5, %v6178_v25  ;;  %4588 = vmatmul.msk.bf16.gmra.mxu0 %vm458_vm0, %v5901_v35 }
 0x181   : > { %v4909_v29 = vpop.eup %4908  ;;  %v3462_v44 = vadd.f32 %v3461_v48, %v3204_v16  ;;  %v2566_v13 = vadd.f32 1.0, %v4907_v4  ;;  %4912 = vtanh.f32 %v1935_v18  ;;  %v1944_v36 = vmul.f32 0.5, %v6183_v3 }
 0x182   : > { %v4911_v58 = vpop.eup %4910  ;;  %v2885_v50 = vmul.f32 0.5, %v2565_v15  ;;  %v687_v20 = vadd.f32 1.0, %v4909_v29  ;;  %4914 = vtanh.f32 %v1936_v10 }
 0x183   : > { %v2886_v27 = vmul.f32 0.5, %v2566_v13  ;;  %v2574_v2 = vadd.f32 1.0, %v4911_v58  ;;  %4916 = vtanh.f32 %v624_v11 }
 0x184   : > { %v3205_v32 = vmul.f32 %v2885_v50, %v6139_v61  ;;  %v719_v30 = vmul.f32 0.5, %v687_v20  ;;  %4918 = vtanh.f32 %v1944_v36  ;;  %v1084_v31 = vpop.f32.mrf.mxu2 }
 0x185   : > { %v3206_v48 = vmul.f32 %v2886_v27, %v6143_v22  ;;  %v2894_v9 = vmul.f32 0.5, %v2574_v2  ;;  %v6194_v59 = vadd.f32 %v1084_v31, %v5944_v12  ;;  %v1173_v57 = vpop.f32.mrf.mxu3  ;;  %v588_v38 = vpop.f32.mrf.mxu0 }
 0x186   : > { %v3499_v37 = vadd.f32 %v3498_v19, %v3205_v32  ;;  %v751_v26 = vmul.f32 %v719_v30, %v6146_v39  ;;  %v6198_v41 = vadd.f32 %v1173_v57, %v5949_v14  ;;  %v6201_v61 = vadd.f32 %v6175_v56, %v588_v38  ;;  %v998_v42 = vpop.f32.mrf.mxu1 }
 0x187   : > { %v4913_v43 = vpop.eup %4912  ;;  %v3536_v52 = vadd.f32 %v3535_v40, %v3206_v48  ;;  %v3214_v22 = vmul.f32 %v2894_v9, %v6151_v45  ;;  %v1945_v46 = vmul.f32 0.5, %v6194_v59  ;;  %v6206_v63 = vadd.f32 %v998_v42, %v5930_v1 }
 0x188   : > { %v4915_v7 = vpop.eup %4914  ;;  %v6208_v19 = vpack.c.bf16 %v751_v26, %v750_v34  ;;  %v2575_v39 = vadd.f32 1.0, %v4913_v43  ;;  %v1946_v62 = vmul.f32 0.5, %v6198_v41  ;;  %v625_v33 = vmul.f32 0.5, %v6201_v61 }
 0x189   : > { %v4917_v16 = vpop.eup %4916  ;;  %v3463_v18 = vadd.f32 %v3462_v44, %v3214_v22  ;;  %v2576_v4 = vadd.f32 1.0, %v4915_v7  ;;  %4920 = vtanh.f32 %v1945_v46  ;;  %v1954_v40 = vmul.f32 0.5, %v6206_v63 }
 0x18a   : > { %v4919_v45 = vpop.eup %4918  ;;  %v2895_v6 = vmul.f32 0.5, %v2575_v39  ;;  %4922 = vtanh.f32 %v1946_v62  ;;  %4547 = vmatmul.msk.bf16.gmra.mxu1 %vm458_vm0, %v6208_v19  ;;  %4563 = vmatmul.msk.bf16.gmra.mxu2 %vm458_vm0, %v6208_v19  ;;  %v688_v29 = vadd.f32 1.0, %v4917_v16 }
 0x18b   : > { %v2896_v15 = vmul.f32 0.5, %v2576_v4  ;;  %v2584_v10 = vadd.f32 1.0, %v4919_v45  ;;  %4924 = vtanh.f32 %v625_v33  ;;  %4579 = vmatmul.msk.bf16.gmra.mxu3 %vm458_vm0, %v6208_v19 }
 0x18c   : > { %v3215_v11 = vmul.f32 %v2895_v6, %v6167_v54  ;;  %4926 = vtanh.f32 %v1954_v40  ;;  %v1087_v44 = vpop.f32.mrf.mxu2  ;;  %v720_v57 = vmul.f32 0.5, %v688_v29 }
 0x18d   : > { %v3216_v13 = vmul.f32 %v2896_v15, %v6170_v21  ;;  %v2904_v36 = vmul.f32 0.5, %v2584_v10  ;;  %v6222_v58 = vadd.f32 %v1087_v44, %v5944_v12  ;;  %v1176_v50 = vpop.f32.mrf.mxu3  ;;  %v591_v20 = vpop.f32.mrf.mxu0 }
 0x18e   : > { %v3500_v27 = vadd.f32 %v3499_v37, %v3215_v11  ;;  %v6225_v2 = vadd.f32 %v1176_v50, %v5949_v14  ;;  %v6228_v32 = vadd.f32 %v6175_v56, %v591_v20  ;;  %v1000_v30 = vpop.f32.mrf.mxu1  ;;  %v752_v40 = vmul.f32 %v720_v57, %v6178_v25 }
 0x18f   : > { %v4921_v54 = vpop.eup %4920  ;;  %v3537_v31 = vadd.f32 %v3536_v52, %v3216_v13  ;;  %v3224_v34 = vmul.f32 %v2904_v36, %v6183_v3  ;;  %v1955_v21 = vmul.f32 0.5, %v6222_v58  ;;  %v6233_v48 = vadd.f32 %v1000_v30, %v5930_v1 }
 0x190   : > { %v4923_v9 = vpop.eup %4922  ;;  %v2585_v38 = vadd.f32 1.0, %v4921_v54  ;;  %v1956_v37 = vmul.f32 0.5, %v6225_v2  ;;  %v626_v26 = vmul.f32 0.5, %v6228_v32  ;;  %4589 = vmatmul.msk.bf16.gmra.mxu0 %vm458_vm0, %v5913_v51 }
 0x191   : > { %v4925_v42 = vpop.eup %4924  ;;  %v3464_v43 = vadd.f32 %v3463_v18, %v3224_v34  ;;  %v2586_v52 = vadd.f32 1.0, %v4923_v9  ;;  %4928 = vtanh.f32 %v1955_v21  ;;  %v1964_v3 = vmul.f32 0.5, %v6233_v48 }
 0x192   : > { %v4927_v22 = vpop.eup %4926  ;;  %v2905_v46 = vmul.f32 0.5, %v2585_v38  ;;  %v689_v7 = vadd.f32 1.0, %v4925_v42  ;;  %4930 = vtanh.f32 %v1956_v37 }
 0x193   : > { %v2906_v39 = vmul.f32 0.5, %v2586_v52  ;;  %v2594_v62 = vadd.f32 1.0, %v4927_v22  ;;  %4932 = vtanh.f32 %v626_v26  ;;  %v6274_v26 = vperm.slane %v5927_v60, 3 }
 0x194   : > { %v3225_v33 = vmul.f32 %v2905_v46, %v6194_v59  ;;  %v721_v16 = vmul.f32 0.5, %v689_v7  ;;  %4934 = vtanh.f32 %v1964_v3  ;;  %v1089_v4 = vpop.f32.mrf.mxu2 }
 0x195   : > { %v3226_v18 = vmul.f32 %v2906_v39, %v6198_v41  ;;  %v2914_v45 = vmul.f32 0.5, %v2594_v62  ;;  %v6244_v6 = vadd.f32 %v1089_v4, %v5944_v12  ;;  %v1178_v15 = vpop.f32.mrf.mxu3  ;;  %v593_v10 = vpop.f32.mrf.mxu0 }
 0x196   : > { %v3501_v11 = vadd.f32 %v3500_v27, %v3225_v33  ;;  %v753_v29 = vmul.f32 %v721_v16, %v6201_v61  ;;  %v6248_v44 = vadd.f32 %v1178_v15, %v5949_v14  ;;  %v6251_v59 = vadd.f32 %v6175_v56, %v593_v10  ;;  %v1003_v13 = vpop.f32.mrf.mxu1  ;;  %v4480_v61 = vld [vmem:[%s7991_s3 + $0x18] sm:$0xf]  ;;  %v4724_v27 = vld [vmem:[%s7991_s3 + $0x3c] sm:$0xf0] }
 0x197   : > { %v4929_v36 = vpop.eup %4928  ;;  %v3538_v25 = vadd.f32 %v3537_v31, %v3226_v18  ;;  %v3234_v41 = vmul.f32 %v2914_v45, %v6206_v63  ;;  %v1965_v50 = vmul.f32 0.5, %v6244_v6  ;;  %v6256_v20 = vadd.f32 %v1003_v13, %v5930_v1 }
 0x198   : > { %v4931_v56 = vpop.eup %4930  ;;  %v6264_v30 = vpack.c.bf16 %v753_v29, %v752_v40  ;;  %v2595_v54 = vadd.f32 1.0, %v4929_v36  ;;  %v1966_v31 = vmul.f32 0.5, %v6248_v44  ;;  %v627_v63 = vmul.f32 0.5, %v6251_v59 }
 0x199   : > { %v4933_v34 = vpop.eup %4932  ;;  %v3465_v21 = vadd.f32 %v3464_v43, %v3234_v41  ;;  %v2596_v9 = vadd.f32 1.0, %v4931_v56  ;;  %4936 = vtanh.f32 %v1965_v50  ;;  %v1974_v57 = vmul.f32 0.5, %v6256_v20 }
 0x19a   : > { %v4935_v38 = vpop.eup %4934  ;;  %v2915_v37 = vmul.f32 0.5, %v2595_v54  ;;  %4938 = vtanh.f32 %v1966_v31  ;;  %4548 = vmatmul.msk.bf16.gmra.mxu1 %vm458_vm0, %v6264_v30  ;;  %4564 = vmatmul.msk.bf16.gmra.mxu2 %vm458_vm0, %v6264_v30  ;;  %v4481_v42 = vor.u32 %v4724_v27, %v4480_v61  ;;  %v690_v22 = vadd.f32 1.0, %v4933_v34 }
 0x19b   : > { %v2916_v52 = vmul.f32 0.5, %v2596_v9  ;;  %v2604_v3 = vadd.f32 1.0, %v4935_v38  ;;  %4940 = vtanh.f32 %v627_v63  ;;  %4580 = vmatmul.msk.bf16.gmra.mxu3 %vm458_vm0, %v6264_v30 }
 0x19c   : > { %v3235_v43 = vmul.f32 %v2915_v37, %v6222_v58  ;;  %4942 = vtanh.f32 %v1974_v57  ;;  %v1092_v46 = vpop.f32.mrf.mxu2  ;;  %1505 = vmatpush.bf16.msrb.mxu3 %v4481_v42  ;;  %v722_v13 = vmul.f32 0.5, %v690_v22 }
 0x19d   : > { %v3236_v7 = vmul.f32 %v2916_v52, %v6225_v2  ;;  %v2924_v39 = vmul.f32 0.5, %v2604_v3  ;;  %v6281_v62 = vadd.f32 %v1092_v46, %v5944_v12  ;;  %v1181_v60 = vpop.f32.mrf.mxu3  ;;  %v1240_v33 = vpop.f32.mrf.mxu0 }
 0x19e   : > { %v3502_v16 = vadd.f32 %v3501_v11, %v3235_v43  ;;  %v6284_v4 = vadd.f32 %v1181_v60, %v5949_v14  ;;  %v6287_v40 = vadd.f32 %v1240_v33, %v6274_v26  ;;  %v1005_v58 = vpop.f32.mrf.mxu1  ;;  %v754_v38 = vmul.f32 %v722_v13, %v6228_v32 }
 0x19f   : > { %v4937_v18 = vpop.eup %4936  ;;  %v3539_v45 = vadd.f32 %v3538_v25, %v3236_v7  ;;  %v3244_v15 = vmul.f32 %v2924_v39, %v6233_v48  ;;  %v1975_v2 = vmul.f32 0.5, %v6281_v62  ;;  %v6292_v10 = vadd.f32 %v1005_v58, %v5930_v1 }
 0x1a0   : > { %v4939_v29 = vpop.eup %4938  ;;  %v2605_v36 = vadd.f32 1.0, %v4937_v18  ;;  %v1976_v11 = vmul.f32 0.5, %v6284_v4  ;;  %v1857_v41 = vmul.f32 0.5, %v6287_v40  ;;  %4590 = vmatmul.msk.bf16.gmra.mxu0 %vm458_vm0, %v5933_v8 }
 0x1a1   : > { %v4941_v50 = vpop.eup %4940  ;;  %v3466_v61 = vadd.f32 %v3465_v21, %v3244_v15  ;;  %v2606_v25 = vadd.f32 1.0, %v4939_v29  ;;  %4944 = vtanh.f32 %v1975_v2  ;;  %v1984_v48 = vmul.f32 0.5, %v6292_v10 }
 0x1a2   : > { %v4943_v27 = vpop.eup %4942  ;;  %v2925_v56 = vmul.f32 0.5, %v2605_v36  ;;  %v691_v54 = vadd.f32 1.0, %v4941_v50  ;;  %4946 = vtanh.f32 %v1976_v11 }
 0x1a3   : > { %v2926_v31 = vmul.f32 0.5, %v2606_v25  ;;  %v2614_v63 = vadd.f32 1.0, %v4943_v27  ;;  %4948 = vtanh.f32 %v1857_v41 }
 0x1a4   : > { %v3245_v34 = vmul.f32 %v2925_v56, %v6244_v6  ;;  %v723_v9 = vmul.f32 0.5, %v691_v54  ;;  %4950 = vtanh.f32 %v1984_v48  ;;  %v1094_v57 = vpop.f32.mrf.mxu2 }
 0x1a5   : > { %v3246_v21 = vmul.f32 %v2926_v31, %v6248_v44  ;;  %v2934_v37 = vmul.f32 0.5, %v2614_v63  ;;  %v6303_v42 = vadd.f32 %v1094_v57, %v5944_v12  ;;  %v1183_v52 = vpop.f32.mrf.mxu3  ;;  %v1242_v3 = vpop.f32.mrf.mxu0 }
 0x1a6   : > { %v3503_v43 = vadd.f32 %v3502_v16, %v3245_v34  ;;  %v755_v22 = vmul.f32 %v723_v9, %v6251_v59  ;;  %v6307_v46 = vadd.f32 %v1183_v52, %v5949_v14  ;;  %v6310_v6 = vadd.f32 %v1242_v3, %v6274_v26  ;;  %v1008_v7 = vpop.f32.mrf.mxu1 }
 0x1a7   : > { %v4945_v39 = vpop.eup %4944  ;;  %v3540_v32 = vadd.f32 %v3539_v45, %v3246_v21  ;;  %v3254_v44 = vmul.f32 %v2934_v37, %v6256_v20  ;;  %v1985_v60 = vmul.f32 0.5, %v6303_v42  ;;  %v6315_v33 = vadd.f32 %v1008_v7, %v5930_v1 }
 0x1a8   : > { %v4947_v58 = vpop.eup %4946  ;;  %v6317_v16 = vpack.c.bf16 %v755_v22, %v754_v38  ;;  %v2615_v59 = vadd.f32 1.0, %v4945_v39  ;;  %v1986_v18 = vmul.f32 0.5, %v6307_v46  ;;  %v1867_v15 = vmul.f32 0.5, %v6310_v6 }
 0x1a9   : > { %v4949_v2 = vpop.eup %4948  ;;  %v3467_v29 = vadd.f32 %v3466_v61, %v3254_v44  ;;  %v2616_v13 = vadd.f32 1.0, %v4947_v58  ;;  %4952 = vtanh.f32 %v1985_v60  ;;  %v1994_v45 = vmul.f32 0.5, %v6315_v33 }
 0x1aa   : > { %v4951_v20 = vpop.eup %4950  ;;  %v2935_v36 = vmul.f32 0.5, %v2615_v59  ;;  %4954 = vtanh.f32 %v1986_v18  ;;  %4549 = vmatmul.msk.bf16.gmra.mxu1 %vm458_vm0, %v6317_v16  ;;  %4565 = vmatmul.msk.bf16.gmra.mxu2 %vm458_vm0, %v6317_v16  ;;  %v2497_v61 = vadd.f32 1.0, %v4949_v2 }
 0x1ab   : > { %v2936_v11 = vmul.f32 0.5, %v2616_v13  ;;  %v2624_v41 = vadd.f32 1.0, %v4951_v20  ;;  %4956 = vtanh.f32 %v1867_v15  ;;  %4581 = vmatmul.msk.bf16.gmra.mxu3 %vm458_vm0, %v6317_v16 }
 0x1ac   : > { %v3255_v50 = vmul.f32 %v2935_v36, %v6281_v62  ;;  %4958 = vtanh.f32 %v1994_v45  ;;  %v1097_v25 = vpop.f32.mrf.mxu2  ;;  %v2817_v3 = vmul.f32 0.5, %v2497_v61 }
 0x1ad   : > { %v3256_v48 = vmul.f32 %v2936_v11, %v6284_v4  ;;  %v2944_v27 = vmul.f32 0.5, %v2624_v41  ;;  %v6331_v56 = vadd.f32 %v1097_v25, %v5944_v12  ;;  %v1186_v54 = vpop.f32.mrf.mxu3  ;;  %v1245_v31 = vpop.f32.mrf.mxu0 }
 0x1ae   : > { %v3504_v63 = vadd.f32 %v3503_v43, %v3255_v50  ;;  %v6334_v34 = vadd.f32 %v1186_v54, %v5949_v14  ;;  %v6337_v9 = vadd.f32 %v1245_v31, %v6274_v26  ;;  %v1010_v57 = vpop.f32.mrf.mxu1  ;;  %v3137_v20 = vmul.f32 %v2817_v3, %v6287_v40 }
 0x1af   : > { %v4953_v62 = vpop.eup %4952  ;;  %v3541_v38 = vadd.f32 %v3540_v32, %v3256_v48  ;;  %v3264_v21 = vmul.f32 %v2944_v27, %v6292_v10  ;;  %v1995_v4 = vmul.f32 0.5, %v6331_v56  ;;  %v6342_v37 = vadd.f32 %v1010_v57, %v5930_v1 }
 0x1b0   : > { %v4955_v52 = vpop.eup %4954  ;;  %v2625_v22 = vadd.f32 1.0, %v4953_v62  ;;  %v1996_v43 = vmul.f32 0.5, %v6334_v34  ;;  %v1877_v7 = vmul.f32 0.5, %v6337_v9  ;;  %4591 = vmatmul.msk.bf16.gmra.mxu0 %vm458_vm0, %v5975_v49 }
 0x1b1   : > { %v4957_v39 = vpop.eup %4956  ;;  %v3468_v44 = vadd.f32 %v3467_v29, %v3264_v21  ;;  %v2626_v32 = vadd.f32 1.0, %v4955_v52  ;;  %4960 = vtanh.f32 %v1995_v4  ;;  %v2004_v10 = vmul.f32 0.5, %v6342_v37 }
 0x1b2   : > { %v4959_v60 = vpop.eup %4958  ;;  %v2945_v58 = vmul.f32 0.5, %v2625_v22  ;;  %v2507_v59 = vadd.f32 1.0, %v4957_v39  ;;  %4962 = vtanh.f32 %v1996_v43 }
 0x1b3   : > { %v2946_v18 = vmul.f32 0.5, %v2626_v32  ;;  %v2634_v15 = vadd.f32 1.0, %v4959_v60  ;;  %4964 = vtanh.f32 %v1877_v7 }
 0x1b4   : > { %v3265_v2 = vmul.f32 %v2945_v58, %v6303_v42  ;;  %v2827_v13 = vmul.f32 0.5, %v2507_v59  ;;  %4966 = vtanh.f32 %v2004_v10  ;;  %v1099_v45 = vpop.f32.mrf.mxu2 }
 0x1b5   : > { %v3266_v29 = vmul.f32 %v2946_v18, %v6307_v46  ;;  %v2954_v36 = vmul.f32 0.5, %v2634_v15  ;;  %v6353_v11 = vadd.f32 %v1099_v45, %v5944_v12  ;;  %v1188_v41 = vpop.f32.mrf.mxu3  ;;  %v1247_v50 = vpop.f32.mrf.mxu0 }
 0x1b6   : > { %v3505_v61 = vadd.f32 %v3504_v63, %v3265_v2  ;;  %v3147_v25 = vmul.f32 %v2827_v13, %v6310_v6  ;;  %v6357_v48 = vadd.f32 %v1188_v41, %v5949_v14  ;;  %v6360_v42 = vadd.f32 %v1247_v50, %v6274_v26  ;;  %v1013_v27 = vpop.f32.mrf.mxu1 }
 0x1b7   : > { %v4961_v54 = vpop.eup %4960  ;;  %v3542_v40 = vadd.f32 %v3541_v38, %v3266_v29  ;;  %v3274_v46 = vmul.f32 %v2954_v36, %v6315_v33  ;;  %v2005_v31 = vmul.f32 0.5, %v6353_v11  ;;  %v6365_v57 = vadd.f32 %v1013_v27, %v5930_v1 }
 0x1b8   : > { %v4963_v62 = vpop.eup %4962  ;;  %v3567_v63 = vadd.f32 %v3147_v25, %v3137_v20  ;;  %v2635_v21 = vadd.f32 1.0, %v4961_v54  ;;  %v2006_v6 = vmul.f32 0.5, %v6357_v48  ;;  %v1887_v4 = vmul.f32 0.5, %v6360_v42 }
 0x1b9   : > { %v4965_v52 = vpop.eup %4964  ;;  %v3469_v3 = vadd.f32 %v3468_v44, %v3274_v46  ;;  %v2636_v22 = vadd.f32 1.0, %v4963_v62  ;;  %4968 = vtanh.f32 %v2005_v31  ;;  %v2014_v38 = vmul.f32 0.5, %v6365_v57 }
 0x1ba   : > { %v4967_v43 = vpop.eup %4966  ;;  %v2955_v33 = vmul.f32 0.5, %v2635_v21  ;;  %v2517_v7 = vadd.f32 1.0, %v4965_v52  ;;  %4970 = vtanh.f32 %v2006_v6  ;;  %4598 = vmatmul.msk.bf16.vlgmr.msrb.gmra.mxu1 %vm458_vm0, %v5811_v53  ;;  %4614 = vmatmul.msk.bf16.vlgmr.msrb.gmra.mxu2 %vm458_vm0, %v5811_v53 }
 0x1bb   : > { %v2956_v39 = vmul.f32 0.5, %v2636_v22  ;;  %v2644_v32 = vadd.f32 1.0, %v4967_v43  ;;  %4972 = vtanh.f32 %v1887_v4  ;;  %4630 = vmatmul.msk.bf16.vlgmr.msrb.gmra.mxu3 %vm458_vm0, %v5811_v53 }
 0x1bc   : > { %v3275_v44 = vmul.f32 %v2955_v33, %v6331_v56  ;;  %v2837_v10 = vmul.f32 0.5, %v2517_v7  ;;  %4974 = vtanh.f32 %v2014_v38  ;;  %v1102_v60 = vpop.f32.mrf.mxu2 }
 0x1bd   : > { %v3276_v58 = vmul.f32 %v2956_v39, %v6334_v34  ;;  %v2964_v59 = vmul.f32 0.5, %v2644_v32  ;;  %v6379_v18 = vadd.f32 %v1102_v60, %v5944_v12  ;;  %v1191_v15 = vpop.f32.mrf.mxu3  ;;  %v1250_v2 = vpop.f32.mrf.mxu0 }
 0x1be   : > { %v3506_v13 = vadd.f32 %v3505_v61, %v3275_v44  ;;  %v3157_v45 = vmul.f32 %v2837_v10, %v6337_v9  ;;  %v6383_v20 = vadd.f32 %v1191_v15, %v5949_v14  ;;  %v6386_v29 = vadd.f32 %v1250_v2, %v6274_v26  ;;  %v1015_v56 = vpop.f32.mrf.mxu1 }
 0x1bf   : > { %v4969_v36 = vpop.eup %4968  ;;  %v3543_v41 = vadd.f32 %v3542_v40, %v3276_v58  ;;  %v3284_v34 = vmul.f32 %v2964_v59, %v6342_v37  ;;  %v2015_v50 = vmul.f32 0.5, %v6379_v18  ;;  %v6391_v25 = vadd.f32 %v1015_v56, %v5930_v1 }
 0x1c0   : > { %v4971_v27 = vpop.eup %4970  ;;  %v3568_v61 = vadd.f32 %v3567_v63, %v3157_v45  ;;  %v2645_v54 = vadd.f32 1.0, %v4969_v36  ;;  %v2016_v9 = vmul.f32 0.5, %v6383_v20  ;;  %v1897_v46 = vmul.f32 0.5, %v6386_v29  ;;  %4592 = vmatmul.msk.bf16.gmra.mxu0 %vm458_vm0, %v6035_v23 }
 0x1c1   : > { %v4973_v31 = vpop.eup %4972  ;;  %v3470_v62 = vadd.f32 %v3469_v3, %v3284_v34  ;;  %v2646_v40 = vadd.f32 1.0, %v4971_v27  ;;  %4976 = vtanh.f32 %v2015_v50  ;;  %v2024_v37 = vmul.f32 0.5, %v6391_v25 }
 0x1c2   : > { %v4975_v21 = vpop.eup %4974  ;;  %v2965_v6 = vmul.f32 0.5, %v2645_v54  ;;  %v2527_v4 = vadd.f32 1.0, %v4973_v31  ;;  %4978 = vtanh.f32 %v2016_v9 }
 0x1c3   : > { %v2966_v52 = vmul.f32 0.5, %v2646_v40  ;;  %v2654_v63 = vadd.f32 1.0, %v4975_v21  ;;  %4980 = vtanh.f32 %v1897_v46 }
 0x1c4   : > { %v3285_v22 = vmul.f32 %v2965_v6, %v6353_v11  ;;  %v2847_v38 = vmul.f32 0.5, %v2527_v4  ;;  %4982 = vtanh.f32 %v2024_v37  ;;  %v1104_v43 = vpop.f32.mrf.mxu2 }
 0x1c5   : > { %v3286_v33 = vmul.f32 %v2966_v52, %v6357_v48  ;;  %v2974_v7 = vmul.f32 0.5, %v2654_v63  ;;  %v6401_v3 = vadd.f32 %v1104_v43, %v5944_v12  ;;  %v1193_v39 = vpop.f32.mrf.mxu3  ;;  %v1252_v32 = vpop.f32.mrf.mxu0 }
 0x1c6   : > { %v3507_v44 = vadd.f32 %v3506_v13, %v3285_v22  ;;  %v3167_v10 = vmul.f32 %v2847_v38, %v6360_v42  ;;  %v6405_v60 = vadd.f32 %v1193_v39, %v5949_v14  ;;  %v6408_v58 = vadd.f32 %v1252_v32, %v6274_v26  ;;  %v1018_v11 = vpop.f32.mrf.mxu1 }
 0x1c7   : > { %v4977_v59 = vpop.eup %4976  ;;  %v3544_v15 = vadd.f32 %v3543_v41, %v3286_v33  ;;  %v3294_v48 = vmul.f32 %v2974_v7, %v6365_v57  ;;  %v2025_v2 = vmul.f32 0.5, %v6401_v3  ;;  %v6413_v45 = vadd.f32 %v1018_v11, %v5930_v1 }
 0x1c8   : > { %v4979_v56 = vpop.eup %4978  ;;  %v3569_v13 = vadd.f32 %v3568_v61, %v3167_v10  ;;  %v2655_v36 = vadd.f32 1.0, %v4977_v59  ;;  %v2026_v42 = vmul.f32 0.5, %v6405_v60  ;;  %v1907_v34 = vmul.f32 0.5, %v6408_v58 }
 0x1c9   : > { %v4981_v50 = vpop.eup %4980  ;;  %v3471_v27 = vadd.f32 %v3470_v62, %v3294_v48  ;;  %v2656_v54 = vadd.f32 1.0, %v4979_v56  ;;  %4984 = vtanh.f32 %v2025_v2  ;;  %v2034_v41 = vmul.f32 0.5, %v6413_v45 }
 0x1ca   : > { %v4983_v9 = vpop.eup %4982  ;;  %v2975_v57 = vmul.f32 0.5, %v2655_v36  ;;  %v2537_v46 = vadd.f32 1.0, %v4981_v50  ;;  %4986 = vtanh.f32 %v2026_v42  ;;  %4599 = vmatmul.msk.bf16.gmra.mxu1 %vm458_vm0, %v5823_v5  ;;  %4615 = vmatmul.msk.bf16.gmra.mxu2 %vm458_vm0, %v5823_v5  ;;  %v4530_v50 = vld [vmem:[%s7991_s3 + $0x98] sm:$0xf0] }
 0x1cb   : > { %v2976_v61 = vmul.f32 0.5, %v2656_v54  ;;  %v2664_v31 = vadd.f32 1.0, %v4983_v9  ;;  %4988 = vtanh.f32 %v1907_v34  ;;  %4631 = vmatmul.msk.bf16.gmra.mxu3 %vm458_vm0, %v5823_v5 }
 0x1cc   : > { %v3295_v62 = vmul.f32 %v2975_v57, %v6379_v18  ;;  %v2857_v40 = vmul.f32 0.5, %v2537_v46  ;;  %4990 = vtanh.f32 %v2034_v41  ;;  %v1107_v37 = vpop.f32.mrf.mxu2 }
 0x1cd   : > { %v3296_v21 = vmul.f32 %v2976_v61, %v6383_v20  ;;  %v2984_v6 = vmul.f32 0.5, %v2664_v31  ;;  %v6427_v4 = vadd.f32 %v1107_v37, %v5944_v12  ;;  %v1196_v52 = vpop.f32.mrf.mxu3  ;;  %v1255_v63 = vpop.f32.mrf.mxu0 }
 0x1ce   : > { %v3508_v22 = vadd.f32 %v3507_v44, %v3295_v62  ;;  %v3177_v38 = vmul.f32 %v2857_v40, %v6386_v29  ;;  %v6431_v43 = vadd.f32 %v1196_v52, %v5949_v14  ;;  %v6434_v33 = vadd.f32 %v1255_v63, %v6274_v26  ;;  %v1020_v18 = vpop.f32.mrf.mxu1 }
 0x1cf   : > { %v4985_v7 = vpop.eup %4984  ;;  %v3545_v39 = vadd.f32 %v3544_v15, %v3296_v21  ;;  %v3304_v20 = vmul.f32 %v2984_v6, %v6391_v25  ;;  %v2035_v32 = vmul.f32 0.5, %v6427_v4  ;;  %v6439_v10 = vadd.f32 %v1020_v18, %v5930_v1 }
 0x1d0   : > { %v4987_v11 = vpop.eup %4986  ;;  %v3570_v44 = vadd.f32 %v3569_v13, %v3177_v38  ;;  %v2665_v59 = vadd.f32 1.0, %v4985_v7  ;;  %v2036_v29 = vmul.f32 0.5, %v6431_v43  ;;  %v1917_v48 = vmul.f32 0.5, %v6434_v33  ;;  %4593 = vmatmul.msk.bf16.gmra.mxu0 %vm458_vm0, %v6103_v55  ;;  %v4730_v13 = vld [vmem:[%s7991_s3 + $0x74] sm:$0xf] }
 0x1d1   : > { %v4989_v2 = vpop.eup %4988  ;;  %v3472_v56 = vadd.f32 %v3471_v27, %v3304_v20  ;;  %v2666_v15 = vadd.f32 1.0, %v4987_v11  ;;  %4992 = vtanh.f32 %v2035_v32  ;;  %v2044_v25 = vmul.f32 0.5, %v6439_v10 }
 0x1d2   : > { %v4991_v36 = vpop.eup %4990  ;;  %v2985_v42 = vmul.f32 0.5, %v2665_v59  ;;  %v2547_v34 = vadd.f32 1.0, %v4989_v2  ;;  %4994 = vtanh.f32 %v2036_v29  ;;  %v4533_v27 = vor.u32 %v4730_v13, %v4530_v50 }
 0x1d3   : > { %v2986_v54 = vmul.f32 0.5, %v2666_v15  ;;  %v2674_v41 = vadd.f32 1.0, %v4991_v36  ;;  %4996 = vtanh.f32 %v1917_v48 }
 0x1d4   : > { %v3305_v9 = vmul.f32 %v2985_v42, %v6401_v3  ;;  %v2867_v57 = vmul.f32 0.5, %v2547_v34  ;;  %4998 = vtanh.f32 %v2044_v25  ;;  %v1109_v46 = vpop.f32.mrf.mxu2  ;;  %1771 = vmatpush.bf16.msra.mxu2 %v4533_v27 }
 0x1d5   : > { %v3306_v61 = vmul.f32 %v2986_v54, %v6405_v60  ;;  %v2994_v31 = vmul.f32 0.5, %v2674_v41  ;;  %v6455_v62 = vadd.f32 %v1109_v46, %v5944_v12  ;;  %v1198_v40 = vpop.f32.mrf.mxu3  ;;  %v1257_v37 = vpop.f32.mrf.mxu0 }
 0x1d6   : > { %v3509_v21 = vadd.f32 %v3508_v22, %v3305_v9  ;;  %v3187_v6 = vmul.f32 %v2867_v57, %v6408_v58  ;;  %v6459_v52 = vadd.f32 %v1198_v40, %v5949_v14  ;;  %v6462_v3 = vadd.f32 %v1257_v37, %v6274_v26 }
 0x1d7   : > { %v4993_v63 = vpop.eup %4992  ;;  %v3546_v38 = vadd.f32 %v3545_v39, %v3306_v61  ;;  %v3314_v60 = vmul.f32 %v2994_v31, %v6413_v45  ;;  %v2045_v18 = vmul.f32 0.5, %v6455_v62  ;;  %v1023_v7 = vpop.f32.mrf.mxu1 }
 0x1d8   : > { %v4995_v20 = vpop.eup %4994  ;;  %v3571_v32 = vadd.f32 %v3570_v44, %v3187_v6  ;;  %v2675_v11 = vadd.f32 1.0, %v4993_v63  ;;  %v2046_v22 = vmul.f32 0.5, %v6459_v52  ;;  %v1927_v58 = vmul.f32 0.5, %v6462_v3  ;;  %v4528_v44 = vld [vmem:[%s7991_s3 + $0x70] sm:$0xf] }
 0x1d9   : > { %v4997_v59 = vpop.eup %4996  ;;  %v3473_v29 = vadd.f32 %v3472_v56, %v3314_v60  ;;  %v2676_v48 = vadd.f32 1.0, %v4995_v20  ;;  %5000 = vtanh.f32 %v2045_v18  ;;  %v6469_v2 = vadd.f32 %v1023_v7, %v5930_v1  ;;  %v4735_v56 = vld [vmem:[%s7991_s3 + $0x94] sm:$0xf0] }
 0x1da   : > { %v4999_v39 = vpop.eup %4998  ;;  %v2995_v15 = vmul.f32 0.5, %v2675_v11  ;;  %v2557_v45 = vadd.f32 1.0, %v4997_v59  ;;  %5002 = vtanh.f32 %v2046_v22  ;;  %4600 = vmatmul.msk.bf16.gmra.mxu1 %vm458_vm0, %v5841_v24  ;;  %4616 = vmatmul.msk.bf16.gmra.mxu2 %vm458_vm0, %v5841_v24  ;;  %v4529_v50 = vor.u32 %v4735_v56, %v4528_v44 }
 0x1db   : > { %v2996_v25 = vmul.f32 0.5, %v2676_v48  ;;  %v2684_v36 = vadd.f32 1.0, %v4999_v39  ;;  %5004 = vtanh.f32 %v1927_v58  ;;  %v2054_v42 = vmul.f32 0.5, %v6469_v2  ;;  %4632 = vmatmul.msk.bf16.gmra.mxu3 %vm458_vm0, %v5841_v24  ;;  %v4482_v48 = vld [vmem:[%s7991_s3 + $0x40] sm:$0xf0] }
 0x1dc   : > { %v3315_v34 = vmul.f32 %v2995_v15, %v6427_v4  ;;  %v2877_v13 = vmul.f32 0.5, %v2557_v45  ;;  %1682 = vmatpush.bf16.msra.mxu1 %v4529_v50 }
 0x1dd   : > { %v3316_v54 = vmul.f32 %v2996_v25, %v6431_v43  ;;  %v3004_v41 = vmul.f32 0.5, %v2684_v36  ;;  %5006 = vtanh.f32 %v2054_v42  ;;  %v1112_v27 = vpop.f32.mrf.mxu2  ;;  %v1260_v9 = vpop.f32.mrf.mxu0 }
 0x1de   : > { %v3510_v57 = vadd.f32 %v3509_v21, %v3315_v34  ;;  %v3197_v46 = vmul.f32 %v2877_v13, %v6434_v33  ;;  %v6488_v61 = vadd.f32 %v1112_v27, %v5944_v12  ;;  %v1201_v31 = vpop.f32.mrf.mxu3  ;;  %v6491_v40 = vadd.f32 %v1260_v9, %v6274_v26 }
 0x1df   : > { %v5001_v4 = vpop.eup %5000  ;;  %v3547_v37 = vadd.f32 %v3546_v38, %v3316_v54  ;;  %v3324_v6 = vmul.f32 %v3004_v41, %v6439_v10  ;;  %v6495_v43 = vadd.f32 %v1201_v31, %v5949_v14  ;;  %v1025_v63 = vpop.f32.mrf.mxu1 }
 0x1e0   : > { %v5003_v60 = vpop.eup %5002  ;;  %v3572_v21 = vadd.f32 %v3571_v32, %v3197_v46  ;;  %v2685_v18 = vadd.f32 1.0, %v5001_v4  ;;  %v2055_v33 = vmul.f32 0.5, %v6488_v61  ;;  %v1937_v7 = vmul.f32 0.5, %v6491_v40  ;;  %4594 = vmatmul.msk.bf16.gmra.mxu0 %vm458_vm0, %v6153_v28  ;;  %v4719_v32 = vld [vmem:[%s7991_s3 + $0x1c] sm:$0xf] }
 0x1e1   : > { %v5005_v20 = vpop.eup %5004  ;;  %v3474_v11 = vadd.f32 %v3473_v29, %v3324_v6  ;;  %v2686_v22 = vadd.f32 1.0, %v5003_v60  ;;  %v2056_v38 = vmul.f32 0.5, %v6495_v43  ;;  %v6503_v10 = vadd.f32 %v1025_v63, %v5930_v1 }
 0x1e2   : > { %v3005_v58 = vmul.f32 0.5, %v2685_v18  ;;  %v2567_v59 = vadd.f32 1.0, %v5005_v20  ;;  %5008 = vtanh.f32 %v2055_v33  ;;  %v4485_v45 = vor.u32 %v4719_v32, %v4482_v48 }
 0x1e3   : > { %v5007_v39 = vpop.eup %5006  ;;  %v3006_v15 = vmul.f32 0.5, %v2686_v22  ;;  %5010 = vtanh.f32 %v2056_v38  ;;  %v2064_v29 = vmul.f32 0.5, %v6503_v10 }
 0x1e4   : > { %v3325_v44 = vmul.f32 %v3005_v58, %v6455_v62  ;;  %v2887_v56 = vmul.f32 0.5, %v2567_v59  ;;  %v2694_v25 = vadd.f32 1.0, %v5007_v39  ;;  %5012 = vtanh.f32 %v1937_v7  ;;  %1594 = vmatpush.bf16.msra.mxu0 %v4485_v45 }
 0x1e5   : > { %v3326_v36 = vmul.f32 %v3006_v15, %v6459_v52  ;;  %5014 = vtanh.f32 %v2064_v29  ;;  %v1114_v42 = vpop.f32.mrf.mxu2  ;;  %v1262_v34 = vpop.f32.mrf.mxu0 }
 0x1e6   : > { %v3511_v13 = vadd.f32 %v3510_v57, %v3325_v44  ;;  %v3207_v50 = vmul.f32 %v2887_v56, %v6462_v3  ;;  %v3014_v54 = vmul.f32 0.5, %v2694_v25  ;;  %v6516_v41 = vadd.f32 %v1114_v42, %v5944_v12  ;;  %v1203_v27 = vpop.f32.mrf.mxu3 }
 0x1e7   : > { %v3548_v9 = vadd.f32 %v3547_v37, %v3326_v36  ;;  %v6519_v62 = vadd.f32 %v1203_v27, %v5949_v14  ;;  %v6522_v46 = vadd.f32 %v1262_v34, %v6274_v26  ;;  %v1028_v52 = vpop.f32.mrf.mxu1 }
 0x1e8   : > { %v5009_v31 = vpop.eup %5008  ;;  %v3573_v4 = vadd.f32 %v3572_v21, %v3207_v50  ;;  %v3334_v6 = vmul.f32 %v3014_v54, %v6469_v2  ;;  %v2065_v57 = vmul.f32 0.5, %v6516_v41  ;;  %v6527_v3 = vadd.f32 %v1028_v52, %v5930_v1 }
 0x1e9   : > { %v5011_v63 = vpop.eup %5010  ;;  %v2695_v60 = vadd.f32 1.0, %v5009_v31  ;;  %v2066_v37 = vmul.f32 0.5, %v6519_v62  ;;  %v1947_v18 = vmul.f32 0.5, %v6522_v46 }
 0x1ea   : > { %v5013_v33 = vpop.eup %5012  ;;  %v3475_v7 = vadd.f32 %v3474_v11, %v3334_v6  ;;  %v2696_v20 = vadd.f32 1.0, %v5011_v63  ;;  %5016 = vtanh.f32 %v2065_v57  ;;  %v2074_v22 = vmul.f32 0.5, %v6527_v3  ;;  %4601 = vmatmul.msk.bf16.gmra.mxu1 %vm458_vm0, %v5865_v47  ;;  %4617 = vmatmul.msk.bf16.gmra.mxu2 %vm458_vm0, %v5865_v47 }
 0x1eb   : > { %v5015_v2 = vpop.eup %5014  ;;  %v3015_v21 = vmul.f32 0.5, %v2695_v60  ;;  %v2577_v38 = vadd.f32 1.0, %v5013_v33  ;;  %5018 = vtanh.f32 %v2066_v37  ;;  %4633 = vmatmul.msk.bf16.gmra.mxu3 %vm458_vm0, %v5865_v47 }
 0x1ec   : > { %v3016_v58 = vmul.f32 0.5, %v2696_v20  ;;  %v2704_v59 = vadd.f32 1.0, %v5015_v2  ;;  %5020 = vtanh.f32 %v1947_v18 }
 0x1ed   : > { %v3335_v11 = vmul.f32 %v3015_v21, %v6488_v61  ;;  %v2897_v32 = vmul.f32 0.5, %v2577_v38  ;;  %5022 = vtanh.f32 %v2074_v22  ;;  %v1117_v48 = vpop.f32.mrf.mxu2  ;;  %v1265_v39 = vpop.f32.mrf.mxu0 }
 0x1ee   : > { %v3336_v15 = vmul.f32 %v3016_v58, %v6495_v43  ;;  %v3024_v29 = vmul.f32 0.5, %v2704_v59  ;;  %v6541_v45 = vadd.f32 %v1117_v48, %v5944_v12  ;;  %v1206_v44 = vpop.f32.mrf.mxu3  ;;  %v6544_v56 = vadd.f32 %v1265_v39, %v6274_v26 }
 0x1ef   : > { %v3512_v25 = vadd.f32 %v3511_v13, %v3335_v11  ;;  %v3217_v36 = vmul.f32 %v2897_v32, %v6491_v40  ;;  %v6548_v42 = vadd.f32 %v1206_v44, %v5949_v14  ;;  %v1030_v61 = vpop.f32.mrf.mxu1 }
 0x1f0   : > { %v5017_v34 = vpop.eup %5016  ;;  %v3549_v50 = vadd.f32 %v3548_v9, %v3336_v15  ;;  %v3344_v54 = vmul.f32 %v3024_v29, %v6503_v10  ;;  %v2075_v43 = vmul.f32 0.5, %v6541_v45  ;;  %v1957_v27 = vmul.f32 0.5, %v6544_v56  ;;  %4595 = vmatmul.msk.bf16.gmra.mxu0 %vm458_vm0, %v6208_v19 }
 0x1f1   : > { %v5019_v52 = vpop.eup %5018  ;;  %v3574_v31 = vadd.f32 %v3573_v4, %v3217_v36  ;;  %v2705_v13 = vadd.f32 1.0, %v5017_v34  ;;  %v2076_v40 = vmul.f32 0.5, %v6548_v42  ;;  %v6557_v6 = vadd.f32 %v1030_v61, %v5930_v1 }
 0x1f2   : > { %v5021_v57 = vpop.eup %5020  ;;  %v3476_v63 = vadd.f32 %v3475_v7, %v3344_v54  ;;  %v2706_v9 = vadd.f32 1.0, %v5019_v52  ;;  %5024 = vtanh.f32 %v2075_v43 }
 0x1f3   : > { %v5023_v10 = vpop.eup %5022  ;;  %v3025_v60 = vmul.f32 0.5, %v2705_v13  ;;  %v2587_v37 = vadd.f32 1.0, %v5021_v57  ;;  %5026 = vtanh.f32 %v2076_v40  ;;  %v2084_v18 = vmul.f32 0.5, %v6557_v6 }
 0x1f4   : > { %v3026_v33 = vmul.f32 0.5, %v2706_v9  ;;  %v2714_v20 = vadd.f32 1.0, %v5023_v10  ;;  %5028 = vtanh.f32 %v1957_v27 }
 0x1f5   : > { %v3345_v4 = vmul.f32 %v3025_v60, %v6516_v41  ;;  %v2907_v22 = vmul.f32 0.5, %v2587_v37  ;;  %5030 = vtanh.f32 %v2084_v18  ;;  %v1119_v2 = vpop.f32.mrf.mxu2  ;;  %v1267_v21 = vpop.f32.mrf.mxu0 }
 0x1f6   : > { %v3346_v38 = vmul.f32 %v3026_v33, %v6519_v62  ;;  %v3034_v7 = vmul.f32 0.5, %v2714_v20  ;;  %v6563_v58 = vadd.f32 %v1119_v2, %v5944_v12  ;;  %v1208_v59 = vpop.f32.mrf.mxu3  ;;  %v6566_v11 = vadd.f32 %v1267_v21, %v6274_v26 }
 0x1f7   : > { %v3513_v32 = vadd.f32 %v3512_v25, %v3345_v4  ;;  %v3227_v48 = vmul.f32 %v2907_v22, %v6522_v46  ;;  %v6570_v39 = vadd.f32 %v1208_v59, %v5949_v14  ;;  %v1033_v41 = vpop.f32.mrf.mxu1 }
 0x1f8   : > { %v5025_v15 = vpop.eup %5024  ;;  %v3550_v29 = vadd.f32 %v3549_v50, %v3346_v38  ;;  %v3354_v44 = vmul.f32 %v3034_v7, %v6527_v3  ;;  %v2085_v62 = vmul.f32 0.5, %v6563_v58  ;;  %v1967_v36 = vmul.f32 0.5, %v6566_v11 }
 0x1f9   : > { %v5027_v61 = vpop.eup %5026  ;;  %v3575_v34 = vadd.f32 %v3574_v31, %v3227_v48  ;;  %v2715_v54 = vadd.f32 1.0, %v5025_v15  ;;  %v2086_v43 = vmul.f32 0.5, %v6570_v39  ;;  %v6577_v25 = vadd.f32 %v1033_v41, %v5930_v1 }
 0x1fa   : > { %v5029_v46 = vpop.eup %5028  ;;  %v3477_v27 = vadd.f32 %v3476_v63, %v3354_v44  ;;  %v2716_v52 = vadd.f32 1.0, %v5027_v61  ;;  %5032 = vtanh.f32 %v2085_v62  ;;  %4602 = vmatmul.msk.bf16.gmra.mxu1 %vm458_vm0, %v5877_v0  ;;  %4618 = vmatmul.msk.bf16.gmra.mxu2 %vm458_vm0, %v5877_v0 }
 0x1fb   : > { %v5031_v3 = vpop.eup %5030  ;;  %v3035_v50 = vmul.f32 0.5, %v2715_v54  ;;  %v2597_v13 = vadd.f32 1.0, %v5029_v46  ;;  %5034 = vtanh.f32 %v2086_v43  ;;  %v2094_v31 = vmul.f32 0.5, %v6577_v25  ;;  %4634 = vmatmul.msk.bf16.gmra.mxu3 %vm458_vm0, %v5877_v0 }
 0x1fc   : > { %v3036_v40 = vmul.f32 0.5, %v2716_v52  ;;  %v2724_v57 = vadd.f32 1.0, %v5031_v3  ;;  %5036 = vtanh.f32 %v1967_v36 }
 0x1fd   : > { %v3355_v63 = vmul.f32 %v3035_v50, %v6541_v45  ;;  %v2917_v9 = vmul.f32 0.5, %v2597_v13  ;;  %5038 = vtanh.f32 %v2094_v31  ;;  %v1122_v10 = vpop.f32.mrf.mxu2  ;;  %v1270_v60 = vpop.f32.mrf.mxu0 }
 0x1fe   : > { %v3356_v37 = vmul.f32 %v3036_v40, %v6548_v42  ;;  %v3044_v18 = vmul.f32 0.5, %v2724_v57  ;;  %v6589_v33 = vadd.f32 %v1122_v10, %v5944_v12  ;;  %v1211_v20 = vpop.f32.mrf.mxu3  ;;  %v6592_v4 = vadd.f32 %v1270_v60, %v6274_v26 }
 0x1ff   : > { %v3514_v22 = vadd.f32 %v3513_v32, %v3355_v63  ;;  %v3237_v2 = vmul.f32 %v2917_v9, %v6544_v56  ;;  %v6596_v21 = vadd.f32 %v1211_v20, %v5949_v14  ;;  %v1035_v45 = vpop.f32.mrf.mxu1 }
 0x200   : > { %v5033_v38 = vpop.eup %5032  ;;  %v3551_v7 = vadd.f32 %v3550_v29, %v3356_v37  ;;  %v3364_v59 = vmul.f32 %v3044_v18, %v6557_v6  ;;  %v2095_v42 = vmul.f32 0.5, %v6589_v33  ;;  %v1977_v48 = vmul.f32 0.5, %v6592_v4  ;;  %4596 = vmatmul.msk.bf16.gmra.mxu0 %vm458_vm0, %v6264_v30 }
 0x201   : > { %v5035_v41 = vpop.eup %5034  ;;  %v3576_v15 = vadd.f32 %v3575_v34, %v3237_v2  ;;  %v2725_v32 = vadd.f32 1.0, %v5033_v38  ;;  %v2096_v56 = vmul.f32 0.5, %v6596_v21  ;;  %v6605_v44 = vadd.f32 %v1035_v45, %v5930_v1 }
 0x202   : > { %v5037_v62 = vpop.eup %5036  ;;  %v3478_v36 = vadd.f32 %v3477_v27, %v3364_v59  ;;  %v2726_v29 = vadd.f32 1.0, %v5035_v41  ;;  %5040 = vtanh.f32 %v2095_v42 }
 0x203   : > { %v5039_v6 = vpop.eup %5038  ;;  %v3045_v61 = vmul.f32 0.5, %v2725_v32  ;;  %v2607_v54 = vadd.f32 1.0, %v5037_v62  ;;  %5042 = vtanh.f32 %v2096_v56  ;;  %v2104_v43 = vmul.f32 0.5, %v6605_v44 }
 0x204   : > { %v3046_v46 = vmul.f32 0.5, %v2726_v29  ;;  %v2734_v52 = vadd.f32 1.0, %v5039_v6  ;;  %5044 = vtanh.f32 %v1977_v48 }
 0x205   : > { %v3365_v34 = vmul.f32 %v3045_v61, %v6563_v58  ;;  %v2927_v3 = vmul.f32 0.5, %v2607_v54  ;;  %5046 = vtanh.f32 %v2104_v43  ;;  %v1124_v50 = vpop.f32.mrf.mxu2  ;;  %v1272_v13 = vpop.f32.mrf.mxu0 }
 0x206   : > { %v3366_v31 = vmul.f32 %v3046_v46, %v6570_v39  ;;  %v3054_v27 = vmul.f32 0.5, %v2734_v52  ;;  %v6611_v40 = vadd.f32 %v1124_v50, %v5944_v12  ;;  %v1213_v57 = vpop.f32.mrf.mxu3  ;;  %v6614_v63 = vadd.f32 %v1272_v13, %v6274_v26 }
 0x207   : > { %v3515_v9 = vadd.f32 %v3514_v22, %v3365_v34  ;;  %v3247_v10 = vmul.f32 %v2927_v3, %v6566_v11  ;;  %v6618_v60 = vadd.f32 %v1213_v57, %v5949_v14  ;;  %v1038_v58 = vpop.f32.mrf.mxu1 }
 0x208   : > { %v5041_v37 = vpop.eup %5040  ;;  %v3552_v18 = vadd.f32 %v3551_v7, %v3366_v31  ;;  %v3374_v20 = vmul.f32 %v3054_v27, %v6577_v25  ;;  %v2105_v39 = vmul.f32 0.5, %v6611_v40  ;;  %v1987_v2 = vmul.f32 0.5, %v6614_v63 }
 0x209   : > { %v5043_v45 = vpop.eup %5042  ;;  %v3577_v38 = vadd.f32 %v3576_v15, %v3247_v10  ;;  %v2735_v59 = vadd.f32 1.0, %v5041_v37  ;;  %v2106_v42 = vmul.f32 0.5, %v6618_v60  ;;  %v6625_v22 = vadd.f32 %v1038_v58, %v5930_v1 }
 0x20a   : > { %v5045_v11 = vpop.eup %5044  ;;  %v3479_v48 = vadd.f32 %v3478_v36, %v3374_v20  ;;  %v2736_v41 = vadd.f32 1.0, %v5043_v45  ;;  %5048 = vtanh.f32 %v2105_v39  ;;  %4603 = vmatmul.msk.bf16.gmra.mxu1 %vm458_vm0, %v5889_v17  ;;  %4619 = vmatmul.msk.bf16.gmra.mxu2 %vm458_vm0, %v5889_v17 }
 0x20b   : > { %v5047_v25 = vpop.eup %5046  ;;  %v3055_v7 = vmul.f32 0.5, %v2735_v59  ;;  %v2617_v32 = vadd.f32 1.0, %v5045_v11  ;;  %5050 = vtanh.f32 %v2106_v42  ;;  %v2114_v15 = vmul.f32 0.5, %v6625_v22  ;;  %4635 = vmatmul.msk.bf16.gmra.mxu3 %vm458_vm0, %v5889_v17 }
 0x20c   : > { %v3056_v56 = vmul.f32 0.5, %v2736_v41  ;;  %v2744_v62 = vadd.f32 1.0, %v5047_v25  ;;  %5052 = vtanh.f32 %v1987_v2 }
 0x20d   : > { %v3375_v36 = vmul.f32 %v3055_v7, %v6589_v33  ;;  %v2937_v29 = vmul.f32 0.5, %v2617_v32  ;;  %5054 = vtanh.f32 %v2114_v15  ;;  %v1127_v6 = vpop.f32.mrf.mxu2  ;;  %v1275_v61 = vpop.f32.mrf.mxu0 }
 0x20e   : > { %v3376_v54 = vmul.f32 %v3056_v56, %v6596_v21  ;;  %v3064_v43 = vmul.f32 0.5, %v2744_v62  ;;  %v6637_v46 = vadd.f32 %v1127_v6, %v5944_v12  ;;  %v1216_v52 = vpop.f32.mrf.mxu3  ;;  %v6640_v34 = vadd.f32 %v1275_v61, %v6274_v26 }
 0x20f   : > { %v3516_v3 = vadd.f32 %v3515_v9, %v3375_v36  ;;  %v3257_v50 = vmul.f32 %v2937_v29, %v6592_v4  ;;  %v6644_v13 = vadd.f32 %v1216_v52, %v5949_v14  ;;  %v1040_v33 = vpop.f32.mrf.mxu1 }
 0x210   : > { %v5049_v31 = vpop.eup %5048  ;;  %v3553_v27 = vadd.f32 %v3552_v18, %v3376_v54  ;;  %v3384_v57 = vmul.f32 %v3064_v43, %v6605_v44  ;;  %v2115_v21 = vmul.f32 0.5, %v6637_v46  ;;  %v1997_v10 = vmul.f32 0.5, %v6640_v34  ;;  %4597 = vmatmul.msk.bf16.gmra.mxu0 %vm458_vm0, %v6317_v16 }
 0x211   : > { %v5051_v58 = vpop.eup %5050  ;;  %v3578_v37 = vadd.f32 %v3577_v38, %v3257_v50  ;;  %v2745_v9 = vadd.f32 1.0, %v5049_v31  ;;  %v2116_v4 = vmul.f32 0.5, %v6644_v13  ;;  %v6653_v20 = vadd.f32 %v1040_v33, %v5930_v1 }
 0x212   : > { %v5053_v39 = vpop.eup %5052  ;;  %v3480_v2 = vadd.f32 %v3479_v48, %v3384_v57  ;;  %v2746_v18 = vadd.f32 1.0, %v5051_v58  ;;  %5056 = vtanh.f32 %v2115_v21 }
 0x213   : > { %v5055_v44 = vpop.eup %5054  ;;  %v3065_v45 = vmul.f32 0.5, %v2745_v9  ;;  %v2627_v59 = vadd.f32 1.0, %v5053_v39  ;;  %5058 = vtanh.f32 %v2116_v4  ;;  %v2124_v42 = vmul.f32 0.5, %v6653_v20 }
 0x214   : > { %v3066_v11 = vmul.f32 0.5, %v2746_v18  ;;  %v2754_v41 = vadd.f32 1.0, %v5055_v44  ;;  %5060 = vtanh.f32 %v1997_v10 }
 0x215   : > { %v3385_v38 = vmul.f32 %v3065_v45, %v6611_v40  ;;  %v2947_v25 = vmul.f32 0.5, %v2627_v59  ;;  %5062 = vtanh.f32 %v2124_v42  ;;  %v1129_v7 = vpop.f32.mrf.mxu2  ;;  %v1277_v32 = vpop.f32.mrf.mxu0 }
 0x216   : > { %v3386_v15 = vmul.f32 %v3066_v11, %v6618_v60  ;;  %v3074_v48 = vmul.f32 0.5, %v2754_v41  ;;  %v6659_v56 = vadd.f32 %v1129_v7, %v5944_v12  ;;  %v1218_v62 = vpop.f32.mrf.mxu3  ;;  %v6662_v36 = vadd.f32 %v1277_v32, %v6274_v26 }
 0x217   : > { %v3517_v29 = vadd.f32 %v3516_v3, %v3385_v38  ;;  %v3267_v6 = vmul.f32 %v2947_v25, %v6614_v63  ;;  %v6666_v61 = vadd.f32 %v1218_v62, %v5949_v14  ;;  %v1043_v40 = vpop.f32.mrf.mxu1 }
 0x218   : > { %v5057_v54 = vpop.eup %5056  ;;  %v3554_v43 = vadd.f32 %v3553_v27, %v3386_v15  ;;  %v3394_v52 = vmul.f32 %v3074_v48, %v6625_v22  ;;  %v2125_v60 = vmul.f32 0.5, %v6659_v56  ;;  %v2007_v50 = vmul.f32 0.5, %v6662_v36 }
 0x219   : > { %v5059_v33 = vpop.eup %5058  ;;  %v3579_v31 = vadd.f32 %v3578_v37, %v3267_v6  ;;  %v2755_v57 = vadd.f32 1.0, %v5057_v54  ;;  %v2126_v21 = vmul.f32 0.5, %v6666_v61  ;;  %v6673_v3 = vadd.f32 %v1043_v40, %v5930_v1 }
 0x21a   : > { %v5061_v63 = vpop.eup %5060  ;;  %v3481_v10 = vadd.f32 %v3480_v2, %v3394_v52  ;;  %v2756_v58 = vadd.f32 1.0, %v5059_v33  ;;  %5064 = vtanh.f32 %v2125_v60  ;;  %4604 = vmatmul.msk.bf16.gmra.mxu1 %vm458_vm0, %v5901_v35  ;;  %4620 = vmatmul.msk.bf16.gmra.mxu2 %vm458_vm0, %v5901_v35 }
 0x21b   : > { %v5063_v22 = vpop.eup %5062  ;;  %v3075_v27 = vmul.f32 0.5, %v2755_v57  ;;  %v2637_v9 = vadd.f32 1.0, %v5061_v63  ;;  %5066 = vtanh.f32 %v2126_v21  ;;  %v2134_v37 = vmul.f32 0.5, %v6673_v3  ;;  %4636 = vmatmul.msk.bf16.gmra.mxu3 %vm458_vm0, %v5901_v35 }
 0x21c   : > { %v3076_v4 = vmul.f32 0.5, %v2756_v58  ;;  %v2764_v39 = vadd.f32 1.0, %v5063_v22  ;;  %5068 = vtanh.f32 %v2007_v50 }
 0x21d   : > { %v3395_v2 = vmul.f32 %v3075_v27, %v6637_v46  ;;  %v2957_v18 = vmul.f32 0.5, %v2637_v9  ;;  %5070 = vtanh.f32 %v2134_v37  ;;  %v1132_v44 = vpop.f32.mrf.mxu2  ;;  %v1280_v45 = vpop.f32.mrf.mxu0 }
 0x21e   : > { %v3396_v59 = vmul.f32 %v3076_v4, %v6644_v13  ;;  %v3084_v42 = vmul.f32 0.5, %v2764_v39  ;;  %v6685_v11 = vadd.f32 %v1132_v44, %v5944_v12  ;;  %v1221_v41 = vpop.f32.mrf.mxu3  ;;  %v6688_v38 = vadd.f32 %v1280_v45, %v6274_v26 }
 0x21f   : > { %v3518_v25 = vadd.f32 %v3517_v29, %v3395_v2  ;;  %v3277_v7 = vmul.f32 %v2957_v18, %v6640_v34  ;;  %v6692_v32 = vadd.f32 %v1221_v41, %v5949_v14  ;;  %v1045_v46 = vpop.f32.mrf.mxu1 }
 0x220   : > { %v5065_v15 = vpop.eup %5064  ;;  %v3555_v48 = vadd.f32 %v3554_v43, %v3396_v59  ;;  %v3404_v62 = vmul.f32 %v3084_v42, %v6653_v20  ;;  %v2135_v13 = vmul.f32 0.5, %v6685_v11  ;;  %v2017_v6 = vmul.f32 0.5, %v6688_v38  ;;  %4646 = vmatmul.msk.bf16.vlgmr.msra.gmra.mxu0 %vm458_vm0, %v5811_v53 }
 0x221   : > { %v5067_v40 = vpop.eup %5066  ;;  %v3580_v54 = vadd.f32 %v3579_v31, %v3277_v7  ;;  %v2765_v29 = vadd.f32 1.0, %v5065_v15  ;;  %v2136_v34 = vmul.f32 0.5, %v6692_v32  ;;  %v6701_v52 = vadd.f32 %v1045_v46, %v5930_v1 }
 0x222   : > { %v5069_v60 = vpop.eup %5068  ;;  %v3482_v50 = vadd.f32 %v3481_v10, %v3404_v62  ;;  %v2766_v43 = vadd.f32 1.0, %v5067_v40  ;;  %5072 = vtanh.f32 %v2135_v13 }
 0x223   : > { %v5071_v20 = vpop.eup %5070  ;;  %v3085_v33 = vmul.f32 0.5, %v2765_v29  ;;  %v2647_v57 = vadd.f32 1.0, %v5069_v60  ;;  %5074 = vtanh.f32 %v2136_v34  ;;  %v2144_v21 = vmul.f32 0.5, %v6701_v52 }
 0x224   : > { %v3086_v63 = vmul.f32 0.5, %v2766_v43  ;;  %v2774_v58 = vadd.f32 1.0, %v5071_v20  ;;  %5076 = vtanh.f32 %v2017_v6 }
 0x225   : > { %v3405_v31 = vmul.f32 %v3085_v33, %v6659_v56  ;;  %v2967_v22 = vmul.f32 0.5, %v2647_v57  ;;  %5078 = vtanh.f32 %v2144_v21  ;;  %v1134_v27 = vpop.f32.mrf.mxu2  ;;  %v1282_v9 = vpop.f32.mrf.mxu0 }
 0x226   : > { %v3406_v37 = vmul.f32 %v3086_v63, %v6666_v61  ;;  %v3094_v10 = vmul.f32 0.5, %v2774_v58  ;;  %v6707_v4 = vadd.f32 %v1134_v27, %v5944_v12  ;;  %v1223_v39 = vpop.f32.mrf.mxu3  ;;  %v6710_v2 = vadd.f32 %v1282_v9, %v6274_v26 }
 0x227   : > { %v3519_v18 = vadd.f32 %v3518_v25, %v3405_v31  ;;  %v3287_v44 = vmul.f32 %v2967_v22, %v6662_v36  ;;  %v6714_v45 = vadd.f32 %v1223_v39, %v5949_v14  ;;  %v1048_v56 = vpop.f32.mrf.mxu1 }
 0x228   : > { %v5073_v59 = vpop.eup %5072  ;;  %v3556_v42 = vadd.f32 %v3555_v48, %v3406_v37  ;;  %v3414_v41 = vmul.f32 %v3094_v10, %v6673_v3  ;;  %v2145_v61 = vmul.f32 0.5, %v6707_v4  ;;  %v2027_v7 = vmul.f32 0.5, %v6710_v2 }
 0x229   : > { %v5075_v46 = vpop.eup %5074  ;;  %v3581_v15 = vadd.f32 %v3580_v54, %v3287_v44  ;;  %v2775_v62 = vadd.f32 1.0, %v5073_v59  ;;  %v2146_v13 = vmul.f32 0.5, %v6714_v45  ;;  %v6721_v25 = vadd.f32 %v1048_v56, %v5930_v1 }
 0x22a   : > { %v5077_v36 = vpop.eup %5076  ;;  %v3483_v6 = vadd.f32 %v3482_v50, %v3414_v41  ;;  %v2776_v40 = vadd.f32 1.0, %v5075_v46  ;;  %5080 = vtanh.f32 %v2145_v61  ;;  %4605 = vmatmul.msk.bf16.gmra.mxu1 %vm458_vm0, %v5913_v51  ;;  %4621 = vmatmul.msk.bf16.gmra.mxu2 %vm458_vm0, %v5913_v51 }
 0x22b   : > { %v5079_v3 = vpop.eup %5078  ;;  %v3095_v48 = vmul.f32 0.5, %v2775_v62  ;;  %v2657_v29 = vadd.f32 1.0, %v5077_v36  ;;  %5082 = vtanh.f32 %v2146_v13  ;;  %v2154_v54 = vmul.f32 0.5, %v6721_v25  ;;  %4637 = vmatmul.msk.bf16.gmra.mxu3 %vm458_vm0, %v5913_v51 }
 0x22c   : > { %v3096_v34 = vmul.f32 0.5, %v2776_v40  ;;  %v2784_v60 = vadd.f32 1.0, %v5079_v3  ;;  %5084 = vtanh.f32 %v2027_v7 }
 0x22d   : > { %v3415_v50 = vmul.f32 %v3095_v48, %v6685_v11  ;;  %v2977_v43 = vmul.f32 0.5, %v2657_v29  ;;  %5086 = vtanh.f32 %v2154_v54  ;;  %v1137_v20 = vpop.f32.mrf.mxu2  ;;  %v1285_v33 = vpop.f32.mrf.mxu0 }
 0x22e   : > { %v3416_v57 = vmul.f32 %v3096_v34, %v6692_v32  ;;  %v3104_v21 = vmul.f32 0.5, %v2784_v60  ;;  %v6733_v63 = vadd.f32 %v1137_v20, %v5944_v12  ;;  %v1226_v58 = vpop.f32.mrf.mxu3  ;;  %v6736_v31 = vadd.f32 %v1285_v33, %v6274_v26 }
 0x22f   : > { %v3520_v22 = vadd.f32 %v3519_v18, %v3415_v50  ;;  %v3297_v27 = vmul.f32 %v2977_v43, %v6688_v38  ;;  %v6740_v9 = vadd.f32 %v1226_v58, %v5949_v14  ;;  %v1050_v11 = vpop.f32.mrf.mxu1 }
 0x230   : > { %v5081_v37 = vpop.eup %5080  ;;  %v3557_v10 = vadd.f32 %v3556_v42, %v3416_v57  ;;  %v3424_v39 = vmul.f32 %v3104_v21, %v6701_v52  ;;  %v2155_v32 = vmul.f32 0.5, %v6733_v63  ;;  %v2037_v44 = vmul.f32 0.5, %v6736_v31  ;;  %4647 = vmatmul.msk.bf16.gmra.mxu0 %vm458_vm0, %v5823_v5 }
 0x231   : > { %v5083_v56 = vpop.eup %5082  ;;  %v3582_v59 = vadd.f32 %v3581_v15, %v3297_v27  ;;  %v2785_v18 = vadd.f32 1.0, %v5081_v37  ;;  %v2156_v38 = vmul.f32 0.5, %v6740_v9  ;;  %v6749_v41 = vadd.f32 %v1050_v11, %v5930_v1 }
 0x232   : > { %v5085_v61 = vpop.eup %5084  ;;  %v3484_v7 = vadd.f32 %v3483_v6, %v3424_v39  ;;  %v2786_v42 = vadd.f32 1.0, %v5083_v56  ;;  %5088 = vtanh.f32 %v2155_v32  ;;  %v6756_v6 = vld [vmem:[%s7992_s4] sm:$0xff] }
 0x233   : > { %v5087_v52 = vpop.eup %5086  ;;  %v3105_v46 = vmul.f32 0.5, %v2785_v18  ;;  %v2667_v62 = vadd.f32 1.0, %v5085_v61  ;;  %5090 = vtanh.f32 %v2156_v38  ;;  %v2164_v13 = vmul.f32 0.5, %v6749_v41 }
 0x234   : > { %v3106_v36 = vmul.f32 0.5, %v2786_v42  ;;  %v2794_v40 = vadd.f32 1.0, %v5087_v52  ;;  %5092 = vtanh.f32 %v2037_v44  ;;  %v6759_v29 = vperm.slane %v6756_v6, 4 }
 0x235   : > { %v3425_v15 = vmul.f32 %v3105_v46, %v6707_v4  ;;  %v2987_v3 = vmul.f32 0.5, %v2667_v62  ;;  %5094 = vtanh.f32 %v2164_v13  ;;  %v1139_v48 = vpop.f32.mrf.mxu2  ;;  %v1287_v1 = vpop.f32.mrf.mxu0  ;;  %v6773_v21 = vperm.slane %v6756_v6, 5 }
 0x236   : > { %v3426_v54 = vmul.f32 %v3106_v36, %v6714_v45  ;;  %v3114_v34 = vmul.f32 0.5, %v2794_v40  ;;  %v6763_v60 = vadd.f32 %v1139_v48, %v5944_v12  ;;  %v1228_v50 = vpop.f32.mrf.mxu3  ;;  %v6766_v4 = vadd.f32 %v1287_v1, %v6274_v26 }
 0x237   : > { %v3521_v43 = vadd.f32 %v3520_v22, %v3425_v15  ;;  %v3307_v20 = vmul.f32 %v2987_v3, %v6710_v2  ;;  %v6770_v33 = vadd.f32 %v1228_v50, %v5949_v14  ;;  %v1329_v57 = vpop.f32.mrf.mxu1 }
 0x238   : > { %v5089_v58 = vpop.eup %5088  ;;  %v3558_v45 = vadd.f32 %v3557_v10, %v3426_v54  ;;  %v3434_v27 = vmul.f32 %v3114_v34, %v6721_v25  ;;  %v2165_v12 = vmul.f32 0.5, %v6763_v60  ;;  %v2047_v11 = vmul.f32 0.5, %v6766_v4 }
 0x239   : > { %v5091_v37 = vpop.eup %5090  ;;  %v3583_v39 = vadd.f32 %v3582_v59, %v3307_v20  ;;  %v2795_v22 = vadd.f32 1.0, %v5089_v58  ;;  %v2166_v2 = vmul.f32 0.5, %v6770_v33  ;;  %v6780_v14 = vadd.f32 %v1329_v57, %v6759_v29 }
 0x23a   : > { %v5093_v32 = vpop.eup %5092  ;;  %v3485_v44 = vadd.f32 %v3484_v7, %v3434_v27  ;;  %v2796_v56 = vadd.f32 1.0, %v5091_v37  ;;  %5096 = vtanh.f32 %v2165_v12  ;;  %4606 = vmatmul.msk.bf16.gmra.mxu1 %vm458_vm0, %v5933_v8  ;;  %4622 = vmatmul.msk.bf16.gmra.mxu2 %vm458_vm0, %v5933_v8  ;;  %v6787_v25 = vperm.slane %v6756_v6, 6 }
 0x23b   : > { %v5095_v10 = vpop.eup %5094  ;;  %v3115_v59 = vmul.f32 0.5, %v2795_v22  ;;  %v2677_v18 = vadd.f32 1.0, %v5093_v32  ;;  %5098 = vtanh.f32 %v2166_v2  ;;  %v1858_v38 = vmul.f32 0.5, %v6780_v14  ;;  %4638 = vmatmul.msk.bf16.gmra.mxu3 %vm458_vm0, %v5933_v8 }
 0x23c   : > { %v3116_v61 = vmul.f32 0.5, %v2796_v56  ;;  %v2804_v7 = vadd.f32 1.0, %v5095_v10  ;;  %5100 = vtanh.f32 %v2047_v11 }
 0x23d   : > { %v3435_v42 = vmul.f32 %v3115_v59, %v6733_v63  ;;  %v2997_v52 = vmul.f32 0.5, %v2677_v18  ;;  %5102 = vtanh.f32 %v1858_v38  ;;  %v1418_v46 = vpop.f32.mrf.mxu2  ;;  %v1290_v62 = vpop.f32.mrf.mxu0 }
 0x23e   : > { %v3436_v13 = vmul.f32 %v3116_v61, %v6740_v9  ;;  %v3124_v36 = vmul.f32 0.5, %v2804_v7  ;;  %v6795_v40 = vadd.f32 %v1418_v46, %v6773_v21  ;;  %v1507_v15 = vpop.f32.mrf.mxu3  ;;  %v6798_v3 = vadd.f32 %v1290_v62, %v6274_v26 }
 0x23f   : > { %v3522_v48 = vadd.f32 %v3521_v43, %v3435_v42  ;;  %v3317_v1 = vmul.f32 %v2997_v52, %v6736_v31  ;;  %v6802_v54 = vadd.f32 %v1507_v15, %v6787_v25  ;;  %v1331_v63 = vpop.f32.mrf.mxu1 }
 0x240   : > { %v5097_v34 = vpop.eup %5096  ;;  %v3559_v50 = vadd.f32 %v3558_v45, %v3436_v13  ;;  %v3444_v20 = vmul.f32 %v3124_v36, %v6749_v41  ;;  %v1859_v9 = vmul.f32 0.5, %v6795_v40  ;;  %v2057_v57 = vmul.f32 0.5, %v6798_v3  ;;  %4648 = vmatmul.msk.bf16.gmra.mxu0 %vm458_vm0, %v5841_v24 }
 0x241   : > { %v5099_v58 = vpop.eup %5098  ;;  %v3584_v27 = vadd.f32 %v3583_v39, %v3317_v1  ;;  %v2805_v43 = vadd.f32 1.0, %v5097_v34  ;;  %v1860_v31 = vmul.f32 0.5, %v6802_v54  ;;  %v6811_v12 = vadd.f32 %v1331_v63, %v6759_v29 }
 0x242   : > { %v5101_v11 = vpop.eup %5100  ;;  %v3486_v37 = vadd.f32 %v3485_v44, %v3444_v20  ;;  %v2806_v45 = vadd.f32 1.0, %v5099_v58  ;;  %5104 = vtanh.f32 %v1859_v9 }
 0x243   : > { %v5103_v41 = vpop.eup %5102  ;;  %v3125_v22 = vmul.f32 0.5, %v2805_v43  ;;  %v2687_v2 = vadd.f32 1.0, %v5101_v11  ;;  %5106 = vtanh.f32 %v1860_v31  ;;  %v1868_v32 = vmul.f32 0.5, %v6811_v12 }
 0x244   : > { %v3487_v56 = vrot.slane %v3486_v37, 4  ;;  %v3126_v10 = vmul.f32 0.5, %v2806_v45  ;;  %5108 = vtanh.f32 %v2057_v57  ;;  %v2498_v7 = vadd.f32 1.0, %v5103_v41 }
 0x245   : > { %v3445_v39 = vmul.f32 %v3125_v22, %v6763_v60  ;;  %v3007_v59 = vmul.f32 0.5, %v2687_v2  ;;  %5110 = vtanh.f32 %v1868_v32  ;;  %v1420_v18 = vpop.f32.mrf.mxu2  ;;  %v1292_v38 = vpop.f32.mrf.mxu0 }
 0x246   : > { %v3488_v61 = vadd.f32 %v3487_v56, %v3486_v37  ;;  %v3446_v44 = vmul.f32 %v3126_v10, %v6770_v33  ;;  %v6817_v42 = vadd.f32 %v1420_v18, %v6773_v21  ;;  %v1509_v52 = vpop.f32.mrf.mxu3  ;;  %v6828_v57 = vadd.f32 %v1292_v38, %v6274_v26 }
 0x247   : > { %v3523_v46 = vadd.f32 %v3522_v48, %v3445_v39  ;;  %v3327_v62 = vmul.f32 %v3007_v59, %v6766_v4  ;;  %v6821_v13 = vadd.f32 %v1509_v52, %v6787_v25  ;;  %v1334_v36 = vpop.f32.mrf.mxu1  ;;  %v2818_v58 = vmul.f32 0.5, %v2498_v7 }
 0x248   : > { %v5105_v60 = vpop.eup %5104  ;;  %v3489_v15 = vrot.slane %v3488_v61, 2  ;;  %v6823_v1 = vadd.f32 %v3559_v50, %v3446_v44  ;;  %v1869_v63 = vmul.f32 0.5, %v6817_v42  ;;  %v2067_v22 = vmul.f32 0.5, %v6828_v57 }
 0x249   : > { %v5107_v34 = vpop.eup %5106  ;;  %v3524_v33 = vrot.slane %v3523_v46, 4  ;;  %v3585_v20 = vadd.f32 %v3584_v27, %v3327_v62  ;;  %v1870_v9 = vmul.f32 0.5, %v6821_v13  ;;  %v2499_v43 = vadd.f32 1.0, %v5105_v60 }
 0x24a   : > { %v5109_v48 = vpop.eup %5108  ;;  %v3490_v4 = vadd.f32 %v3489_v15, %v3488_v61  ;;  %5112 = vtanh.f32 %v1869_v63  ;;  %4607 = vmatmul.msk.bf16.gmra.mxu1 %vm458_vm0, %v5975_v49  ;;  %4623 = vmatmul.msk.bf16.gmra.mxu2 %vm458_vm0, %v5975_v49  ;;  %v2500_v27 = vadd.f32 1.0, %v5107_v34  ;;  %v3138_v10 = vmul.f32 %v2818_v58, %v6780_v14 }
 0x24b   : > { %v5111_v50 = vpop.eup %5110  ;;  %v3525_v31 = vadd.f32 %v3524_v33, %v3523_v46  ;;  %v2697_v11 = vadd.f32 1.0, %v5109_v48  ;;  %5114 = vtanh.f32 %v1870_v9  ;;  %4639 = vmatmul.msk.bf16.gmra.mxu3 %vm458_vm0, %v5975_v49  ;;  %v2819_v39 = vmul.f32 0.5, %v2499_v43 }
 0x24c   : > { %v2508_v37 = vadd.f32 1.0, %v5111_v50  ;;  %v3491_v56 = vrot.slane %v3490_v4, 1  ;;  %5116 = vtanh.f32 %v2067_v22  ;;  %v6840_v44 = vadd.f32 %v1334_v36, %v6759_v29 }
 0x24d   : > { %v3526_v45 = vrot.slane %v3525_v31, 2  ;;  %v3017_v41 = vmul.f32 0.5, %v2697_v11  ;;  %v1423_v2 = vpop.f32.mrf.mxu2  ;;  %v1295_v32 = vpop.f32.mrf.mxu0  ;;  %v2820_v46 = vmul.f32 0.5, %v2500_v27  ;;  %v3139_v33 = vmul.f32 %v2819_v39, %v6795_v40 }
 0x24e   : > { %v2828_v59 = vmul.f32 0.5, %v2508_v37  ;;  %v1512_v18 = vpop.f32.mrf.mxu3  ;;  %v6844_v60 = vadd.f32 %v1423_v2, %v6773_v21  ;;  %v1878_v36 = vmul.f32 0.5, %v6840_v44 }
 0x24f   : > { %v3527_v38 = vadd.f32 %v3526_v45, %v3525_v31  ;;  %v3337_v61 = vmul.f32 %v3017_v41, %v6798_v3  ;;  %v1336_v7 = vpop.f32.mrf.mxu1  ;;  %v6847_v14 = vadd.f32 %v1512_v18, %v6787_v25  ;;  %v3492_v31 = vadd.f32 %v3491_v56, %v3490_v4 }
 0x250   : > { %v5113_v52 = vpop.eup %5112  ;;  %v3148_v62 = vmul.f32 %v2828_v59, %v6811_v12  ;;  %4649 = vmatmul.msk.bf16.gmra.mxu0 %vm458_vm0, %v5865_v47  ;;  %v1879_v48 = vmul.f32 0.5, %v6844_v60  ;;  %5118 = vtanh.f32 %v1878_v36  ;;  %v6862_v45 = vadd.f32 %v1336_v7, %v6759_v29 }
 0x251   : > { %v5115_v15 = vpop.eup %5114  ;;  %v3528_v3 = vrot.slane %v3527_v38, 1  ;;  %v3586_v63 = vadd.f32 %v3585_v20, %v3337_v61  ;;  %v2509_v34 = vadd.f32 1.0, %v5113_v52  ;;  %v1880_v50 = vmul.f32 0.5, %v6847_v14 }
 0x252   : > { %v6853_v9 = vadd.f32 %v3148_v62, %v3138_v10  ;;  %v2510_v12 = vadd.f32 1.0, %v5115_v15  ;;  %5120 = vtanh.f32 %v1879_v48  ;;  %v6858_v20 = vadd.f32 %v1295_v32, %v6274_v26  ;;  %v5117_v27 = vpop.eup %5116 }
 0x253   : > { %v3529_v58 = vadd.f32 %v3528_v3, %v3527_v38  ;;  %v2829_v43 = vmul.f32 0.5, %v2509_v34  ;;  %5122 = vtanh.f32 %v1880_v50  ;;  %v3140_v2 = vmul.f32 %v2820_v46, %v6802_v54  ;;  %v4720_v54 = vld [vmem:[%s7991_s3 + $0x24] sm:$0xf] }
 0x254   : > { %v2830_v11 = vmul.f32 0.5, %v2510_v12  ;;  %v2707_v4 = vadd.f32 1.0, %v5117_v27  ;;  %v2077_v56 = vmul.f32 0.5, %v6858_v20 }
 0x255   : > { %v3836_v37 = vrot.slane %v3529_v58, 7  ;;  %v3149_v40 = vmul.f32 %v2829_v43, %v6817_v42  ;;  %v1425_v41 = vpop.f32.mrf.mxu2  ;;  %v1297_v22 = vpop.f32.mrf.mxu0  ;;  %v1888_v42 = vmul.f32 0.5, %v6862_v45 }
 0x256   : > { %v3150_v10 = vmul.f32 %v2830_v11, %v6821_v13  ;;  %v1514_v39 = vpop.f32.mrf.mxu3  ;;  %v6872_v18 = vadd.f32 %v1425_v41, %v6773_v21  ;;  %v4490_v13 = vld [vmem:[%s7991_s3 + $0x48] sm:$0xf0]  ;;  %v3027_v7 = vmul.f32 0.5, %v2707_v4  ;;  %5124 = vtanh.f32 %v2077_v56  ;;  %v5119_v46 = vpop.eup %5118 }
 0x257   : > { %v6868_v32 = vsel %vm3844_vm1, %v3492_v31, %v3836_v37  ;;  %v3641_v59 = vadd.f32 %v3149_v40, %v3139_v33  ;;  %v1339_v38 = vpop.f32.mrf.mxu1  ;;  %v6881_v52 = vadd.f32 %v1514_v39, %v6787_v25  ;;  %5126 = vtanh.f32 %v1888_v42 }
 0x258   : > { %v3678_v61 = vadd.f32 %v3150_v10, %v3140_v2  ;;  %v1889_v62 = vmul.f32 0.5, %v6872_v18  ;;  %v6885_v15 = vadd.f32 %v1297_v22, %v6274_v26  ;;  %v6888_v3 = vadd.f32 %v1339_v38, %v6759_v29  ;;  %v5121_v34 = vpop.eup %5120 }
 0x259   : > { %v3347_v36 = vmul.f32 %v3027_v7, %v6828_v57  ;;  %v2518_v33 = vadd.f32 1.0, %v5119_v46  ;;  %v1890_v12 = vmul.f32 0.5, %v6881_v52  ;;  %v4493_v48 = vor.u32 %v4720_v54, %v4490_v13  ;;  %v5123_v58 = vpop.eup %5122 }
 0x25a   : > { %4608 = vmatmul.msk.bf16.gmra.mxu1 %vm458_vm0, %v6035_v23  ;;  %4624 = vmatmul.msk.bf16.gmra.mxu2 %vm458_vm0, %v6035_v23  ;;  %v2519_v43 = vadd.f32 1.0, %v5121_v34  ;;  %5128 = vtanh.f32 %v1889_v62  ;;  %v2087_v50 = vmul.f32 0.5, %v6885_v15  ;;  %v1898_v31 = vmul.f32 0.5, %v6888_v3 }
 0x25b   : > { %4640 = vmatmul.msk.bf16.gmra.mxu3 %vm458_vm0, %v6035_v23  ;;  %v3587_v57 = vadd.f32 %v3586_v63, %v3347_v36  ;;  %v2838_v11 = vmul.f32 0.5, %v2518_v33  ;;  %v2520_v27 = vadd.f32 1.0, %v5123_v58  ;;  %5130 = vtanh.f32 %v1890_v12  ;;  %1772 = vmatpush.bf16.msra.mxu2 %v4493_v48 }
 0x25c   : > { %v2839_v37 = vmul.f32 0.5, %v2519_v43  ;;  %5132 = vtanh.f32 %v2087_v50  ;;  %v5125_v22 = vpop.eup %5124 }
 0x25d   : > { %v1428_v40 = vpop.f32.mrf.mxu2  ;;  %v1300_v41 = vpop.f32.mrf.mxu0  ;;  %v3158_v2 = vmul.f32 %v2838_v11, %v6840_v44  ;;  %v2840_v10 = vmul.f32 0.5, %v2520_v27  ;;  %5134 = vtanh.f32 %v1898_v31  ;;  %v2717_v42 = vadd.f32 1.0, %v5125_v22 }
 0x25e   : > { %v6902_v4 = vadd.f32 %v1428_v40, %v6773_v21  ;;  %v1517_v56 = vpop.f32.mrf.mxu3  ;;  %v5127_v39 = vpop.eup %5126  ;;  %v3159_v63 = vmul.f32 %v2839_v37, %v6844_v60  ;;  %v6909_v54 = vadd.f32 %v1300_v41, %v6274_v26 }
 0x25f   : > { %v6906_v38 = vadd.f32 %v1517_v56, %v6787_v25  ;;  %v1341_v13 = vpop.f32.mrf.mxu1  ;;  %v3605_v7 = vadd.f32 %v6853_v9, %v3158_v2  ;;  %v3160_v44 = vmul.f32 %v2840_v10, %v6847_v14  ;;  %v2528_v46 = vadd.f32 1.0, %v5127_v39 }
 0x260   : > { %v1899_v62 = vmul.f32 0.5, %v6902_v4  ;;  %4650 = vmatmul.msk.bf16.gmra.mxu0 %vm458_vm0, %v5877_v0  ;;  %v5129_v34 = vpop.eup %5128  ;;  %v3642_v60 = vadd.f32 %v3641_v59, %v3159_v63  ;;  %v3037_v36 = vmul.f32 0.5, %v2717_v42  ;;  %v2097_v12 = vmul.f32 0.5, %v6909_v54 }
 0x261   : > { %v1900_v33 = vmul.f32 0.5, %v6906_v38  ;;  %v5131_v48 = vpop.eup %5130  ;;  %v3679_v58 = vadd.f32 %v3678_v61, %v3160_v44  ;;  %v2848_v43 = vmul.f32 0.5, %v2528_v46  ;;  %v2529_v50 = vadd.f32 1.0, %v5129_v34 }
 0x262   : > { %5136 = vtanh.f32 %v1899_v62  ;;  %v5133_v9 = vpop.eup %5132  ;;  %v3357_v14 = vmul.f32 %v3037_v36, %v6858_v20  ;;  %v2530_v31 = vadd.f32 1.0, %v5131_v48  ;;  %v6920_v11 = vadd.f32 %v1341_v13, %v6759_v29 }
 0x263   : > { %5138 = vtanh.f32 %v1900_v33  ;;  %v5135_v27 = vpop.eup %5134  ;;  %v3168_v59 = vmul.f32 %v2848_v43, %v6862_v45  ;;  %v2849_v37 = vmul.f32 0.5, %v2529_v50  ;;  %v2727_v40 = vadd.f32 1.0, %v5133_v9  ;;  %v4488_v50 = vld [vmem:[%s7991_s3 + $0x20] sm:$0xf] }
 0x264   : > { %5140 = vtanh.f32 %v2097_v12  ;;  %v3588_v41 = vadd.f32 %v3587_v57, %v3357_v14  ;;  %v2850_v22 = vmul.f32 0.5, %v2530_v31  ;;  %v2538_v61 = vadd.f32 1.0, %v5135_v27 }
 0x265   : > { %v1908_v2 = vmul.f32 0.5, %v6920_v11  ;;  %v1430_v10 = vpop.f32.mrf.mxu2  ;;  %v1302_v56 = vpop.f32.mrf.mxu0  ;;  %v3606_v39 = vadd.f32 %v3605_v7, %v3168_v59  ;;  %v3169_v20 = vmul.f32 %v2849_v37, %v6872_v18  ;;  %v3047_v63 = vmul.f32 0.5, %v2727_v40 }
 0x266   : > { %v6926_v42 = vadd.f32 %v1430_v10, %v6773_v21  ;;  %v1519_v13 = vpop.f32.mrf.mxu3  ;;  %v3170_v45 = vmul.f32 %v2850_v22, %v6881_v52  ;;  %v2858_v44 = vmul.f32 0.5, %v2538_v61  ;;  %v6935_v18 = vadd.f32 %v1302_v56, %v6274_v26 }
 0x267   : > { %5142 = vtanh.f32 %v1908_v2  ;;  %v6930_v57 = vadd.f32 %v1519_v13, %v6787_v25  ;;  %v1344_v46 = vpop.f32.mrf.mxu1  ;;  %v3643_v34 = vadd.f32 %v3642_v60, %v3169_v20  ;;  %v3367_v36 = vmul.f32 %v3047_v63, %v6885_v15  ;;  %v4725_v15 = vld [vmem:[%s7991_s3 + $0x44] sm:$0xf0] }
 0x268   : > { %v5137_v62 = vpop.eup %5136  ;;  %v1909_v7 = vmul.f32 0.5, %v6926_v42  ;;  %v3680_v12 = vadd.f32 %v3679_v58, %v3170_v45  ;;  %v3178_v48 = vmul.f32 %v2858_v44, %v6888_v3  ;;  %v2107_v31 = vmul.f32 0.5, %v6935_v18 }
 0x269   : > { %v5139_v33 = vpop.eup %5138  ;;  %v2539_v52 = vadd.f32 1.0, %v5137_v62  ;;  %v1910_v43 = vmul.f32 0.5, %v6930_v57  ;;  %v3589_v9 = vadd.f32 %v3588_v41, %v3367_v36  ;;  %v6953_v37 = vadd.f32 %v1344_v46, %v6759_v29 }
 0x26a   : > { %v5141_v60 = vpop.eup %5140  ;;  %v2540_v14 = vadd.f32 1.0, %v5139_v33  ;;  %5144 = vtanh.f32 %v1909_v7  ;;  %4609 = vmatmul.msk.bf16.gmra.mxu1 %vm458_vm0, %v6103_v55  ;;  %4625 = vmatmul.msk.bf16.gmra.mxu2 %vm458_vm0, %v6103_v55  ;;  %v3607_v3 = vadd.f32 %v3606_v39, %v3178_v48  ;;  %v4489_v40 = vor.u32 %v4725_v15, %v4488_v50 }
 0x26b   : > { %v2859_v58 = vmul.f32 0.5, %v2539_v52  ;;  %v2737_v27 = vadd.f32 1.0, %v5141_v60  ;;  %5146 = vtanh.f32 %v1910_v43  ;;  %4641 = vmatmul.msk.bf16.gmra.mxu3 %vm458_vm0, %v6103_v55  ;;  %v1918_v20 = vmul.f32 0.5, %v6953_v37 }
 0x26c   : > { %v2860_v59 = vmul.f32 0.5, %v2540_v14  ;;  %5148 = vtanh.f32 %v2107_v31  ;;  %1683 = vmatpush.bf16.msra.mxu1 %v4489_v40 }
 0x26d   : > { %v5143_v41 = vpop.eup %5142  ;;  %v3179_v22 = vmul.f32 %v2859_v58, %v6902_v4  ;;  %v3057_v61 = vmul.f32 0.5, %v2737_v27  ;;  %v1433_v2 = vpop.f32.mrf.mxu2  ;;  %5150 = vtanh.f32 %v1918_v20 }
 0x26e   : > { %v1305_v10 = vpop.f32.mrf.mxu0  ;;  %v3180_v56 = vmul.f32 %v2860_v59, %v6906_v38  ;;  %v2548_v39 = vadd.f32 1.0, %v5143_v41  ;;  %v6959_v63 = vadd.f32 %v1433_v2, %v6773_v21  ;;  %v1522_v13 = vpop.f32.mrf.mxu3 }
 0x26f   : > { %v3644_v45 = vadd.f32 %v3643_v34, %v3179_v22  ;;  %v3377_v44 = vmul.f32 %v3057_v61, %v6909_v54  ;;  %v6963_v46 = vadd.f32 %v1522_v13, %v6787_v25  ;;  %v6966_v4 = vadd.f32 %v1305_v10, %v6274_v26  ;;  %v1346_v62 = vpop.f32.mrf.mxu1 }
 0x270   : > { %v5145_v36 = vpop.eup %5144  ;;  %v3681_v38 = vadd.f32 %v3680_v12, %v3180_v56  ;;  %v2868_v7 = vmul.f32 0.5, %v2548_v39  ;;  %v1919_v33 = vmul.f32 0.5, %v6959_v63  ;;  %4651 = vmatmul.msk.bf16.gmra.mxu0 %vm458_vm0, %v5889_v17  ;;  %v6975_v12 = vadd.f32 %v1346_v62, %v6759_v29 }
 0x271   : > { %v5147_v48 = vpop.eup %5146  ;;  %v3590_v34 = vadd.f32 %v3589_v9, %v3377_v44  ;;  %v2549_v52 = vadd.f32 1.0, %v5145_v36  ;;  %v1920_v54 = vmul.f32 0.5, %v6963_v46  ;;  %v2117_v43 = vmul.f32 0.5, %v6966_v4 }
 0x272   : > { %v5149_v50 = vpop.eup %5148  ;;  %v3188_v15 = vmul.f32 %v2868_v7, %v6920_v11  ;;  %v2550_v60 = vadd.f32 1.0, %v5147_v48  ;;  %5152 = vtanh.f32 %v1919_v33  ;;  %v1928_v9 = vmul.f32 0.5, %v6975_v12 }
 0x273   : > { %v2869_v14 = vmul.f32 0.5, %v2549_v52  ;;  %v2747_v31 = vadd.f32 1.0, %v5149_v50  ;;  %5154 = vtanh.f32 %v1920_v54  ;;  %v5151_v61 = vpop.eup %5150 }
 0x274   : > { %v3608_v58 = vadd.f32 %v3607_v3, %v3188_v15  ;;  %v2870_v27 = vmul.f32 0.5, %v2550_v60  ;;  %5156 = vtanh.f32 %v2117_v43  ;;  %v2558_v20 = vadd.f32 1.0, %v5151_v61 }
 0x275   : > { %v3189_v59 = vmul.f32 %v2869_v14, %v6926_v42  ;;  %v3067_v40 = vmul.f32 0.5, %v2747_v31  ;;  %v1435_v41 = vpop.f32.mrf.mxu2  ;;  %5158 = vtanh.f32 %v1928_v9 }
 0x276   : > { %v1307_v22 = vpop.f32.mrf.mxu0  ;;  %v3190_v11 = vmul.f32 %v2870_v27, %v6930_v57  ;;  %v6981_v2 = vadd.f32 %v1435_v41, %v6773_v21  ;;  %v1524_v10 = vpop.f32.mrf.mxu3  ;;  %v2878_v52 = vmul.f32 0.5, %v2558_v20 }
 0x277   : > { %v6984_v56 = vadd.f32 %v1307_v22, %v6274_v26  ;;  %v3645_v3 = vadd.f32 %v3644_v45, %v3189_v59  ;;  %v3387_v39 = vmul.f32 %v3067_v40, %v6935_v18  ;;  %v6988_v42 = vadd.f32 %v1524_v10, %v6787_v25  ;;  %v1349_v13 = vpop.f32.mrf.mxu1 }
 0x278   : > { %v5153_v44 = vpop.eup %5152  ;;  %v3682_v62 = vadd.f32 %v3681_v38, %v3190_v11  ;;  %v1929_v57 = vmul.f32 0.5, %v6981_v2  ;;  %v6993_v7 = vadd.f32 %v1349_v13, %v6759_v29  ;;  %v3198_v38 = vmul.f32 %v2878_v52, %v6953_v37 }
 0x279   : > { %v2127_v36 = vmul.f32 0.5, %v6984_v56  ;;  %v5155_v33 = vpop.eup %5154  ;;  %v3591_v48 = vadd.f32 %v3590_v34, %v3387_v39  ;;  %v2559_v45 = vadd.f32 1.0, %v5153_v44  ;;  %v1930_v18 = vmul.f32 0.5, %v6988_v42 }
 0x27a   : > { %v5157_v54 = vpop.eup %5156  ;;  %v2560_v43 = vadd.f32 1.0, %v5155_v33  ;;  %5160 = vtanh.f32 %v1929_v57  ;;  %v1938_v50 = vmul.f32 0.5, %v6993_v7  ;;  %4610 = vmatmul.msk.bf16.gmra.mxu1 %vm458_vm0, %v6153_v28  ;;  %4626 = vmatmul.msk.bf16.gmra.mxu2 %vm458_vm0, %v6153_v28  ;;  %v3609_v31 = vadd.f32 %v3608_v58, %v3198_v38 }
 0x27b   : > { %v2879_v15 = vmul.f32 0.5, %v2559_v45  ;;  %v2757_v60 = vadd.f32 1.0, %v5157_v54  ;;  %5162 = vtanh.f32 %v1930_v18  ;;  %4642 = vmatmul.msk.bf16.gmra.mxu3 %vm458_vm0, %v6153_v28  ;;  %v5159_v34 = vpop.eup %5158 }
 0x27c   : > { %v2880_v14 = vmul.f32 0.5, %v2560_v43  ;;  %5164 = vtanh.f32 %v2127_v36  ;;  %v2568_v59 = vadd.f32 1.0, %v5159_v34 }
 0x27d   : > { %v3199_v27 = vmul.f32 %v2879_v15, %v6959_v63  ;;  %v3077_v9 = vmul.f32 0.5, %v2757_v60  ;;  %v1438_v40 = vpop.f32.mrf.mxu2  ;;  %5166 = vtanh.f32 %v1938_v50 }
 0x27e   : > { %v1310_v41 = vpop.f32.mrf.mxu0  ;;  %v3200_v22 = vmul.f32 %v2880_v14, %v6963_v46  ;;  %v7007_v37 = vadd.f32 %v1438_v40, %v6773_v21  ;;  %v1527_v61 = vpop.f32.mrf.mxu3  ;;  %v2888_v58 = vmul.f32 0.5, %v2568_v59 }
 0x27f   : > { %v7010_v11 = vadd.f32 %v1310_v41, %v6274_v26  ;;  %v3646_v10 = vadd.f32 %v3645_v3, %v3199_v27  ;;  %v3397_v39 = vmul.f32 %v3077_v9, %v6966_v4  ;;  %v1351_v20 = vpop.f32.mrf.mxu1  ;;  %v7023_v50 = vadd.f32 %v1527_v61, %v6787_v25 }
 0x280   : > { %v5161_v63 = vpop.eup %5160  ;;  %v3683_v13 = vadd.f32 %v3682_v62, %v3200_v22  ;;  %v1939_v44 = vmul.f32 0.5, %v7007_v37  ;;  %v7016_v46 = vadd.f32 %v1351_v20, %v6759_v29  ;;  %4652 = vmatmul.msk.bf16.gmra.mxu0 %vm458_vm0, %v5901_v35  ;;  %v3208_v3 = vmul.f32 %v2888_v58, %v6975_v12 }
 0x281   : > { %v2137_v57 = vmul.f32 0.5, %v7010_v11  ;;  %v5163_v36 = vpop.eup %5162  ;;  %v3592_v33 = vadd.f32 %v3591_v48, %v3397_v39  ;;  %v2569_v52 = vadd.f32 1.0, %v5161_v63 }
 0x282   : > { %v5165_v4 = vpop.eup %5164  ;;  %v2570_v45 = vadd.f32 1.0, %v5163_v36  ;;  %5168 = vtanh.f32 %v1939_v44  ;;  %v1948_v62 = vmul.f32 0.5, %v7016_v46  ;;  %v3610_v18 = vadd.f32 %v3609_v31, %v3208_v3 }
 0x283   : > { %v2889_v54 = vmul.f32 0.5, %v2569_v52  ;;  %v2767_v43 = vadd.f32 1.0, %v5165_v4  ;;  %v5167_v38 = vpop.eup %5166  ;;  %5170 = vtanh.f32 %v2137_v57 }
 0x284   : > { %v2890_v15 = vmul.f32 0.5, %v2570_v45  ;;  %v2578_v34 = vadd.f32 1.0, %v5167_v38  ;;  %5172 = vtanh.f32 %v1948_v62 }
 0x285   : > { %v3209_v60 = vmul.f32 %v2889_v54, %v6981_v2  ;;  %v3087_v48 = vmul.f32 0.5, %v2767_v43  ;;  %v1440_v12 = vpop.f32.mrf.mxu2  ;;  %v1940_v2 = vmul.f32 0.5, %v7023_v50 }
 0x286   : > { %v1312_v14 = vpop.f32.mrf.mxu0  ;;  %v3210_v27 = vmul.f32 %v2890_v15, %v6988_v42  ;;  %v7028_v9 = vadd.f32 %v1440_v12, %v6773_v21  ;;  %v1529_v31 = vpop.f32.mrf.mxu3  ;;  %v2898_v22 = vmul.f32 0.5, %v2578_v34 }
 0x287   : > { %v7031_v59 = vadd.f32 %v1312_v14, %v6274_v26  ;;  %v3647_v40 = vadd.f32 %v3646_v10, %v3209_v60  ;;  %v3407_v41 = vmul.f32 %v3087_v48, %v6984_v56  ;;  %v1354_v61 = vpop.f32.mrf.mxu1  ;;  %v7044_v56 = vadd.f32 %v1529_v31, %v6787_v25 }
 0x288   : > { %v5169_v39 = vpop.eup %5168  ;;  %v7035_v58 = vadd.f32 %v3683_v13, %v3210_v27  ;;  %v1949_v20 = vmul.f32 0.5, %v7028_v9  ;;  %v7040_v63 = vadd.f32 %v1354_v61, %v6759_v29  ;;  %v3218_v57 = vmul.f32 %v2898_v22, %v6993_v7 }
 0x289   : > { %v2147_v42 = vmul.f32 0.5, %v7031_v59  ;;  %v3593_v44 = vadd.f32 %v3592_v33, %v3407_v41  ;;  %v2579_v10 = vadd.f32 1.0, %v5169_v39  ;;  %v5171_v36 = vpop.eup %5170  ;;  %v3561_v7 = vrot.slane %v6823_v1, 4 }
 0x28a   : > { %5174 = vtanh.f32 %v1949_v20  ;;  %v1958_v3 = vmul.f32 0.5, %v7040_v63  ;;  %4611 = vmatmul.msk.bf16.gmra.mxu1 %vm458_vm0, %v6208_v19  ;;  %4627 = vmatmul.msk.bf16.gmra.mxu2 %vm458_vm0, %v6208_v19  ;;  %v5173_v13 = vpop.eup %5172  ;;  %v3611_v52 = vadd.f32 %v3610_v18, %v3218_v57  ;;  %v2777_v33 = vadd.f32 1.0, %v5171_v36 }
 0x28b   : > { %v2899_v4 = vmul.f32 0.5, %v2579_v10  ;;  %5176 = vtanh.f32 %v1940_v2  ;;  %4643 = vmatmul.msk.bf16.gmra.mxu3 %vm458_vm0, %v6208_v19  ;;  %v2588_v45 = vadd.f32 1.0, %v5173_v13  ;;  %v1950_v43 = vmul.f32 0.5, %v7044_v56 }
 0x28c   : > { %5178 = vtanh.f32 %v2147_v42  ;;  %v3097_v54 = vmul.f32 0.5, %v2777_v33  ;;  %v3562_v41 = vadd.f32 %v3561_v7, %v6823_v1 }
 0x28d   : > { %v3219_v62 = vmul.f32 %v2899_v4, %v7007_v37  ;;  %5180 = vtanh.f32 %v1958_v3  ;;  %v1443_v38 = vpop.f32.mrf.mxu2  ;;  %v2908_v60 = vmul.f32 0.5, %v2588_v45 }
 0x28e   : > { %v1315_v15 = vpop.f32.mrf.mxu0  ;;  %v7057_v18 = vadd.f32 %v1443_v38, %v6773_v21  ;;  %v1532_v48 = vpop.f32.mrf.mxu3  ;;  %v3417_v14 = vmul.f32 %v3097_v54, %v7010_v11  ;;  %5182 = vtanh.f32 %v1950_v43  ;;  %v3563_v13 = vrot.slane %v3562_v41, 2 }
 0x28f   : > { %v7060_v34 = vadd.f32 %v1315_v15, %v6274_v26  ;;  %v3648_v12 = vadd.f32 %v3647_v40, %v3219_v62  ;;  %v7064_v27 = vadd.f32 %v1532_v48, %v6787_v25  ;;  %v1356_v37 = vpop.f32.mrf.mxu1  ;;  %v3228_v22 = vmul.f32 %v2908_v60, %v7016_v46 }
 0x290   : > { %v5175_v31 = vpop.eup %5174  ;;  %v1959_v2 = vmul.f32 0.5, %v7057_v18  ;;  %4653 = vmatmul.msk.bf16.gmra.mxu0 %vm458_vm0, %v5913_v51  ;;  %v3594_v40 = vadd.f32 %v3593_v44, %v3417_v14  ;;  %v7073_v11 = vadd.f32 %v1356_v37, %v6759_v29 }
 0x291   : > { %v2157_v61 = vmul.f32 0.5, %v7060_v34  ;;  %v5177_v39 = vpop.eup %5176  ;;  %v2589_v20 = vadd.f32 1.0, %v5175_v31  ;;  %v3612_v57 = vadd.f32 %v3611_v52, %v3228_v22  ;;  %v1960_v36 = vmul.f32 0.5, %v7064_v27 }
 0x292   : > { %v5179_v42 = vpop.eup %5178  ;;  %5184 = vtanh.f32 %v1959_v2  ;;  %v1968_v3 = vmul.f32 0.5, %v7073_v11  ;;  %v2580_v33 = vadd.f32 1.0, %v5177_v39 }
 0x293   : > { %v5181_v1 = vpop.eup %5180  ;;  %v2909_v10 = vmul.f32 0.5, %v2589_v20  ;;  %v2787_v46 = vadd.f32 1.0, %v5179_v42  ;;  %5186 = vtanh.f32 %v2157_v61 }
 0x294   : > { %v2598_v4 = vadd.f32 1.0, %v5181_v1  ;;  %5188 = vtanh.f32 %v1968_v3  ;;  %v5183_v15 = vpop.eup %5182  ;;  %v2900_v61 = vmul.f32 0.5, %v2580_v33 }
 0x295   : > { %v3229_v44 = vmul.f32 %v2909_v10, %v7028_v9  ;;  %v3107_v7 = vmul.f32 0.5, %v2787_v46  ;;  %v1445_v45 = vpop.f32.mrf.mxu2  ;;  %5190 = vtanh.f32 %v1960_v36  ;;  %v3564_v9 = vadd.f32 %v3563_v13, %v3562_v41 }
 0x296   : > { %v1317_v62 = vpop.f32.mrf.mxu0  ;;  %v2918_v54 = vmul.f32 0.5, %v2598_v4  ;;  %v7079_v52 = vadd.f32 %v1445_v45, %v6773_v21  ;;  %v1534_v43 = vpop.f32.mrf.mxu3  ;;  %v7101_v10 = vperm.slane %v6756_v6, 7  ;;  %v3220_v13 = vmul.f32 %v2900_v61, %v7023_v50 }
 0x297   : > { %v7082_v38 = vadd.f32 %v1317_v62, %v6274_v26  ;;  %v3649_v60 = vadd.f32 %v3648_v12, %v3229_v44  ;;  %v3427_v48 = vmul.f32 %v3107_v7, %v7031_v59  ;;  %v1359_v14 = vpop.f32.mrf.mxu1  ;;  %v7089_v26 = vadd.f32 %v1534_v43, %v6787_v25 }
 0x298   : > { %v5185_v37 = vpop.eup %5184  ;;  %v3238_v31 = vmul.f32 %v2918_v54, %v7040_v63  ;;  %v1969_v22 = vmul.f32 0.5, %v7079_v52  ;;  %v2590_v12 = vadd.f32 1.0, %v5183_v15  ;;  %v7092_v59 = vadd.f32 %v1359_v14, %v6759_v29 }
 0x299   : > { %v2167_v2 = vmul.f32 0.5, %v7082_v38  ;;  %v3595_v39 = vadd.f32 %v3594_v40, %v3427_v48  ;;  %v2599_v20 = vadd.f32 1.0, %v5185_v37  ;;  %v5187_v42 = vpop.eup %5186  ;;  %v1970_v44 = vmul.f32 0.5, %v7089_v26 }
 0x29a   : > { %v3613_v1 = vadd.f32 %v3612_v57, %v3238_v31  ;;  %5192 = vtanh.f32 %v1969_v22  ;;  %4612 = vmatmul.msk.bf16.gmra.mxu1 %vm458_vm0, %v6264_v30  ;;  %4628 = vmatmul.msk.bf16.gmra.mxu2 %vm458_vm0, %v6264_v30  ;;  %v5189_v63 = vpop.eup %5188  ;;  %v2797_v40 = vadd.f32 1.0, %v5187_v42  ;;  %v3565_v57 = vrot.slane %v3564_v9, 1 }
 0x29b   : > { %v2919_v41 = vmul.f32 0.5, %v2599_v20  ;;  %4644 = vmatmul.msk.bf16.gmra.mxu3 %vm458_vm0, %v6264_v30  ;;  %v2608_v46 = vadd.f32 1.0, %v5189_v63  ;;  %5194 = vtanh.f32 %v2167_v2  ;;  %v1978_v36 = vmul.f32 0.5, %v7092_v59  ;;  %v5191_v3 = vpop.eup %5190 }
 0x29c   : > { %v3117_v33 = vmul.f32 0.5, %v2797_v40  ;;  %v2910_v62 = vmul.f32 0.5, %v2590_v12  ;;  %v2600_v31 = vadd.f32 1.0, %v5191_v3  ;;  %v3685_v3 = vadd.f32 %v7035_v58, %v3220_v13 }
 0x29d   : > { %v3239_v4 = vmul.f32 %v2919_v41, %v7057_v18  ;;  %v1448_v7 = vpop.f32.mrf.mxu2  ;;  %v2928_v54 = vmul.f32 0.5, %v2608_v46  ;;  %5196 = vtanh.f32 %v1978_v36  ;;  %v7127_v36 = vadd.f32 %v3565_v57, %v3564_v9 }
 0x29e   : > { %v1596_v45 = vpop.f32.mrf.mxu0  ;;  %v7108_v6 = vadd.f32 %v1448_v7, %v6773_v21  ;;  %v1537_v43 = vpop.f32.mrf.mxu3  ;;  %v3437_v48 = vmul.f32 %v3117_v33, %v7060_v34  ;;  %5198 = vtanh.f32 %v1970_v44 }
 0x29f   : > { %v3650_v15 = vadd.f32 %v3649_v60, %v3239_v4  ;;  %v7112_v14 = vadd.f32 %v1537_v43, %v6787_v25  ;;  %v7115_v50 = vadd.f32 %v1596_v45, %v7101_v10  ;;  %v1361_v18 = vpop.f32.mrf.mxu1  ;;  %v3248_v22 = vmul.f32 %v2928_v54, %v7073_v11 }
 0x2a0   : > { %v5193_v37 = vpop.eup %5192  ;;  %v1979_v2 = vmul.f32 0.5, %v7108_v6  ;;  %v7120_v61 = vadd.f32 %v1361_v18, %v6759_v29  ;;  %4654 = vmatmul.msk.bf16.gmra.mxu0 %vm458_vm0, %v5933_v8  ;;  %v3596_v34 = vadd.f32 %v3595_v39, %v3437_v48  ;;  %v2920_v4 = vmul.f32 0.5, %v2600_v31 }
 0x2a1   : > { %v2609_v60 = vadd.f32 1.0, %v5193_v37  ;;  %v1980_v20 = vmul.f32 0.5, %v7112_v14  ;;  %v5195_v42 = vpop.eup %5194  ;;  %v3614_v12 = vadd.f32 %v3613_v1, %v3248_v22  ;;  %v1861_v63 = vmul.f32 0.5, %v7115_v50 }
 0x2a2   : > { %5200 = vtanh.f32 %v1979_v2  ;;  %v1988_v11 = vmul.f32 0.5, %v7120_v61  ;;  %v2807_v40 = vadd.f32 1.0, %v5195_v42  ;;  %v3230_v45 = vmul.f32 %v2910_v62, %v7044_v56 }
 0x2a3   : > { %v2929_v41 = vmul.f32 0.5, %v2609_v60  ;;  %v5197_v46 = vpop.eup %5196  ;;  %5202 = vtanh.f32 %v1980_v20  ;;  %v3240_v56 = vmul.f32 %v2920_v4, %v7064_v27 }
 0x2a4   : > { %v3127_v33 = vmul.f32 0.5, %v2807_v40  ;;  %v2618_v44 = vadd.f32 1.0, %v5197_v46  ;;  %5204 = vtanh.f32 %v1988_v11  ;;  %v5199_v58 = vpop.eup %5198  ;;  %v3686_v11 = vadd.f32 %v3685_v3, %v3230_v45 }
 0x2a5   : > { %v3249_v39 = vmul.f32 %v2929_v41, %v7079_v52  ;;  %v1450_v1 = vpop.f32.mrf.mxu2  ;;  %5206 = vtanh.f32 %v1861_v63  ;;  %v2610_v42 = vadd.f32 1.0, %v5199_v58  ;;  %v3837_v46 = vrot.slane %v7127_v36, 6 }
 0x2a6   : > { %v1598_v7 = vpop.f32.mrf.mxu0  ;;  %v7133_v54 = vadd.f32 %v1450_v1, %v6773_v21  ;;  %v1539_v43 = vpop.f32.mrf.mxu3  ;;  %v3447_v13 = vmul.f32 %v3127_v33, %v7082_v38  ;;  %v2938_v52 = vmul.f32 0.5, %v2618_v44 }
 0x2a7   : > { %v7136_v9 = vadd.f32 %v1598_v7, %v7101_v10  ;;  %v3651_v57 = vadd.f32 %v3650_v15, %v3249_v39  ;;  %v7140_v48 = vadd.f32 %v1539_v43, %v6787_v25  ;;  %v1364_v18 = vpop.f32.mrf.mxu1  ;;  %v7158_v39 = vadd.f32 %v3686_v11, %v3240_v56 }
 0x2a8   : > { %v5201_v37 = vpop.eup %5200  ;;  %v1989_v62 = vmul.f32 0.5, %v7133_v54  ;;  %v7146_v22 = vadd.f32 %v1364_v18, %v6759_v29  ;;  %v3597_v2 = vadd.f32 %v3596_v34, %v3447_v13  ;;  %v3258_v15 = vmul.f32 %v2938_v52, %v7092_v59 }
 0x2a9   : > { %v1871_v31 = vmul.f32 0.5, %v7136_v9  ;;  %v2619_v60 = vadd.f32 1.0, %v5201_v37  ;;  %v1990_v38 = vmul.f32 0.5, %v7140_v48  ;;  %v5203_v20 = vpop.eup %5202  ;;  %v2930_v3 = vmul.f32 0.5, %v2610_v42 }
 0x2aa   : > { %5208 = vtanh.f32 %v1989_v62  ;;  %v1998_v63 = vmul.f32 0.5, %v7146_v22  ;;  %4613 = vmatmul.msk.bf16.gmra.mxu1 %vm458_vm0, %v6317_v16  ;;  %4629 = vmatmul.msk.bf16.gmra.mxu2 %vm458_vm0, %v6317_v16  ;;  %v5205_v27 = vpop.eup %5204  ;;  %v3598_v41 = vrot.slane %v3597_v2, 4  ;;  %v3615_v34 = vadd.f32 %v3614_v12, %v3258_v15 }
 0x2ab   : > { %v2939_v40 = vmul.f32 0.5, %v2619_v60  ;;  %4645 = vmatmul.msk.bf16.gmra.mxu3 %vm458_vm0, %v6317_v16  ;;  %v5207_v59 = vpop.eup %5206  ;;  %v2628_v4 = vadd.f32 1.0, %v5205_v27  ;;  %5210 = vtanh.f32 %v1990_v38  ;;  %v2620_v56 = vadd.f32 1.0, %v5203_v20 }
 0x2ac   : > { %v3599_v33 = vadd.f32 %v3598_v41, %v3597_v2  ;;  %5212 = vtanh.f32 %v1871_v31  ;;  %v2501_v52 = vadd.f32 1.0, %v5207_v59  ;;  %v3250_v20 = vmul.f32 %v2930_v3, %v7089_v26 }
 0x2ad   : > { %v3259_v44 = vmul.f32 %v2939_v40, %v7108_v6  ;;  %v1453_v1 = vpop.f32.mrf.mxu2  ;;  %v2948_v12 = vmul.f32 0.5, %v2628_v4  ;;  %5214 = vtanh.f32 %v1998_v63  ;;  %v2940_v4 = vmul.f32 0.5, %v2620_v56 }
 0x2ae   : > { %v1601_v7 = vpop.f32.mrf.mxu0  ;;  %v7162_v45 = vadd.f32 %v1453_v1, %v6773_v21  ;;  %v1542_v43 = vpop.f32.mrf.mxu3  ;;  %v3600_v58 = vrot.slane %v3599_v33, 2  ;;  %v2821_v41 = vmul.f32 0.5, %v2501_v52 }
 0x2af   : > { %v3652_v13 = vadd.f32 %v3651_v57, %v3259_v44  ;;  %v7165_v18 = vadd.f32 %v1542_v43, %v6787_v25  ;;  %v1366_v37 = vpop.f32.mrf.mxu1  ;;  %v3268_v62 = vmul.f32 %v2948_v12, %v7120_v61  ;;  %v7170_v2 = vadd.f32 %v1601_v7, %v7101_v10 }
 0x2b0   : > { %v5209_v6 = vpop.eup %5208  ;;  %v1999_v31 = vmul.f32 0.5, %v7162_v45  ;;  %4655 = vmatmul.msk.bf16.gmra.mxu0 %vm458_vm0, %v5975_v49  ;;  %v3601_v15 = vadd.f32 %v3600_v58, %v3599_v33  ;;  %v7176_v38 = vadd.f32 %v1366_v37, %v6759_v29  ;;  %v3141_v56 = vmul.f32 %v2821_v41, %v7115_v50 }
 0x2b1   : > { %v2629_v60 = vadd.f32 1.0, %v5209_v6  ;;  %v2000_v57 = vmul.f32 0.5, %v7165_v18  ;;  %v5211_v42 = vpop.eup %5210  ;;  %v3616_v63 = vadd.f32 %v3615_v34, %v3268_v62  ;;  %v1881_v61 = vmul.f32 0.5, %v7170_v2 }
 0x2b2   : > { %5216 = vtanh.f32 %v1999_v31  ;;  %v5213_v27 = vpop.eup %5212  ;;  %v3602_v11 = vrot.slane %v3601_v15, 1  ;;  %v2008_v44 = vmul.f32 0.5, %v7176_v38  ;;  %v2630_v12 = vadd.f32 1.0, %v5211_v42 }
 0x2b3   : > { %v2949_v40 = vmul.f32 0.5, %v2629_v60  ;;  %5218 = vtanh.f32 %v2000_v57  ;;  %v5215_v59 = vpop.eup %5214  ;;  %v2511_v33 = vadd.f32 1.0, %v5213_v27 }
 0x2b4   : > { %5220 = vtanh.f32 %v1881_v61  ;;  %v3603_v1 = vadd.f32 %v3602_v11, %v3601_v15  ;;  %v2638_v26 = vadd.f32 1.0, %v5215_v59  ;;  %v3688_v11 = vadd.f32 %v7158_v39, %v3250_v20 }
 0x2b5   : > { %v3269_v7 = vmul.f32 %v2949_v40, %v7133_v54  ;;  %v1455_v34 = vpop.f32.mrf.mxu2  ;;  %v2831_v43 = vmul.f32 0.5, %v2511_v33  ;;  %5222 = vtanh.f32 %v2008_v44  ;;  %v2950_v59 = vmul.f32 0.5, %v2630_v12 }
 0x2b6   : > { %v1603_v3 = vpop.f32.mrf.mxu0  ;;  %v7183_v58 = vadd.f32 %v1455_v34, %v6773_v21  ;;  %v1544_v52 = vpop.f32.mrf.mxu3  ;;  %v3838_v6 = vrot.slane %v3603_v1, 5  ;;  %v2958_v31 = vmul.f32 0.5, %v2638_v26  ;;  %v3260_v44 = vmul.f32 %v2940_v4, %v7112_v14 }
 0x2b7   : > { %v7186_v37 = vadd.f32 %v1603_v3, %v7101_v10  ;;  %v3653_v62 = vadd.f32 %v3652_v13, %v3269_v7  ;;  %v1369_v15 = vpop.f32.mrf.mxu1  ;;  %v3151_v60 = vmul.f32 %v2831_v43, %v7136_v9  ;;  %v7192_v42 = vadd.f32 %v1544_v52, %v6787_v25 }
 0x2b8   : > { %v5217_v54 = vpop.eup %5216  ;;  %v2009_v57 = vmul.f32 0.5, %v7183_v58  ;;  %v3847_v50 = vsel %vm3846_vm2, %v3837_v46, %v3838_v6  ;;  %v3278_v13 = vmul.f32 %v2958_v31, %v7146_v22 }
 0x2b9   : > { %v1891_v61 = vmul.f32 0.5, %v7186_v37  ;;  %v5219_v27 = vpop.eup %5218  ;;  %v2639_v41 = vadd.f32 1.0, %v5217_v54  ;;  %v7202_v9 = vsel %vm3848_vm3, %v6868_v32, %v3847_v50  ;;  %v3715_v33 = vadd.f32 %v3151_v60, %v3141_v56 }
 0x2ba   : > { %v5221_v40 = vpop.eup %5220  ;;  %5224 = vtanh.f32 %v2009_v57  ;;  %4662 = vmatmul.msk.bf16.vlgmr.msra.gmra.mxu1 %vm458_vm0, %v5811_v53  ;;  %4678 = vmatmul.msk.bf16.vlgmr.msra.gmra.mxu2 %vm458_vm0, %v5811_v53  ;;  %v3617_v36 = vadd.f32 %v3616_v63, %v3278_v13  ;;  %v2010_v22 = vmul.f32 0.5, %v7192_v42  ;;  %v2640_v1 = vadd.f32 1.0, %v5219_v27 }
 0x2bb   : > { %v2959_v39 = vmul.f32 0.5, %v2639_v41  ;;  %v2521_v46 = vadd.f32 1.0, %v5221_v40  ;;  %v5223_v20 = vpop.eup %5222  ;;  %5226 = vtanh.f32 %v1891_v61  ;;  %v7211_v32 = vadd.f32 %v1369_v15, %v6759_v29 }
 0x2bc   : > { %v2648_v26 = vadd.f32 1.0, %v5223_v20  ;;  %5228 = vtanh.f32 %v2010_v22  ;;  %v3270_v63 = vmul.f32 %v2950_v59, %v7140_v48  ;;  %v2960_v54 = vmul.f32 0.5, %v2640_v1 }
 0x2bd   : > { %v3279_v7 = vmul.f32 %v2959_v39, %v7162_v45  ;;  %v2841_v12 = vmul.f32 0.5, %v2521_v46  ;;  %v1458_v34 = vpop.f32.mrf.mxu2  ;;  %v2018_v3 = vmul.f32 0.5, %v7211_v32  ;;  %v3689_v50 = vadd.f32 %v3688_v11, %v3260_v44 }
 0x2be   : > { %v1606_v53 = vpop.f32.mrf.mxu0  ;;  %v7217_v43 = vadd.f32 %v1458_v34, %v6773_v21  ;;  %v1547_v14 = vpop.f32.mrf.mxu3  ;;  %v2968_v45 = vmul.f32 0.5, %v2648_v26 }
 0x2bf   : > { %v7220_v4 = vadd.f32 %v1606_v53, %v7101_v10  ;;  %v3654_v52 = vadd.f32 %v3653_v62, %v3279_v7  ;;  %v3161_v6 = vmul.f32 %v2841_v12, %v7170_v2  ;;  %v7224_v56 = vadd.f32 %v1547_v14, %v6787_v25  ;;  %v1371_v31 = vpop.f32.mrf.mxu1 }
 0x2c0   : > { %v5225_v15 = vpop.eup %5224  ;;  %5230 = vtanh.f32 %v2018_v3  ;;  %v2019_v48 = vmul.f32 0.5, %v7217_v43  ;;  %4656 = vmatmul.msk.bf16.gmra.mxu0 %vm458_vm0, %v6035_v23  ;;  %v3288_v62 = vmul.f32 %v2968_v45, %v7176_v38  ;;  %v7233_v13 = vadd.f32 %v1371_v31, %v6759_v29 }
 0x2c1   : > { %v1901_v60 = vmul.f32 0.5, %v7220_v4  ;;  %v3716_v57 = vadd.f32 %v3715_v33, %v3161_v6  ;;  %v2649_v61 = vadd.f32 1.0, %v5225_v15  ;;  %v2020_v2 = vmul.f32 0.5, %v7224_v56  ;;  %v5227_v27 = vpop.eup %5226 }
 0x2c2   : > { %5232 = vtanh.f32 %v2019_v48  ;;  %v5229_v41 = vpop.eup %5228  ;;  %v3618_v40 = vadd.f32 %v3617_v36, %v3288_v62  ;;  %v2531_v39 = vadd.f32 1.0, %v5227_v27  ;;  %v2028_v33 = vmul.f32 0.5, %v7233_v13 }
 0x2c3   : > { %v2969_v59 = vmul.f32 0.5, %v2649_v61  ;;  %5234 = vtanh.f32 %v2020_v2  ;;  %v2650_v46 = vadd.f32 1.0, %v5229_v41  ;;  %v3690_v22 = vadd.f32 %v3689_v50, %v3270_v63 }
 0x2c4   : > { %5236 = vtanh.f32 %v1901_v60  ;;  %v3280_v38 = vmul.f32 %v2960_v54, %v7165_v18  ;;  %v2851_v1 = vmul.f32 0.5, %v2531_v39 }
 0x2c5   : > { %v3289_v20 = vmul.f32 %v2969_v59, %v7183_v58  ;;  %v1460_v11 = vpop.f32.mrf.mxu2  ;;  %v2970_v12 = vmul.f32 0.5, %v2650_v46  ;;  %5238 = vtanh.f32 %v2028_v33 }
 0x2c6   : > { %v1608_v44 = vpop.f32.mrf.mxu0  ;;  %v5231_v7 = vpop.eup %5230  ;;  %v7239_v36 = vadd.f32 %v1460_v11, %v6773_v21  ;;  %v3171_v63 = vmul.f32 %v2851_v1, %v7186_v37  ;;  %v3691_v61 = vadd.f32 %v3690_v22, %v3280_v38 }
 0x2c7   : > { %v1549_v26 = vpop.f32.mrf.mxu3  ;;  %v7242_v34 = vadd.f32 %v1608_v44, %v7101_v10  ;;  %v3655_v53 = vadd.f32 %v3654_v52, %v3289_v20  ;;  %v2658_v3 = vadd.f32 1.0, %v5231_v7  ;;  %v1374_v58 = vpop.f32.mrf.mxu1  ;;  %v3290_v6 = vmul.f32 %v2970_v12, %v7192_v42 }
 0x2c8   : > { %v7246_v18 = vadd.f32 %v1549_v26, %v6787_v25  ;;  %v5233_v14 = vpop.eup %5232  ;;  %v2029_v45 = vmul.f32 0.5, %v7239_v36  ;;  %v7252_v15 = vadd.f32 %v1374_v58, %v6759_v29  ;;  %v3717_v48 = vadd.f32 %v3716_v57, %v3171_v63 }
 0x2c9   : > { %v1911_v31 = vmul.f32 0.5, %v7242_v34  ;;  %v5235_v54 = vpop.eup %5234  ;;  %v2978_v52 = vmul.f32 0.5, %v2658_v3  ;;  %v2659_v60 = vadd.f32 1.0, %v5233_v14  ;;  %v3692_v59 = vadd.f32 %v3691_v61, %v3290_v6 }
 0x2ca   : > { %v2030_v37 = vmul.f32 0.5, %v7246_v18  ;;  %v5237_v62 = vpop.eup %5236  ;;  %v2660_v2 = vadd.f32 1.0, %v5235_v54  ;;  %5240 = vtanh.f32 %v2029_v45  ;;  %v2038_v27 = vmul.f32 0.5, %v7252_v15  ;;  %4663 = vmatmul.msk.bf16.gmra.mxu1 %vm458_vm0, %v5823_v5  ;;  %4679 = vmatmul.msk.bf16.gmra.mxu2 %vm458_vm0, %v5823_v5 }
 0x2cb   : > { %v3298_v42 = vmul.f32 %v2978_v52, %v7211_v32  ;;  %v2979_v50 = vmul.f32 0.5, %v2659_v60  ;;  %v2541_v57 = vadd.f32 1.0, %v5237_v62  ;;  %v5239_v41 = vpop.eup %5238 }
 0x2cc   : > { %5242 = vtanh.f32 %v2030_v37  ;;  %v2980_v39 = vmul.f32 0.5, %v2660_v2  ;;  %v2668_v38 = vadd.f32 1.0, %v5239_v41 }
 0x2cd   : > { %5244 = vtanh.f32 %v1911_v31  ;;  %v3619_v46 = vadd.f32 %v3618_v40, %v3298_v42  ;;  %v3299_v33 = vmul.f32 %v2979_v50, %v7217_v43  ;;  %v2861_v22 = vmul.f32 0.5, %v2541_v57  ;;  %v1463_v20 = vpop.f32.mrf.mxu2 }
 0x2ce   : > { %v1611_v1 = vpop.f32.mrf.mxu0  ;;  %v3300_v11 = vmul.f32 %v2980_v39, %v7224_v56  ;;  %5246 = vtanh.f32 %v2038_v27  ;;  %v7264_v5 = vadd.f32 %v1463_v20, %v6773_v21  ;;  %v2988_v40 = vmul.f32 0.5, %v2668_v38 }
 0x2cf   : > { %v1552_v32 = vpop.f32.mrf.mxu3  ;;  %v7267_v44 = vadd.f32 %v1611_v1, %v7101_v10  ;;  %v3656_v7 = vadd.f32 %v3655_v53, %v3299_v33  ;;  %v3181_v12 = vmul.f32 %v2861_v22, %v7220_v4  ;;  %v1376_v26 = vpop.f32.mrf.mxu1 }
 0x2d0   : > { %v7271_v43 = vadd.f32 %v1552_v32, %v6787_v25  ;;  %v5241_v63 = vpop.eup %5240  ;;  %v3693_v3 = vadd.f32 %v3692_v59, %v3300_v11  ;;  %v2039_v56 = vmul.f32 0.5, %v7264_v5  ;;  %v7276_v14 = vadd.f32 %v1376_v26, %v6759_v29  ;;  %4657 = vmatmul.msk.bf16.gmra.mxu0 %vm458_vm0, %v6103_v55 }
 0x2d1   : > { %v1921_v58 = vmul.f32 0.5, %v7267_v44  ;;  %v3718_v6 = vadd.f32 %v3717_v48, %v3181_v12  ;;  %v3308_v4 = vmul.f32 %v2988_v40, %v7233_v13  ;;  %v2669_v45 = vadd.f32 1.0, %v5241_v63 }
 0x2d2   : > { %v5243_v53 = vpop.eup %5242  ;;  %v2040_v31 = vmul.f32 0.5, %v7271_v43  ;;  %5248 = vtanh.f32 %v2039_v56  ;;  %v2048_v60 = vmul.f32 0.5, %v7276_v14 }
 0x2d3   : > { %v5245_v54 = vpop.eup %5244  ;;  %v2670_v52 = vadd.f32 1.0, %v5243_v53  ;;  %v3620_v37 = vadd.f32 %v3619_v46, %v3308_v4  ;;  %v2989_v62 = vmul.f32 0.5, %v2669_v45 }
 0x2d4   : > { %v2551_v61 = vadd.f32 1.0, %v5245_v54  ;;  %5250 = vtanh.f32 %v2040_v31  ;;  %v5247_v2 = vpop.eup %5246 }
 0x2d5   : > { %v2990_v27 = vmul.f32 0.5, %v2670_v52  ;;  %5252 = vtanh.f32 %v1921_v58  ;;  %v3309_v42 = vmul.f32 %v2989_v62, %v7239_v36  ;;  %v2678_v50 = vadd.f32 1.0, %v5247_v2  ;;  %v1465_v13 = vpop.f32.mrf.mxu2 }
 0x2d6   : > { %v2871_v48 = vmul.f32 0.5, %v2551_v61  ;;  %5254 = vtanh.f32 %v2048_v60  ;;  %v1613_v57 = vpop.f32.mrf.mxu0  ;;  %v7286_v59 = vadd.f32 %v1465_v13, %v6773_v21 }
 0x2d7   : > { %v3310_v41 = vmul.f32 %v2990_v27, %v7246_v18  ;;  %v1554_v39 = vpop.f32.mrf.mxu3  ;;  %v7289_v46 = vadd.f32 %v1613_v57, %v7101_v10  ;;  %v3657_v33 = vadd.f32 %v3656_v7, %v3309_v42  ;;  %v2998_v38 = vmul.f32 0.5, %v2678_v50  ;;  %v1379_v20 = vpop.f32.mrf.mxu1 }
 0x2d8   : > { %v3191_v22 = vmul.f32 %v2871_v48, %v7242_v34  ;;  %v7293_v36 = vadd.f32 %v1554_v39, %v6787_v25  ;;  %v5249_v1 = vpop.eup %5248  ;;  %v2049_v32 = vmul.f32 0.5, %v7286_v59  ;;  %v7298_v12 = vadd.f32 %v1379_v20, %v6759_v29 }
 0x2d9   : > { %v3694_v11 = vadd.f32 %v3693_v3, %v3310_v41  ;;  %v1931_v18 = vmul.f32 0.5, %v7289_v46  ;;  %v3318_v7 = vmul.f32 %v2998_v38, %v7252_v15  ;;  %v2679_v63 = vadd.f32 1.0, %v5249_v1 }
 0x2da   : > { %v5251_v40 = vpop.eup %5250  ;;  %v3719_v26 = vadd.f32 %v3718_v6, %v3191_v22  ;;  %v2050_v34 = vmul.f32 0.5, %v7293_v36  ;;  %5256 = vtanh.f32 %v2049_v32  ;;  %v2058_v53 = vmul.f32 0.5, %v7298_v12  ;;  %4664 = vmatmul.msk.bf16.gmra.mxu1 %vm458_vm0, %v5841_v24  ;;  %4680 = vmatmul.msk.bf16.gmra.mxu2 %vm458_vm0, %v5841_v24 }
 0x2db   : > { %v5253_v56 = vpop.eup %5252  ;;  %v2680_v58 = vadd.f32 1.0, %v5251_v40  ;;  %v3621_v4 = vadd.f32 %v3620_v37, %v3318_v7  ;;  %v2999_v45 = vmul.f32 0.5, %v2679_v63 }
 0x2dc   : > { %v5255_v3 = vpop.eup %5254  ;;  %v2561_v6 = vadd.f32 1.0, %v5253_v56  ;;  %5258 = vtanh.f32 %v2050_v34 }
 0x2dd   : > { %v3000_v15 = vmul.f32 0.5, %v2680_v58  ;;  %v2688_v31 = vadd.f32 1.0, %v5255_v3  ;;  %5260 = vtanh.f32 %v1931_v18  ;;  %v3319_v54 = vmul.f32 %v2999_v45, %v7264_v5  ;;  %v1468_v60 = vpop.f32.mrf.mxu2 }
 0x2de   : > { %v2881_v52 = vmul.f32 0.5, %v2561_v6  ;;  %5262 = vtanh.f32 %v2058_v53  ;;  %v1616_v62 = vpop.f32.mrf.mxu0  ;;  %v7310_v27 = vadd.f32 %v1468_v60, %v6773_v21 }
 0x2df   : > { %v3320_v61 = vmul.f32 %v3000_v15, %v7271_v43  ;;  %v3008_v2 = vmul.f32 0.5, %v2688_v31  ;;  %v1557_v24 = vpop.f32.mrf.mxu3  ;;  %v7313_v37 = vadd.f32 %v1616_v62, %v7101_v10  ;;  %v3658_v42 = vadd.f32 %v3657_v33, %v3319_v54  ;;  %v1381_v5 = vpop.f32.mrf.mxu1 }
 0x2e0   : > { %v3201_v48 = vmul.f32 %v2881_v52, %v7267_v44  ;;  %v7317_v50 = vadd.f32 %v1557_v24, %v6787_v25  ;;  %v5257_v13 = vpop.eup %5256  ;;  %v2059_v43 = vmul.f32 0.5, %v7310_v27  ;;  %4658 = vmatmul.msk.bf16.gmra.mxu0 %vm458_vm0, %v6153_v28  ;;  %v1382_v20 = vadd.f32 %v1381_v5, %v6759_v29 }
 0x2e1   : > { %v3695_v57 = vadd.f32 %v3694_v11, %v3320_v61  ;;  %v3328_v41 = vmul.f32 %v3008_v2, %v7276_v14  ;;  %v1941_v39 = vmul.f32 0.5, %v7313_v37  ;;  %v2689_v33 = vadd.f32 1.0, %v5257_v13 }
 0x2e2   : > { %v5259_v22 = vpop.eup %5258  ;;  %v3720_v38 = vadd.f32 %v3719_v26, %v3201_v48  ;;  %v2060_v44 = vmul.f32 0.5, %v7317_v50  ;;  %5264 = vtanh.f32 %v2059_v43  ;;  %v2068_v7 = vmul.f32 0.5, %v1382_v20 }
 0x2e3   : > { %v5261_v1 = vpop.eup %5260  ;;  %v3622_v32 = vadd.f32 %v3621_v4, %v3328_v41  ;;  %v2690_v18 = vadd.f32 1.0, %v5259_v22  ;;  %v3009_v14 = vmul.f32 0.5, %v2689_v33 }
 0x2e4   : > { %v5263_v11 = vpop.eup %5262  ;;  %v2571_v40 = vadd.f32 1.0, %v5261_v1  ;;  %5266 = vtanh.f32 %v2060_v44 }
 0x2e5   : > { %v3010_v63 = vmul.f32 0.5, %v2690_v18  ;;  %v2698_v34 = vadd.f32 1.0, %v5263_v11  ;;  %5268 = vtanh.f32 %v1941_v39  ;;  %v3329_v56 = vmul.f32 %v3009_v14, %v7286_v59  ;;  %v1470_v58 = vpop.f32.mrf.mxu2 }
 0x2e6   : > { %v2891_v26 = vmul.f32 0.5, %v2571_v40  ;;  %5270 = vtanh.f32 %v2068_v7  ;;  %v1618_v53 = vpop.f32.mrf.mxu0  ;;  %v1471_v4 = vadd.f32 %v1470_v58, %v6773_v21 }
 0x2e7   : > { %v3330_v3 = vmul.f32 %v3010_v63, %v7293_v36  ;;  %v3018_v45 = vmul.f32 0.5, %v2698_v34  ;;  %v7330_v6 = vadd.f32 %v1618_v53, %v7101_v10  ;;  %v3659_v15 = vadd.f32 %v3658_v42, %v3329_v56  ;;  %v1384_v54 = vpop.f32.mrf.mxu1 }
 0x2e8   : > { %v3211_v31 = vmul.f32 %v2891_v26, %v7289_v46  ;;  %v5265_v52 = vpop.eup %5264  ;;  %v2069_v62 = vmul.f32 0.5, %v1471_v4  ;;  %v1385_v48 = vadd.f32 %v1384_v54, %v6759_v29 }
 0x2e9   : > { %v3696_v60 = vadd.f32 %v3695_v57, %v3330_v3  ;;  %v3338_v59 = vmul.f32 %v3018_v45, %v7298_v12  ;;  %v1951_v61 = vmul.f32 0.5, %v7330_v6  ;;  %v2699_v36 = vadd.f32 1.0, %v5265_v52 }
 0x2ea   : > { %v5267_v2 = vpop.eup %5266  ;;  %v3721_v24 = vadd.f32 %v3720_v38, %v3211_v31  ;;  %5272 = vtanh.f32 %v2069_v62  ;;  %4665 = vmatmul.msk.bf16.gmra.mxu1 %vm458_vm0, %v5865_v47  ;;  %4681 = vmatmul.msk.bf16.gmra.mxu2 %vm458_vm0, %v5865_v47  ;;  %v2078_v57 = vmul.f32 0.5, %v1385_v48 }
 0x2eb   : > { %v5269_v5 = vpop.eup %5268  ;;  %v3623_v13 = vadd.f32 %v3622_v32, %v3338_v59  ;;  %v2700_v41 = vadd.f32 1.0, %v5267_v2  ;;  %v3019_v12 = vmul.f32 0.5, %v2699_v36  ;;  %5274 = vtanh.f32 %v1951_v61 }
 0x2ec   : > { %v5271_v46 = vpop.eup %5270  ;;  %v2581_v42 = vadd.f32 1.0, %v5269_v5  ;;  %5276 = vtanh.f32 %v2078_v57 }
 0x2ed   : > { %v3020_v43 = vmul.f32 0.5, %v2700_v41  ;;  %v2708_v39 = vadd.f32 1.0, %v5271_v46  ;;  %v3339_v22 = vmul.f32 %v3019_v12, %v7310_v27  ;;  %v1473_v38 = vpop.f32.mrf.mxu2 }
 0x2ee   : > { %v1621_v33 = vpop.f32.mrf.mxu0  ;;  %v1474_v32 = vadd.f32 %v1473_v38, %v6773_v21  ;;  %v2901_v11 = vmul.f32 0.5, %v2581_v42 }
 0x2ef   : > { %v3340_v44 = vmul.f32 %v3020_v43, %v7317_v50  ;;  %v3028_v1 = vmul.f32 0.5, %v2708_v39  ;;  %v1622_v18 = vadd.f32 %v1621_v33, %v7101_v10  ;;  %v3660_v47 = vadd.f32 %v3659_v15, %v3339_v22  ;;  %v1386_v14 = vpop.f32.mrf.mxu1 }
 0x2f0   : > { %v5273_v40 = vpop.eup %5272  ;;  %v2079_v34 = vmul.f32 0.5, %v1474_v32  ;;  %4659 = vmatmul.msk.bf16.gmra.mxu0 %vm458_vm0, %v6208_v19  ;;  %v1387_v50 = vadd.f32 %v1386_v14, %v6759_v29  ;;  %v3221_v3 = vmul.f32 %v2901_v11, %v7313_v37 }
 0x2f1   : > { %v7344_v7 = vadd.f32 %v3696_v60, %v3340_v44  ;;  %v3348_v63 = vmul.f32 %v3028_v1, %v1382_v20  ;;  %v1961_v56 = vmul.f32 0.5, %v1622_v18  ;;  %v2709_v27 = vadd.f32 1.0, %v5273_v40  ;;  %v5275_v26 = vpop.eup %5274 }
 0x2f2   : > { %5278 = vtanh.f32 %v2079_v34  ;;  %v5277_v53 = vpop.eup %5276  ;;  %v2591_v15 = vadd.f32 1.0, %v5275_v26  ;;  %v2088_v31 = vmul.f32 0.5, %v1387_v50  ;;  %v3722_v36 = vadd.f32 %v3721_v24, %v3221_v3 }
 0x2f3   : > { %v3624_v58 = vadd.f32 %v3623_v13, %v3348_v63  ;;  %v3029_v45 = vmul.f32 0.5, %v2709_v27  ;;  %v2718_v54 = vadd.f32 1.0, %v5277_v53  ;;  %5280 = vtanh.f32 %v1961_v56 }
 0x2f4   : > { %v2911_v52 = vmul.f32 0.5, %v2591_v15  ;;  %5282 = vtanh.f32 %v2088_v31 }
 0x2f5   : > { %v3349_v20 = vmul.f32 %v3029_v45, %v1471_v4  ;;  %v1475_v60 = vpop.f32.mrf.mxu2  ;;  %v3038_v62 = vmul.f32 0.5, %v2718_v54 }
 0x2f6   : > { %v1623_v59 = vpop.f32.mrf.mxu0  ;;  %v1476_v61 = vadd.f32 %v1475_v60, %v6773_v21  ;;  %v3231_v13 = vmul.f32 %v2911_v52, %v7330_v6 }
 0x2f7   : > { %v1624_v2 = vadd.f32 %v1623_v59, %v7101_v10  ;;  %v3661_v5 = vadd.f32 %v3660_v47, %v3349_v20  ;;  %v1389_v37 = vpop.f32.mrf.mxu1  ;;  %v3358_v46 = vmul.f32 %v3038_v62, %v1385_v48 }
 0x2f8   : > { %v5279_v41 = vpop.eup %5278  ;;  %v2089_v12 = vmul.f32 0.5, %v1476_v61  ;;  %v3723_v57 = vadd.f32 %v3722_v36, %v3231_v13  ;;  %v1390_v43 = vadd.f32 %v1389_v37, %v6759_v29 }
 0x2f9   : > { %v1971_v42 = vmul.f32 0.5, %v1624_v2  ;;  %v2719_v4 = vadd.f32 1.0, %v5279_v41  ;;  %v5281_v39 = vpop.eup %5280  ;;  %v3625_v22 = vadd.f32 %v3624_v58, %v3358_v46 }
 0x2fa   : > { %5284 = vtanh.f32 %v2089_v12  ;;  %4666 = vmatmul.msk.bf16.gmra.mxu1 %vm458_vm0, %v5877_v0  ;;  %4682 = vmatmul.msk.bf16.gmra.mxu2 %vm458_vm0, %v5877_v0  ;;  %v5283_v24 = vpop.eup %5282  ;;  %v2601_v38 = vadd.f32 1.0, %v5281_v39  ;;  %v2098_v33 = vmul.f32 0.5, %v1390_v43 }
 0x2fb   : > { %v3039_v6 = vmul.f32 0.5, %v2719_v4  ;;  %v2728_v48 = vadd.f32 1.0, %v5283_v24  ;;  %5286 = vtanh.f32 %v1971_v42 }
 0x2fc   : > { %v2921_v1 = vmul.f32 0.5, %v2601_v38  ;;  %5288 = vtanh.f32 %v2098_v33 }
 0x2fd   : > { %v3359_v44 = vmul.f32 %v3039_v6, %v1474_v32  ;;  %v1478_v47 = vpop.f32.mrf.mxu2  ;;  %v3048_v14 = vmul.f32 0.5, %v2728_v48 }
 0x2fe   : > { %v1626_v11 = vpop.f32.mrf.mxu0  ;;  %v1479_v40 = vadd.f32 %v1478_v47, %v6773_v21  ;;  %v3241_v56 = vmul.f32 %v2921_v1, %v1622_v18 }
 0x2ff   : > { %v1627_v63 = vadd.f32 %v1626_v11, %v7101_v10  ;;  %v3662_v34 = vadd.f32 %v3661_v5, %v3359_v44  ;;  %v1391_v27 = vpop.f32.mrf.mxu1  ;;  %v3368_v26 = vmul.f32 %v3048_v14, %v1387_v50 }
 0x300   : > { %v5285_v0 = vpop.eup %5284  ;;  %v2099_v58 = vmul.f32 0.5, %v1479_v40  ;;  %4660 = vmatmul.msk.bf16.gmra.mxu0 %vm458_vm0, %v6264_v30  ;;  %v3724_v32 = vadd.f32 %v3723_v57, %v3241_v56  ;;  %v1392_v45 = vadd.f32 %v1391_v27, %v6759_v29  ;;  %v7367_v57 = vpop.f32.mrf.mxu3 }
 0x301   : > { %v1981_v53 = vmul.f32 0.5, %v1627_v63  ;;  %v2729_v3 = vadd.f32 1.0, %v5285_v0  ;;  %v5287_v15 = vpop.eup %5286  ;;  %v3626_v31 = vadd.f32 %v3625_v22, %v3368_v26 }
 0x302   : > { %5290 = vtanh.f32 %v2099_v58  ;;  %v5289_v54 = vpop.eup %5288  ;;  %v2611_v52 = vadd.f32 1.0, %v5287_v15  ;;  %v2108_v60 = vmul.f32 0.5, %v1392_v45 }
 0x303   : > { %v3049_v20 = vmul.f32 0.5, %v2729_v3  ;;  %v2738_v18 = vadd.f32 1.0, %v5289_v54  ;;  %5292 = vtanh.f32 %v1981_v53 }
 0x304   : > { %v2931_v50 = vmul.f32 0.5, %v2611_v52  ;;  %5294 = vtanh.f32 %v2108_v60 }
 0x305   : > { %v3369_v59 = vmul.f32 %v3049_v20, %v1476_v61  ;;  %v1480_v62 = vpop.f32.mrf.mxu2  ;;  %v3058_v5 = vmul.f32 0.5, %v2738_v18 }
 0x306   : > { %v1628_v36 = vpop.f32.mrf.mxu0  ;;  %v1481_v13 = vadd.f32 %v1480_v62, %v6773_v21  ;;  %v3251_v46 = vmul.f32 %v2931_v50, %v1624_v2  ;;  %v3891_v2 = vld [vmem:[#allocation3 + $0x78] sm:$0xff] }
 0x307   : > { %v7365_v37 = vadd.f32 %v1628_v36, %v7101_v10  ;;  %v3663_v41 = vadd.f32 %v3662_v34, %v3369_v59  ;;  %v1394_v12 = vpop.f32.mrf.mxu1  ;;  %v3378_v4 = vmul.f32 %v3058_v5, %v1390_v43  ;;  %4059 = vmatpush.msra.mxu3 %v3891_v2 }
 0x308   : > { %v5291_v42 = vpop.eup %5290  ;;  %v2109_v39 = vmul.f32 0.5, %v1481_v13  ;;  %v3725_v22 = vadd.f32 %v3724_v32, %v3251_v46  ;;  %v1395_v6 = vadd.f32 %v1394_v12, %v6759_v29  ;;  %v7383_v60 = vpop.f32.mrf.mxu3 }
 0x309   : > { %v1991_v61 = vmul.f32 0.5, %v7365_v37  ;;  %v2739_v24 = vadd.f32 1.0, %v5291_v42  ;;  %v5293_v38 = vpop.eup %5292  ;;  %v3627_v33 = vadd.f32 %v3626_v31, %v3378_v4 }
 0x30a   : > { %5296 = vtanh.f32 %v2109_v39  ;;  %4667 = vmatmul.msk.bf16.gmra.mxu1 %vm458_vm0, %v5889_v17  ;;  %4683 = vmatmul.msk.bf16.gmra.mxu2 %vm458_vm0, %v5889_v17  ;;  %v5295_v48 = vpop.eup %5294  ;;  %v2621_v43 = vadd.f32 1.0, %v5293_v38  ;;  %v2118_v1 = vmul.f32 0.5, %v1395_v6 }
 0x30b   : > { %v3059_v44 = vmul.f32 0.5, %v2739_v24  ;;  %v2748_v47 = vadd.f32 1.0, %v5295_v48  ;;  %5298 = vtanh.f32 %v1991_v61 }
 0x30c   : > { %v2941_v14 = vmul.f32 0.5, %v2621_v43  ;;  %5300 = vtanh.f32 %v2118_v1 }
 0x30d   : > { %v3379_v11 = vmul.f32 %v3059_v44, %v1479_v40  ;;  %v1483_v34 = vpop.f32.mrf.mxu2  ;;  %v3068_v27 = vmul.f32 0.5, %v2748_v47  ;;  %v3890_v47 = vld [vmem:[#allocation3 + $0x70] sm:$0xff] }
 0x30e   : > { %v1631_v56 = vpop.f32.mrf.mxu0  ;;  %v1484_v0 = vadd.f32 %v1483_v34, %v6773_v21  ;;  %v3261_v58 = vmul.f32 %v2941_v14, %v1627_v63  ;;  %4060 = vmatpush.msra.mxu3 %v3890_v47 }
 0x30f   : > { %v7377_v26 = vadd.f32 %v1631_v56, %v7101_v10  ;;  %v3664_v17 = vadd.f32 %v3663_v41, %v3379_v11  ;;  %v1396_v53 = vpop.f32.mrf.mxu1  ;;  %v3388_v3 = vmul.f32 %v3068_v27, %v1392_v45 }
 0x310   : > { %v5297_v32 = vpop.eup %5296  ;;  %v2119_v15 = vmul.f32 0.5, %v1484_v0  ;;  %4661 = vmatmul.msk.bf16.gmra.mxu0 %vm458_vm0, %v6317_v16  ;;  %v3726_v40 = vadd.f32 %v3725_v22, %v3261_v58  ;;  %v1397_v20 = vadd.f32 %v1396_v53, %v6759_v29  ;;  %v7393_v34 = vpop.f32.mrf.mxu3 }
 0x311   : > { %v2001_v31 = vmul.f32 0.5, %v7377_v26  ;;  %v2749_v54 = vadd.f32 1.0, %v5297_v32  ;;  %v5299_v52 = vpop.eup %5298  ;;  %v3628_v18 = vadd.f32 %v3627_v33, %v3388_v3 }
 0x312   : > { %5302 = vtanh.f32 %v2119_v15  ;;  %v5301_v59 = vpop.eup %5300  ;;  %v2631_v50 = vadd.f32 1.0, %v5299_v52  ;;  %v2128_v62 = vmul.f32 0.5, %v1397_v20 }
 0x313   : > { %v3069_v63 = vmul.f32 0.5, %v2749_v54  ;;  %v2758_v45 = vadd.f32 1.0, %v5301_v59  ;;  %5304 = vtanh.f32 %v2001_v31 }
 0x314   : > { %v2951_v5 = vmul.f32 0.5, %v2631_v50  ;;  %5306 = vtanh.f32 %v2128_v62 }
 0x315   : > { %v3389_v36 = vmul.f32 %v3069_v63, %v1481_v13  ;;  %v1485_v41 = vpop.f32.mrf.mxu2  ;;  %v3078_v12 = vmul.f32 0.5, %v2758_v45 }
 0x316   : > { %v1633_v46 = vpop.f32.mrf.mxu0  ;;  %v1486_v42 = vadd.f32 %v1485_v41, %v6773_v21  ;;  %v3271_v61 = vmul.f32 %v2951_v5, %v7365_v37 }
 0x317   : > { %v1634_v4 = vadd.f32 %v1633_v46, %v7101_v10  ;;  %v3665_v39 = vadd.f32 %v3664_v17, %v3389_v36  ;;  %v1399_v22 = vpop.f32.mrf.mxu1  ;;  %v3398_v38 = vmul.f32 %v3078_v12, %v1395_v6 }
 0x318   : > { %v5303_v24 = vpop.eup %5302  ;;  %v2129_v33 = vmul.f32 0.5, %v1486_v42  ;;  %v3727_v48 = vadd.f32 %v3726_v40, %v3271_v61  ;;  %v1400_v13 = vadd.f32 %v1399_v22, %v6759_v29  ;;  %v7399_v22 = vpop.f32.mrf.mxu3 }
 0x319   : > { %v2011_v2 = vmul.f32 0.5, %v1634_v4  ;;  %v2759_v44 = vadd.f32 1.0, %v5303_v24  ;;  %v5305_v43 = vpop.eup %5304  ;;  %v3629_v1 = vadd.f32 %v3628_v18, %v3398_v38 }
 0x31a   : > { %5308 = vtanh.f32 %v2129_v33  ;;  %4668 = vmatmul.msk.bf16.gmra.mxu1 %vm458_vm0, %v5901_v35  ;;  %4684 = vmatmul.msk.bf16.gmra.mxu2 %vm458_vm0, %v5901_v35  ;;  %v5307_v37 = vpop.eup %5306  ;;  %v2641_v14 = vadd.f32 1.0, %v5305_v43  ;;  %v2138_v6 = vmul.f32 0.5, %v1400_v13 }
 0x31b   : > { %v3079_v11 = vmul.f32 0.5, %v2759_v44  ;;  %v2768_v56 = vadd.f32 1.0, %v5307_v37  ;;  %5310 = vtanh.f32 %v2011_v2 }
 0x31c   : > { %v2961_v17 = vmul.f32 0.5, %v2641_v14  ;;  %5312 = vtanh.f32 %v2138_v6 }
 0x31d   : > { %v3399_v27 = vmul.f32 %v3079_v11, %v1484_v0  ;;  %v1488_v58 = vpop.f32.mrf.mxu2  ;;  %v3088_v32 = vmul.f32 0.5, %v2768_v56 }
 0x31e   : > { %v1636_v53 = vpop.f32.mrf.mxu0  ;;  %v1489_v3 = vadd.f32 %v1488_v58, %v6773_v21  ;;  %v3281_v31 = vmul.f32 %v2961_v17, %v7377_v26 }
 0x31f   : > { %v1637_v35 = vadd.f32 %v1636_v53, %v7101_v10  ;;  %v3666_v15 = vadd.f32 %v3665_v39, %v3399_v27  ;;  %v1401_v40 = vpop.f32.mrf.mxu1  ;;  %v3408_v52 = vmul.f32 %v3088_v32, %v1397_v20 }
 0x320   : > { %v5309_v54 = vpop.eup %5308  ;;  %v2139_v18 = vmul.f32 0.5, %v1489_v3  ;;  %v3728_v63 = vadd.f32 %v3727_v48, %v3281_v31  ;;  %v1402_v0 = vadd.f32 %v1401_v40, %v6759_v29 }
 0x321   : > { %v2021_v59 = vmul.f32 0.5, %v1637_v35  ;;  %v2769_v50 = vadd.f32 1.0, %v5309_v54  ;;  %v5311_v62 = vpop.eup %5310  ;;  %v3630_v45 = vadd.f32 %v3629_v1, %v3408_v52 }
 0x322   : > { %5314 = vtanh.f32 %v2139_v18  ;;  %v5313_v36 = vpop.eup %5312  ;;  %v2651_v41 = vadd.f32 1.0, %v5311_v62  ;;  %v2148_v46 = vmul.f32 0.5, %v1402_v0 }
 0x323   : > { %v3089_v5 = vmul.f32 0.5, %v2769_v50  ;;  %v2778_v12 = vadd.f32 1.0, %v5313_v36  ;;  %5316 = vtanh.f32 %v2021_v59  ;;  %v7412_v50 = vpop.f32.mrf.mxu3 }
 0x324   : > { %v2971_v26 = vmul.f32 0.5, %v2651_v41  ;;  %5318 = vtanh.f32 %v2148_v46 }
 0x325   : > { %v3409_v39 = vmul.f32 %v3089_v5, %v1486_v42  ;;  %v1490_v61 = vpop.f32.mrf.mxu2  ;;  %v3098_v24 = vmul.f32 0.5, %v2778_v12 }
 0x326   : > { %v1638_v20 = vpop.f32.mrf.mxu0  ;;  %v1491_v38 = vadd.f32 %v1490_v61, %v6773_v21  ;;  %v3291_v48 = vmul.f32 %v2971_v26, %v1634_v4 }
 0x327   : > { %v1639_v33 = vadd.f32 %v1638_v20, %v7101_v10  ;;  %v3667_v2 = vadd.f32 %v3666_v15, %v3409_v39  ;;  %v1404_v44 = vpop.f32.mrf.mxu1  ;;  %v3418_v1 = vmul.f32 %v3098_v24, %v1400_v13  ;;  %v793_v39 = vld [vmem:[%s7992_s4 + $0x8] sm:$0x3] }
 0x328   : > { %v5315_v43 = vpop.eup %5314  ;;  %v2149_v47 = vmul.f32 0.5, %v1491_v38  ;;  %v3729_v11 = vadd.f32 %v3728_v63, %v3291_v48  ;;  %v1405_v14 = vadd.f32 %v1404_v44, %v6759_v29 }
 0x329   : > { %v2031_v37 = vmul.f32 0.5, %v1639_v33  ;;  %v2779_v42 = vadd.f32 1.0, %v5315_v43  ;;  %v5317_v6 = vpop.eup %5316  ;;  %v3631_v56 = vadd.f32 %v3630_v45, %v3418_v1  ;;  %v7419_v43 = vperm.slane %v793_v39, 0 }
 0x32a   : > { %5320 = vtanh.f32 %v2149_v47  ;;  %4669 = vmatmul.msk.bf16.gmra.mxu1 %vm458_vm0, %v5913_v51  ;;  %4685 = vmatmul.msk.bf16.gmra.mxu2 %vm458_vm0, %v5913_v51  ;;  %v5319_v27 = vpop.eup %5318  ;;  %v2661_v17 = vadd.f32 1.0, %v5317_v6  ;;  %v2158_v58 = vmul.f32 0.5, %v1405_v14  ;;  %v3889_v6 = vld [vmem:[#allocation3 + $0x68] sm:$0xff] }
 0x32b   : > { %v3099_v4 = vmul.f32 0.5, %v2779_v42  ;;  %v2788_v13 = vadd.f32 1.0, %v5319_v27  ;;  %5322 = vtanh.f32 %v2031_v37  ;;  %4061 = vmatpush.msra.mxu3 %v3889_v6 }
 0x32c   : > { %v2981_v32 = vmul.f32 0.5, %v2661_v17  ;;  %5324 = vtanh.f32 %v2158_v58 }
 0x32d   : > { %v3419_v53 = vmul.f32 %v3099_v4, %v1489_v3  ;;  %v1493_v15 = vpop.f32.mrf.mxu2  ;;  %v3108_v40 = vmul.f32 0.5, %v2788_v13 }
 0x32e   : > { %v1641_v31 = vpop.f32.mrf.mxu0  ;;  %v1494_v54 = vadd.f32 %v1493_v15, %v6773_v21  ;;  %v3301_v59 = vmul.f32 %v2981_v32, %v1637_v35 }
 0x32f   : > { %v7410_v52 = vadd.f32 %v1641_v31, %v7101_v10  ;;  %v3668_v18 = vadd.f32 %v3667_v2, %v3419_v53  ;;  %v1406_v51 = vpop.f32.mrf.mxu1  ;;  %v3428_v62 = vmul.f32 %v3108_v40, %v1402_v0 }
 0x330   : > { %v5321_v63 = vpop.eup %5320  ;;  %v2159_v45 = vmul.f32 0.5, %v1494_v54  ;;  %v3730_v36 = vadd.f32 %v3729_v11, %v3301_v59  ;;  %v1407_v41 = vadd.f32 %v1406_v51, %v6759_v29  ;;  %v3888_v59 = vld [vmem:[#allocation3 + $0x60] sm:$0xff] }
 0x331   : > { %v2041_v3 = vmul.f32 0.5, %v7410_v52  ;;  %v2789_v5 = vadd.f32 1.0, %v5321_v63  ;;  %v5323_v46 = vpop.eup %5322  ;;  %v3632_v12 = vadd.f32 %v3631_v56, %v3428_v62  ;;  %4062 = vmatpush.msra.mxu3 %v3888_v59  ;;  %v7467_v59 = vadd.f32 %v7383_v60, %v6787_v25 }
 0x332   : > { %5326 = vtanh.f32 %v2159_v45  ;;  %v5325_v35 = vpop.eup %5324  ;;  %v2671_v61 = vadd.f32 1.0, %v5323_v46  ;;  %v2168_v20 = vmul.f32 0.5, %v1407_v41 }
 0x333   : > { %v3109_v26 = vmul.f32 0.5, %v2789_v5  ;;  %v2798_v24 = vadd.f32 1.0, %v5325_v35  ;;  %5328 = vtanh.f32 %v2041_v3 }
 0x334   : > { %v2991_v2 = vmul.f32 0.5, %v2671_v61  ;;  %5330 = vtanh.f32 %v2168_v20 }
 0x335   : > { %v3429_v0 = vmul.f32 %v3109_v26, %v1491_v38  ;;  %v1495_v48 = vpop.f32.mrf.mxu2  ;;  %v3118_v29 = vmul.f32 0.5, %v2798_v24 }
 0x336   : > { %v1643_v44 = vpop.f32.mrf.mxu0  ;;  %v1496_v1 = vadd.f32 %v1495_v48, %v6773_v21  ;;  %v3311_v11 = vmul.f32 %v2991_v2, %v1639_v33  ;;  %v7429_v21 = vpop.f32.mrf.mxu3  ;;  %v7435_v33 = vperm.slane %v793_v39, 1 }
 0x337   : > { %v7423_v47 = vadd.f32 %v1643_v44, %v7101_v10  ;;  %v3669_v37 = vadd.f32 %v3668_v18, %v3429_v0  ;;  %v1685_v42 = vpop.f32.mrf.mxu1  ;;  %v3438_v27 = vmul.f32 %v3118_v29, %v1405_v14 }
 0x338   : > { %v5327_v56 = vpop.eup %5326  ;;  %v2169_v4 = vmul.f32 0.5, %v1496_v1  ;;  %v3731_v17 = vadd.f32 %v3730_v36, %v3311_v11  ;;  %v7427_v13 = vadd.f32 %v1685_v42, %v7419_v43  ;;  %v7455_v11 = vadd.f32 %v7367_v57, %v6787_v25 }
 0x339   : > { %v2051_v38 = vmul.f32 0.5, %v7423_v47  ;;  %v2799_v58 = vadd.f32 1.0, %v5327_v56  ;;  %v5329_v53 = vpop.eup %5328  ;;  %v3633_v32 = vadd.f32 %v3632_v12, %v3438_v27 }
 0x33a   : > { %5332 = vtanh.f32 %v2169_v4  ;;  %4670 = vmatmul.msk.bf16.gmra.mxu1 %vm458_vm0, %v5933_v8  ;;  %4686 = vmatmul.msk.bf16.gmra.mxu2 %vm458_vm0, %v5933_v8  ;;  %v5331_v14 = vpop.eup %5330  ;;  %v2681_v31 = vadd.f32 1.0, %v5329_v53  ;;  %v1862_v40 = vmul.f32 0.5, %v7427_v13 }
 0x33b   : > { %v3119_v15 = vmul.f32 0.5, %v2799_v58  ;;  %v2808_v18 = vadd.f32 1.0, %v5331_v14  ;;  %5334 = vtanh.f32 %v2051_v38 }
 0x33c   : > { %v3001_v63 = vmul.f32 0.5, %v2681_v31  ;;  %5336 = vtanh.f32 %v1862_v40 }
 0x33d   : > { %v3439_v51 = vmul.f32 %v3119_v15, %v1494_v54  ;;  %v1774_v62 = vpop.f32.mrf.mxu2  ;;  %v3128_v3 = vmul.f32 0.5, %v2808_v18 }
 0x33e   : > { %v1646_v45 = vpop.f32.mrf.mxu0  ;;  %v7439_v36 = vadd.f32 %v1774_v62, %v7435_v33  ;;  %v3321_v46 = vmul.f32 %v3001_v63, %v7410_v52  ;;  %v7451_v29 = vpop.f32.mrf.mxu3 }
 0x33f   : > { %v7442_v8 = vadd.f32 %v1646_v45, %v7101_v10  ;;  %v3670_v5 = vadd.f32 %v3669_v37, %v3439_v51  ;;  %v1687_v12 = vpop.f32.mrf.mxu1  ;;  %v3448_v35 = vmul.f32 %v3128_v3, %v1407_v41  ;;  %v7475_v45 = vadd.f32 %v7393_v34, %v6787_v25 }
 0x340   : > { %v5333_v39 = vpop.eup %5332  ;;  %v1863_v54 = vmul.f32 0.5, %v7439_v36  ;;  %v3732_v61 = vadd.f32 %v3731_v17, %v3321_v46  ;;  %v7448_v24 = vadd.f32 %v1687_v12, %v7419_v43  ;;  %v2080_v34 = vmul.f32 0.5, %v7467_v59 }
 0x341   : > { %v2061_v26 = vmul.f32 0.5, %v7442_v8  ;;  %v2809_v20 = vadd.f32 1.0, %v5333_v39  ;;  %v5335_v0 = vpop.eup %5334  ;;  %v3634_v2 = vadd.f32 %v3633_v32, %v3448_v35 }
 0x342   : > { %5338 = vtanh.f32 %v1863_v54  ;;  %v2691_v44 = vadd.f32 1.0, %v5335_v0  ;;  %v1872_v52 = vmul.f32 0.5, %v7448_v24  ;;  %v5337_v37 = vpop.eup %5336 }
 0x343   : > { %v3129_v48 = vmul.f32 0.5, %v2809_v20  ;;  %5340 = vtanh.f32 %v2061_v26  ;;  %v3635_v41 = vrot.slane %v3634_v2, 4  ;;  %v2502_v15 = vadd.f32 1.0, %v5337_v37 }
 0x344   : > { %v3011_v6 = vmul.f32 0.5, %v2691_v44  ;;  %5342 = vtanh.f32 %v1872_v52 }
 0x345   : > { %v3449_v42 = vmul.f32 %v3129_v48, %v1496_v1  ;;  %v1776_v56 = vpop.f32.mrf.mxu2  ;;  %v3636_v4 = vadd.f32 %v3635_v41, %v3634_v2  ;;  %v2070_v1 = vmul.f32 0.5, %v7455_v11  ;;  %v2822_v60 = vmul.f32 0.5, %v2502_v15 }
 0x346   : > { %v7457_v27 = vpop.f32.mrf.mxu0  ;;  %v7460_v38 = vadd.f32 %v1776_v56, %v7435_v33  ;;  %v3331_v58 = vmul.f32 %v3011_v6, %v7423_v47  ;;  %v3887_v47 = vld [vmem:[#allocation3 + $0x58] sm:$0xff]  ;;  %v7484_v20 = vpop.f32.mrf.mxu3  ;;  %v2090_v48 = vmul.f32 0.5, %v7475_v45 }
 0x347   : > { %v3671_v17 = vadd.f32 %v3670_v5, %v3449_v42  ;;  %v1690_v53 = vpop.f32.mrf.mxu1  ;;  %v3637_v14 = vrot.slane %v3636_v4, 2  ;;  %4063 = vmatpush.msra.mxu3 %v3887_v47  ;;  %v3142_v42 = vmul.f32 %v2822_v60, %v7427_v13  ;;  %v7501_v13 = vadd.f32 %v7399_v22, %v6787_v25 }
 0x348   : > { %v5339_v32 = vpop.eup %5338  ;;  %v1873_v57 = vmul.f32 0.5, %v7460_v38  ;;  %v3733_v18 = vadd.f32 %v3732_v61, %v3331_v58  ;;  %v7478_v5 = vadd.f32 %v1690_v53, %v7419_v43 }
 0x349   : > { %v5341_v31 = vpop.eup %5340  ;;  %v3672_v40 = vrot.slane %v3671_v17, 4  ;;  %v3638_v51 = vadd.f32 %v3637_v14, %v3636_v4  ;;  %v2503_v46 = vadd.f32 1.0, %v5339_v32 }
 0x34a   : > { %v2701_v63 = vadd.f32 1.0, %v5341_v31  ;;  %5344 = vtanh.f32 %v1873_v57  ;;  %4671 = vmatmul.msk.bf16.gmra.mxu1 %vm458_vm0, %v5975_v49  ;;  %4687 = vmatmul.msk.bf16.gmra.mxu2 %vm458_vm0, %v5975_v49  ;;  %v5343_v62 = vpop.eup %5342  ;;  %v1882_v26 = vmul.f32 0.5, %v7478_v5 }
 0x34b   : > { %v3673_v3 = vadd.f32 %v3672_v40, %v3671_v17  ;;  %v2512_v39 = vadd.f32 1.0, %v5343_v62  ;;  %v3639_v35 = vrot.slane %v3638_v51, 1  ;;  %5346 = vtanh.f32 %v2070_v1 }
 0x34c   : > { %v3021_v12 = vmul.f32 0.5, %v2701_v63  ;;  %5348 = vtanh.f32 %v1882_v26  ;;  %v2823_v6 = vmul.f32 0.5, %v2503_v46 }
 0x34d   : > { %v3674_v54 = vrot.slane %v3673_v3, 2  ;;  %v1779_v49 = vpop.f32.mrf.mxu2  ;;  %v2832_v2 = vmul.f32 0.5, %v2512_v39  ;;  %v3640_v17 = vadd.f32 %v3639_v35, %v3638_v51  ;;  %5350 = vtanh.f32 %v2080_v34 }
 0x34e   : > { %v7481_v61 = vpop.f32.mrf.mxu0  ;;  %v3341_v0 = vmul.f32 %v3021_v12, %v7442_v8  ;;  %v7489_v52 = vadd.f32 %v1779_v49, %v7435_v33  ;;  %v3143_v51 = vmul.f32 %v2823_v6, %v7439_v36  ;;  %v2100_v36 = vmul.f32 0.5, %v7501_v13 }
 0x34f   : > { %v3675_v44 = vadd.f32 %v3674_v54, %v3673_v3  ;;  %v1692_v41 = vpop.f32.mrf.mxu1  ;;  %v3152_v4 = vmul.f32 %v2832_v2, %v7448_v24  ;;  %v3839_v40 = vrot.slane %v3640_v17, 4  ;;  %v7510_v3 = vadd.f32 %v7412_v50, %v6787_v25 }
 0x350   : > { %v5345_v37 = vpop.eup %5344  ;;  %v7492_v56 = vadd.f32 %v3733_v18, %v3341_v0  ;;  %v1883_v53 = vmul.f32 0.5, %v7489_v52  ;;  %v7497_v14 = vadd.f32 %v1692_v41, %v7419_v43  ;;  %v3886_v41 = vld [vmem:[#allocation3 + $0x50] sm:$0xff] }
 0x351   : > { %v3676_v58 = vrot.slane %v3675_v44, 1  ;;  %v2513_v8 = vadd.f32 1.0, %v5345_v37  ;;  %v3752_v32 = vadd.f32 %v3152_v4, %v3142_v42  ;;  %v5347_v31 = vpop.eup %5346  ;;  %v2110_v0 = vmul.f32 0.5, %v7510_v3  ;;  %4064 = vmatpush.msra.mxu3 %v3886_v41 }
 0x352   : > { %5352 = vtanh.f32 %v1883_v53  ;;  %v1892_v24 = vmul.f32 0.5, %v7497_v14  ;;  %v5349_v1 = vpop.eup %5348  ;;  %v2710_v37 = vadd.f32 1.0, %v5347_v31 }
 0x353   : > { %v3677_v15 = vadd.f32 %v3676_v58, %v3675_v44  ;;  %v2833_v57 = vmul.f32 0.5, %v2513_v8  ;;  %5354 = vtanh.f32 %v2090_v48  ;;  %v2522_v60 = vadd.f32 1.0, %v5349_v1  ;;  %v5351_v35 = vpop.eup %5350 }
 0x354   : > { %5356 = vtanh.f32 %v1892_v24  ;;  %v2720_v17 = vadd.f32 1.0, %v5351_v35 }
 0x355   : > { %v3840_v18 = vrot.slane %v3677_v15, 3  ;;  %v3153_v63 = vmul.f32 %v2833_v57, %v7460_v38  ;;  %v1781_v47 = vpop.f32.mrf.mxu2  ;;  %v7518_v38 = vpop.f32.mrf.mxu3  ;;  %v2842_v54 = vmul.f32 0.5, %v2522_v60  ;;  %v3030_v57 = vmul.f32 0.5, %v2710_v37 }
 0x356   : > { %v7506_v62 = vpop.f32.mrf.mxu0  ;;  %v7515_v12 = vadd.f32 %v1781_v47, %v7435_v33 }
 0x357   : > { %v7512_v22 = vsel %vm3850_vm4, %v3839_v40, %v3840_v18  ;;  %v3789_v46 = vadd.f32 %v3153_v63, %v3143_v51  ;;  %v1695_v39 = vpop.f32.mrf.mxu1  ;;  %v3162_v2 = vmul.f32 %v2842_v54, %v7478_v5  ;;  %v7533_v5 = vadd.f32 %v7429_v21, %v6787_v25 }
 0x358   : > { %v7521_v26 = vadd.f32 %v1695_v39, %v7419_v43  ;;  %v5353_v50 = vpop.eup %5352  ;;  %v1893_v49 = vmul.f32 0.5, %v7515_v12  ;;  %v3040_v63 = vmul.f32 0.5, %v2720_v17  ;;  %v3350_v54 = vmul.f32 %v3030_v57, %v7455_v11 }
 0x359   : > { %v5355_v34 = vpop.eup %5354  ;;  %v2523_v48 = vadd.f32 1.0, %v5353_v50  ;;  %v3753_v6 = vadd.f32 %v3752_v32, %v3162_v2 }
 0x35a   : > { %v1902_v44 = vmul.f32 0.5, %v7521_v26  ;;  %4672 = vmatmul.msk.bf16.gmra.mxu1 %vm458_vm0, %v6035_v23  ;;  %4688 = vmatmul.msk.bf16.gmra.mxu2 %vm458_vm0, %v6035_v23  ;;  %5358 = vtanh.f32 %v1893_v49  ;;  %v5357_v42 = vpop.eup %5356  ;;  %v7539_v23 = vadd.f32 %v7451_v29, %v6787_v25  ;;  %v2730_v31 = vadd.f32 1.0, %v5355_v34 }
 0x35b   : > { %5360 = vtanh.f32 %v2100_v36  ;;  %v2843_v4 = vmul.f32 0.5, %v2523_v48  ;;  %v2532_v58 = vadd.f32 1.0, %v5357_v42  ;;  %v2120_v29 = vmul.f32 0.5, %v7533_v5 }
 0x35c   : > { %5362 = vtanh.f32 %v1902_v44  ;;  %v2130_v60 = vmul.f32 0.5, %v7539_v23  ;;  %v3050_v50 = vmul.f32 0.5, %v2730_v31  ;;  %v3360_v48 = vmul.f32 %v3040_v63, %v7467_v59 }
 0x35d   : > { %v1784_v8 = vpop.f32.mrf.mxu2  ;;  %5364 = vtanh.f32 %v2110_v0  ;;  %v3163_v15 = vmul.f32 %v2843_v4, %v7489_v52  ;;  %v2852_v24 = vmul.f32 0.5, %v2532_v58  ;;  %v1582_v39 = vpop.f32.mrf.mxu3  ;;  %v7556_v0 = vadd.f32 %v7484_v20, %v6787_v25 }
 0x35e   : > { %v7535_v53 = vpop.f32.mrf.mxu0  ;;  %v7543_v32 = vadd.f32 %v1784_v8, %v7435_v33  ;;  %v3698_v20 = vadd.f32 %v7344_v7, %v3350_v54  ;;  %v3370_v4 = vmul.f32 %v3050_v50, %v7475_v45 }
 0x35f   : > { %v1697_v21 = vpop.f32.mrf.mxu1  ;;  %v3790_v1 = vadd.f32 %v3789_v46, %v3163_v15  ;;  %v3172_v47 = vmul.f32 %v2852_v24, %v7497_v14  ;;  %v2140_v59 = vmul.f32 0.5, %v7556_v0 }
 0x360   : > { %v1903_v40 = vmul.f32 0.5, %v7543_v32  ;;  %v7547_v18 = vadd.f32 %v1697_v21, %v7419_v43  ;;  %v5359_v51 = vpop.eup %5358  ;;  %v3699_v45 = vadd.f32 %v3698_v20, %v3360_v48 }
 0x361   : > { %v5361_v52 = vpop.eup %5360  ;;  %v2533_v35 = vadd.f32 1.0, %v5359_v51  ;;  %v3754_v49 = vadd.f32 %v3753_v6, %v3172_v47 }
 0x362   : > { %5366 = vtanh.f32 %v1903_v40  ;;  %v1912_v36 = vmul.f32 0.5, %v7547_v18  ;;  %v5363_v46 = vpop.eup %5362  ;;  %v2740_v44 = vadd.f32 1.0, %v5361_v52  ;;  %v3700_v52 = vadd.f32 %v3699_v45, %v3370_v4 }
 0x363   : > { %v5365_v34 = vpop.eup %5364  ;;  %v2853_v2 = vmul.f32 0.5, %v2533_v35  ;;  %v2542_v14 = vadd.f32 1.0, %v5363_v46 }
 0x364   : > { %5368 = vtanh.f32 %v1912_v36  ;;  %v2750_v17 = vadd.f32 1.0, %v5365_v34  ;;  %v3060_v40 = vmul.f32 0.5, %v2740_v44 }
 0x365   : > { %5370 = vtanh.f32 %v2120_v29  ;;  %v1786_v41 = vpop.f32.mrf.mxu2  ;;  %v3173_v11 = vmul.f32 %v2853_v2, %v7515_v12  ;;  %v2862_v42 = vmul.f32 0.5, %v2542_v14  ;;  %v7572_v12 = vadd.f32 %v7518_v38, %v6787_v25  ;;  %v1584_v35 = vpop.f32.mrf.mxu3 }
 0x366   : > { %v7559_v37 = vpop.f32.mrf.mxu0  ;;  %5372 = vtanh.f32 %v2130_v60  ;;  %v7563_v6 = vadd.f32 %v1786_v41, %v7435_v33  ;;  %v3070_v60 = vmul.f32 0.5, %v2750_v17  ;;  %v7588_v2 = vadd.f32 %v1582_v39, %v6787_v25 }
 0x367   : > { %v1700_v58 = vpop.f32.mrf.mxu1  ;;  %v3791_v15 = vadd.f32 %v3790_v1, %v3173_v11  ;;  %v3182_v57 = vmul.f32 %v2862_v42, %v7521_v26  ;;  %v3885_v26 = vld [vmem:[#allocation3 + $0x48] sm:$0xff]  ;;  %v2150_v36 = vmul.f32 0.5, %v7572_v12  ;;  %v7594_v44 = vadd.f32 %v1584_v35, %v6787_v25 }
 0x368   : > { %v5367_v8 = vpop.eup %5366  ;;  %v1913_v31 = vmul.f32 0.5, %v7563_v6  ;;  %v7575_v21 = vadd.f32 %v1700_v58, %v7419_v43  ;;  %4065 = vmatpush.msra.mxu3 %v3885_v26  ;;  %v3390_v20 = vmul.f32 %v3070_v60, %v7510_v3  ;;  %v7608_v25 = vadd.f32 %v7481_v61, %v7101_v10 }
 0x369   : > { %v2543_v24 = vadd.f32 1.0, %v5367_v8  ;;  %v3755_v51 = vadd.f32 %v3754_v49, %v3182_v57  ;;  %v3380_v49 = vmul.f32 %v3060_v40, %v7501_v13  ;;  %v7600_v13 = vadd.f32 %v7457_v27, %v7101_v10 }
 0x36a   : > { %v5369_v7 = vpop.eup %5368  ;;  %5374 = vtanh.f32 %v1913_v31  ;;  %4673 = vmatmul.msk.bf16.gmra.mxu1 %vm458_vm0, %v6103_v55  ;;  %4689 = vmatmul.msk.bf16.gmra.mxu2 %vm458_vm0, %v6103_v55  ;;  %v1922_v29 = vmul.f32 0.5, %v7575_v21  ;;  %v2160_v3 = vmul.f32 0.5, %v7588_v2  ;;  %v2170_v31 = vmul.f32 0.5, %v7594_v44 }
 0x36b   : > { %v5371_v1 = vpop.eup %5370  ;;  %v2863_v63 = vmul.f32 0.5, %v2543_v24  ;;  %v2552_v38 = vadd.f32 1.0, %v5369_v7  ;;  %5376 = vtanh.f32 %v2140_v59  ;;  %v3701_v8 = vadd.f32 %v3700_v52, %v3380_v49 }
 0x36c   : > { %v5373_v47 = vpop.eup %5372  ;;  %5378 = vtanh.f32 %v1922_v29  ;;  %v2760_v34 = vadd.f32 1.0, %v5371_v1  ;;  %v2071_v7 = vmul.f32 0.5, %v7600_v13 }
 0x36d   : > { %v3183_v46 = vmul.f32 %v2863_v63, %v7543_v32  ;;  %v2872_v54 = vmul.f32 0.5, %v2552_v38  ;;  %v1789_v50 = vpop.f32.mrf.mxu2  ;;  %v2770_v48 = vadd.f32 1.0, %v5373_v47  ;;  %5380 = vtanh.f32 %v2150_v36 }
 0x36e   : > { %v7584_v55 = vpop.f32.mrf.mxu0  ;;  %v7591_v14 = vadd.f32 %v1789_v50, %v7435_v33  ;;  %v3702_v61 = vadd.f32 %v3701_v8, %v3390_v20  ;;  %v7620_v38 = vadd.f32 %v7506_v62, %v7101_v10  ;;  %v7629_v50 = vadd.f32 %v7535_v53, %v7101_v10  ;;  %v4019_v53 = vld [vmem:[#allocation3 + $0x478] sm:$0xff] }
 0x36f   : > { %v3792_v41 = vadd.f32 %v3791_v15, %v3183_v46  ;;  %v3192_v32 = vmul.f32 %v2872_v54, %v7547_v18  ;;  %v1702_v11 = vpop.f32.mrf.mxu1  ;;  %v3080_v15 = vmul.f32 0.5, %v2760_v34  ;;  %v3090_v57 = vmul.f32 0.5, %v2770_v48  ;;  %v3884_v46 = vld [vmem:[#allocation3 + $0x40] sm:$0xff]  ;;  %v3883_v48 = vld [vmem:[#allocation3 + $0x38] sm:$0xff]  ;;  %4219 = vmatpush.msrb.mxu0 %v4019_v53 }
 0x370   : > { %v5375_v42 = vpop.eup %5374  ;;  %v1923_v39 = vmul.f32 0.5, %v7591_v14  ;;  %v7604_v4 = vadd.f32 %v1702_v11, %v7419_v43  ;;  %4066 = vmatpush.msra.mxu3 %v3884_v46  ;;  %v2091_v11 = vmul.f32 0.5, %v7620_v38 }
 0x371   : > { %v3756_v17 = vadd.f32 %v3755_v51, %v3192_v32  ;;  %v2553_v18 = vadd.f32 1.0, %v5375_v42  ;;  %v5377_v58 = vpop.eup %5376  ;;  %v2081_v51 = vmul.f32 0.5, %v7608_v25  ;;  %v3400_v60 = vmul.f32 %v3080_v15, %v7533_v5 }
 0x372   : > { %5382 = vtanh.f32 %v1923_v39  ;;  %v1932_v27 = vmul.f32 0.5, %v7604_v4  ;;  %v5379_v59 = vpop.eup %5378  ;;  %v2780_v40 = vadd.f32 1.0, %v5377_v58  ;;  %v3410_v35 = vmul.f32 %v3090_v57, %v7539_v23  ;;  %4067 = vmatpush.msra.mxu3 %v3883_v48  ;;  %v3882_v58 = vld [vmem:[#allocation3 + $0x30] sm:$0xff] }
 0x373   : > { %v2873_v24 = vmul.f32 0.5, %v2553_v18  ;;  %v2562_v45 = vadd.f32 1.0, %v5379_v59  ;;  %v5381_v52 = vpop.eup %5380  ;;  %v3703_v8 = vadd.f32 %v3702_v61, %v3400_v60 }
 0x374   : > { %5384 = vtanh.f32 %v1932_v27  ;;  %v3100_v34 = vmul.f32 0.5, %v2780_v40  ;;  %v2790_v32 = vadd.f32 1.0, %v5381_v52  ;;  %4068 = vmatpush.msra.mxu3 %v3882_v58  ;;  %v3880_v52 = vld [vmem:[#allocation3 + $0x20] sm:$0xff] }
 0x375   : > { %v3193_v26 = vmul.f32 %v2873_v24, %v7563_v6  ;;  %v1791_v1 = vpop.f32.mrf.mxu2  ;;  %5386 = vtanh.f32 %v2160_v3  ;;  %v2882_v29 = vmul.f32 0.5, %v2562_v45  ;;  %v2101_v3 = vmul.f32 0.5, %v7629_v50 }
 0x376   : > { %v7616_v63 = vpop.f32.mrf.mxu0  ;;  %v7623_v47 = vadd.f32 %v1791_v1, %v7435_v33  ;;  %5388 = vtanh.f32 %v2170_v31  ;;  %v3881_v31 = vld [vmem:[#allocation3 + $0x28] sm:$0xff]  ;;  %v3420_v45 = vmul.f32 %v3100_v34, %v7556_v0  ;;  %v3110_v61 = vmul.f32 0.5, %v2790_v32 }
 0x377   : > { %v3793_v36 = vadd.f32 %v3792_v41, %v3193_v26  ;;  %v1705_v6 = vpop.f32.mrf.mxu1  ;;  %5390 = vtanh.f32 %v2071_v7  ;;  %v3202_v62 = vmul.f32 %v2882_v29, %v7575_v21  ;;  %v7643_v21 = vadd.f32 %v7559_v37, %v7101_v10  ;;  %v4035_v29 = vld [vmem:[#allocation3 + $0x4f8] sm:$0xff]  ;;  %4069 = vmatpush.msra.mxu3 %v3881_v31 }
 0x378   : > { %v5383_v54 = vpop.eup %5382  ;;  %v1933_v49 = vmul.f32 0.5, %v7623_v47  ;;  %5392 = vtanh.f32 %v2081_v51  ;;  %v7634_v23 = vadd.f32 %v1705_v6, %v7419_v43  ;;  %v3704_v7 = vadd.f32 %v3703_v8, %v3410_v35  ;;  %4239 = vmatpush.msrb.mxu1 %v4035_v29  ;;  %v3907_v29 = vld [vmem:[#allocation3 + $0xf8] sm:$0xff] }
 0x379   : > { %v2563_v5 = vadd.f32 1.0, %v5383_v54  ;;  %v3757_v42 = vadd.f32 %v3756_v17, %v3202_v62  ;;  %4070 = vmatpush.msra.mxu3 %v3880_v52  ;;  %v3879_v62 = vld [vmem:[#allocation3 + $0x18] sm:$0xff] }
 0x37a   : > { %v5385_v41 = vpop.eup %5384  ;;  %5394 = vtanh.f32 %v1933_v49  ;;  %4674 = vmatmul.msk.bf16.gmra.mxu1 %vm458_vm0, %v6153_v28  ;;  %4690 = vmatmul.msk.bf16.gmra.mxu2 %vm458_vm0, %v6153_v28  ;;  %v1942_v18 = vmul.f32 0.5, %v7634_v23  ;;  %v7650_v28 = vadd.f32 %v7584_v55, %v7101_v10  ;;  %v3705_v49 = vadd.f32 %v3704_v7, %v3420_v45  ;;  %v3876_v45 = vld [vmem:[#allocation3] sm:$0xff] }
 0x37b   : > { %v2883_v20 = vmul.f32 0.5, %v2563_v5  ;;  %v2572_v39 = vadd.f32 1.0, %v5385_v41  ;;  %v5387_v17 = vpop.eup %5386  ;;  %v3430_v41 = vmul.f32 %v3110_v61, %v7572_v12  ;;  %4071 = vmatpush.msra.mxu3 %v3879_v62 }
 0x37c   : > { %v5389_v27 = vpop.eup %5388  ;;  %5396 = vtanh.f32 %v1942_v18  ;;  %v2800_v6 = vadd.f32 1.0, %v5387_v17  ;;  %v2121_v46 = vmul.f32 0.5, %v7650_v28 }
 0x37d   : > { %v3203_v59 = vmul.f32 %v2883_v20, %v7591_v14  ;;  %v2892_v37 = vmul.f32 0.5, %v2572_v39  ;;  %v1794_v15 = vpop.f32.mrf.mxu2  ;;  %v5391_v24 = vpop.eup %5390  ;;  %5398 = vtanh.f32 %v2091_v11  ;;  %v2111_v14 = vmul.f32 0.5, %v7643_v21 }
 0x37e   : > { %v1666_v57 = vpop.f32.mrf.mxu0  ;;  %v7654_v40 = vadd.f32 %v1794_v15, %v7435_v33  ;;  %v5393_v51 = vpop.eup %5392  ;;  %5400 = vtanh.f32 %v2101_v3  ;;  %v2810_v34 = vadd.f32 1.0, %v5389_v27  ;;  %v2711_v32 = vadd.f32 1.0, %v5391_v24  ;;  %v3877_v3 = vld [vmem:[#allocation3 + $0x8] sm:$0xff] }
 0x37f   : > { %v3794_v55 = vadd.f32 %v3793_v36, %v3203_v59  ;;  %v3212_v26 = vmul.f32 %v2892_v37, %v7604_v4  ;;  %v1707_v1 = vpop.f32.mrf.mxu1  ;;  %v7667_v4 = vadd.f32 %v7616_v63, %v7101_v10  ;;  %v2721_v53 = vadd.f32 1.0, %v5393_v51 }
 0x380   : > { %v5395_v60 = vpop.eup %5394  ;;  %v1943_v0 = vmul.f32 0.5, %v7654_v40  ;;  %v7660_v35 = vadd.f32 %v1707_v1, %v7419_v43  ;;  %v7672_v63 = vadd.f32 %v1666_v57, %v7101_v10  ;;  %v3120_v18 = vmul.f32 0.5, %v2800_v6 }
 0x381   : > { %v7663_v54 = vadd.f32 %v3757_v42, %v3212_v26  ;;  %v2573_v36 = vadd.f32 1.0, %v5395_v60  ;;  %v3878_v42 = vld [vmem:[#allocation3 + $0x10] sm:$0xff]  ;;  %v2131_v17 = vmul.f32 0.5, %v7667_v4  ;;  %v3130_v59 = vmul.f32 0.5, %v2810_v34 }
 0x382   : > { %5402 = vtanh.f32 %v1943_v0  ;;  %v1952_v5 = vmul.f32 0.5, %v7660_v35  ;;  %v5397_v48 = vpop.eup %5396  ;;  %4072 = vmatpush.msra.mxu3 %v3878_v42  ;;  %v7679_v57 = vadd.f32 %v3705_v49, %v3430_v41  ;;  %v3031_v31 = vmul.f32 0.5, %v2711_v32 }
 0x383   : > { %5404 = vtanh.f32 %v2111_v14  ;;  %v2893_v11 = vmul.f32 0.5, %v2573_v36  ;;  %v2582_v20 = vadd.f32 1.0, %v5397_v48  ;;  %v5399_v39 = vpop.eup %5398  ;;  %v3041_v51 = vmul.f32 0.5, %v2721_v53 }
 0x384   : > { %5406 = vtanh.f32 %v1952_v5  ;;  %v5401_v27 = vpop.eup %5400  ;;  %4073 = vmatpush.msra.mxu3 %v3877_v3  ;;  %v2731_v14 = vadd.f32 1.0, %v5399_v39  ;;  %v2141_v26 = vmul.f32 0.5, %v7672_v63  ;;  %v7687_v60 = vmul.f32 %v3120_v18, %v7588_v2  ;;  %v3906_v2 = vld [vmem:[#allocation3 + $0xf0] sm:$0xff] }
 0x385   : > { %5408 = vtanh.f32 %v2121_v46  ;;  %v3213_v58 = vmul.f32 %v2893_v11, %v7623_v47  ;;  %v1796_v8 = vpop.f32.mrf.mxu2  ;;  %v2902_v37 = vmul.f32 0.5, %v2582_v20  ;;  %v7693_v46 = vmul.f32 %v3130_v59, %v7594_v44  ;;  %v3905_v11 = vld [vmem:[#allocation3 + $0xe8] sm:$0xff] }
 0x386   : > { %v1668_v12 = vpop.f32.mrf.mxu0  ;;  %v7677_v15 = vadd.f32 %v1796_v8, %v7435_v33  ;;  %5410 = vtanh.f32 %v2131_v17  ;;  %4074 = vmatpush.msra.mxu3 %v3876_v45  ;;  %v2741_v36 = vadd.f32 1.0, %v5401_v27  ;;  %v3351_v44 = vmul.f32 %v3031_v31, %v7600_v13 }
 0x387   : > { %v3795_v24 = vadd.f32 %v3794_v55, %v3213_v58  ;;  %v7682_v7 = vadd.f32 %v1668_v12, %v7101_v10  ;;  %v1710_v47 = vpop.f32.mrf.mxu1  ;;  %v3222_v62 = vmul.f32 %v2902_v37, %v7634_v23  ;;  %v3361_v23 = vmul.f32 %v3041_v51, %v7608_v25  ;;  %v3904_v25 = vld [vmem:[#allocation3 + $0xe0] sm:$0xff] }
 0x388   : > { %v5403_v61 = vpop.eup %5402  ;;  %v1953_v1 = vmul.f32 0.5, %v7677_v15  ;;  %v7690_v6 = vadd.f32 %v1710_v47, %v7419_v43  ;;  %4079 = vmatpush.msrb.mxu3 %v3907_v29  ;;  %v3051_v32 = vmul.f32 0.5, %v2731_v14  ;;  %v3061_v18 = vmul.f32 0.5, %v2741_v36  ;;  %v3902_v29 = vld [vmem:[#allocation3 + $0xd0] sm:$0xff] }
 0x389   : > { %v5405_v52 = vpop.eup %5404  ;;  %v2583_v55 = vadd.f32 1.0, %v5403_v61  ;;  %v2151_v48 = vmul.f32 0.5, %v7682_v7  ;;  %v3759_v12 = vadd.f32 %v7663_v54, %v3222_v62  ;;  %v3735_v37 = vadd.f32 %v7492_v56, %v3351_v44  ;;  %v3903_v61 = vld [vmem:[#allocation3 + $0xd8] sm:$0xff] }
 0x38a   : > { %v5407_v0 = vpop.eup %5406  ;;  %5412 = vtanh.f32 %v1953_v1  ;;  %4675 = vmatmul.msk.bf16.gmra.mxu1 %vm458_vm0, %v6208_v19  ;;  %4691 = vmatmul.msk.bf16.gmra.mxu2 %vm458_vm0, %v6208_v19  ;;  %v1962_v41 = vmul.f32 0.5, %v7690_v6  ;;  %v2751_v42 = vadd.f32 1.0, %v5405_v52  ;;  %v3371_v51 = vmul.f32 %v3051_v32, %v7620_v38 }
 0x38b   : > { %v5409_v49 = vpop.eup %5408  ;;  %v2903_v34 = vmul.f32 0.5, %v2583_v55  ;;  %v2592_v5 = vadd.f32 1.0, %v5407_v0  ;;  %5414 = vtanh.f32 %v2141_v26  ;;  %4080 = vmatpush.msrb.mxu3 %v3906_v2  ;;  %v3736_v26 = vadd.f32 %v3735_v37, %v3361_v23  ;;  %v3901_v2 = vld [vmem:[#allocation3 + $0xc8] sm:$0xff] }
 0x38c   : > { %5416 = vtanh.f32 %v1962_v41  ;;  %v2761_v58 = vadd.f32 1.0, %v5409_v49  ;;  %v5411_v8 = vpop.eup %5410  ;;  %v3071_v54 = vmul.f32 0.5, %v2751_v42  ;;  %v3381_v55 = vmul.f32 %v3061_v18, %v7629_v50 }
 0x38d   : > { %v3223_v53 = vmul.f32 %v2903_v34, %v7654_v40  ;;  %v2912_v19 = vmul.f32 0.5, %v2592_v5  ;;  %v1799_v20 = vpop.f32.mrf.mxu2  ;;  %5418 = vtanh.f32 %v2151_v48  ;;  %4081 = vmatpush.msrb.mxu3 %v3905_v11  ;;  %v2771_v1 = vadd.f32 1.0, %v5411_v8 }
 0x38e   : > { %v1671_v39 = vpop.f32.mrf.mxu0  ;;  %v7706_v17 = vadd.f32 %v1799_v20, %v7435_v33  ;;  %v3081_v0 = vmul.f32 0.5, %v2761_v58  ;;  %v3707_v38 = vadd.f32 %v7679_v57, %v7687_v60  ;;  %v3737_v34 = vadd.f32 %v3736_v26, %v3371_v51  ;;  %v3900_v60 = vld [vmem:[#allocation3 + $0xc0] sm:$0xff] }
 0x38f   : > { %v7709_v13 = vadd.f32 %v1671_v39, %v7101_v10  ;;  %v3796_v3 = vadd.f32 %v3795_v24, %v3223_v53  ;;  %v3232_v40 = vmul.f32 %v2912_v19, %v7660_v35  ;;  %v1712_v27 = vpop.f32.mrf.mxu1  ;;  %4082 = vmatpush.msrb.mxu3 %v3904_v25  ;;  %v3391_v5 = vmul.f32 %v3071_v54, %v7643_v21 }
 0x390   : > { %v5413_v59 = vpop.eup %5412  ;;  %v1963_v31 = vmul.f32 0.5, %v7706_v17  ;;  %v7717_v45 = vadd.f32 %v1712_v27, %v7419_v43  ;;  %v3091_v50 = vmul.f32 0.5, %v2771_v1  ;;  %v7733_v42 = vadd.f32 %v3707_v38, %v7693_v46  ;;  %v4018_v1 = vld [vmem:[#allocation3 + $0x470] sm:$0xff] }
 0x391   : > { %v2161_v47 = vmul.f32 0.5, %v7709_v13  ;;  %v3760_v24 = vadd.f32 %v3759_v12, %v3232_v40  ;;  %v2593_v14 = vadd.f32 1.0, %v5413_v59  ;;  %v5415_v35 = vpop.eup %5414  ;;  %4083 = vmatpush.msrb.mxu3 %v3903_v61  ;;  %v3738_v53 = vadd.f32 %v3737_v34, %v3381_v55  ;;  %4220 = vmatpush.msrb.mxu0 %v4018_v1 }
 0x392   : > { %5420 = vtanh.f32 %v1963_v31  ;;  %v1972_v56 = vmul.f32 0.5, %v7717_v45  ;;  %v5417_v52 = vpop.eup %5416  ;;  %v2781_v48 = vadd.f32 1.0, %v5415_v35  ;;  %v3401_v21 = vmul.f32 %v3081_v0, %v7650_v28  ;;  %v3896_v0 = vld [vmem:[#allocation3 + $0xa0] sm:$0xff] }
 0x393   : > { %v2913_v36 = vmul.f32 0.5, %v2593_v14  ;;  %5422 = vtanh.f32 %v2161_v47  ;;  %v2602_v62 = vadd.f32 1.0, %v5417_v52  ;;  %v5419_v49 = vpop.eup %5418  ;;  %4084 = vmatpush.msrb.mxu3 %v3902_v29  ;;  %v3739_v12 = vadd.f32 %v3738_v53, %v3391_v5  ;;  %v4017_v29 = vld [vmem:[#allocation3 + $0x468] sm:$0xff]  ;;  %v3894_v53 = vld [vmem:[#allocation3 + $0x90] sm:$0xff] }
 0x394   : > { %5424 = vtanh.f32 %v1972_v56  ;;  %v2791_v39 = vadd.f32 1.0, %v5419_v49  ;;  %v3101_v40 = vmul.f32 0.5, %v2781_v48  ;;  %v3709_v51 = vrot.slane %v7733_v42, 4  ;;  %v4034_v56 = vld [vmem:[#allocation3 + $0x4f0] sm:$0xff]  ;;  %4221 = vmatpush.msrb.mxu0 %v4017_v29  ;;  %v3895_v48 = vld [vmem:[#allocation3 + $0x98] sm:$0xff] }
 0x395   : > { %v3233_v41 = vmul.f32 %v2913_v36, %v7677_v15  ;;  %v1801_v44 = vpop.f32.mrf.mxu2  ;;  %v2922_v32 = vmul.f32 0.5, %v2602_v62  ;;  %4085 = vmatpush.msrb.mxu3 %v3901_v2  ;;  %v3740_v54 = vadd.f32 %v3739_v12, %v3401_v21  ;;  %4240 = vmatpush.msrb.mxu1 %v4034_v56 }
 0x396   : > { %v1673_v23 = vpop.f32.mrf.mxu0  ;;  %v7727_v11 = vadd.f32 %v1801_v44, %v7435_v33  ;;  %v3421_v14 = vmul.f32 %v3101_v40, %v7672_v63  ;;  %v3710_v44 = vadd.f32 %v3709_v51, %v7733_v42  ;;  %v3892_v40 = vld [vmem:[#allocation3 + $0x80] sm:$0xff] }
 0x397   : > { %v7730_v57 = vadd.f32 %v1673_v23, %v7101_v10  ;;  %v3797_v19 = vadd.f32 %v3796_v3, %v3233_v41  ;;  %v1715_v15 = vpop.f32.mrf.mxu1  ;;  %v3242_v18 = vmul.f32 %v2922_v32, %v7690_v6  ;;  %v3899_v10 = vld [vmem:[#allocation3 + $0xb8] sm:$0xff]  ;;  %4086 = vmatpush.msrb.mxu3 %v3900_v60  ;;  %v3411_v3 = vmul.f32 %v3091_v50, %v7667_v4  ;;  %v3898_v6 = vld [vmem:[#allocation3 + $0xb0] sm:$0xff] }
 0x398   : > { %v5421_v20 = vpop.eup %5420  ;;  %v1973_v58 = vmul.f32 0.5, %v7727_v11  ;;  %v7740_v27 = vadd.f32 %v1715_v15, %v7419_v43  ;;  %v3111_v4 = vmul.f32 0.5, %v2791_v39  ;;  %v3711_v42 = vrot.slane %v3710_v44, 2 }
 0x399   : > { %v2171_v25 = vmul.f32 0.5, %v7730_v57  ;;  %v5423_v8 = vpop.eup %5422  ;;  %v2603_v46 = vadd.f32 1.0, %v5421_v20  ;;  %v3761_v59 = vadd.f32 %v3760_v24, %v3242_v18  ;;  %4087 = vmatpush.msrb.mxu3 %v3899_v10  ;;  %v3897_v24 = vld [vmem:[#allocation3 + $0xa8] sm:$0xff]  ;;  %v3741_v36 = vadd.f32 %v3740_v54, %v3411_v3 }
 0x39a   : > { %v5425_v28 = vpop.eup %5424  ;;  %v2801_v37 = vadd.f32 1.0, %v5423_v8  ;;  %5426 = vtanh.f32 %v1973_v58  ;;  %4676 = vmatmul.msk.bf16.gmra.mxu1 %vm458_vm0, %v6264_v30  ;;  %4692 = vmatmul.msk.bf16.gmra.mxu2 %vm458_vm0, %v6264_v30  ;;  %v1982_v61 = vmul.f32 0.5, %v7740_v27  ;;  %v3431_v49 = vmul.f32 %v3111_v4, %v7682_v7  ;;  %v3893_v18 = vld [vmem:[#allocation3 + $0x88] sm:$0xff] }
 0x39b   : > { %v2923_v31 = vmul.f32 0.5, %v2603_v46  ;;  %v2612_v47 = vadd.f32 1.0, %v5425_v28  ;;  %5428 = vtanh.f32 %v2171_v25  ;;  %4088 = vmatpush.msrb.mxu3 %v3898_v6  ;;  %v3742_v23 = vadd.f32 %v3741_v36, %v3421_v14 }
 0x39c   : > { %5430 = vtanh.f32 %v1982_v61  ;;  %v3121_v52 = vmul.f32 0.5, %v2801_v37  ;;  %v4016_v61 = vld [vmem:[#allocation3 + $0x460] sm:$0xff] }
 0x39d   : > { %v3243_v35 = vmul.f32 %v2923_v31, %v7706_v17  ;;  %v2932_v26 = vmul.f32 0.5, %v2612_v47  ;;  %v1804_v30 = vpop.f32.mrf.mxu2  ;;  %v4033_v17 = vld [vmem:[#allocation3 + $0x4e8] sm:$0xff]  ;;  %4089 = vmatpush.msrb.mxu3 %v3897_v24  ;;  %v3743_v15 = vadd.f32 %v3742_v23, %v3431_v49  ;;  %4222 = vmatpush.msrb.mxu0 %v4016_v61 }
 0x39e   : > { %v7752_v55 = vadd.f32 %v1804_v30, %v7435_v33  ;;  %4241 = vmatpush.msrb.mxu1 %v4033_v17  ;;  %v3441_v32 = vmul.f32 %v3121_v52, %v7709_v13 }
 0x39f   : > { %v3798_v38 = vadd.f32 %v3797_v19, %v3243_v35  ;;  %v3252_v63 = vmul.f32 %v2932_v26, %v7717_v45  ;;  %v1717_v62 = vpop.f32.mrf.mxu1  ;;  %4090 = vmatpush.msrb.mxu3 %v3896_v0 }
 0x3a0   : > { %v5427_v2 = vpop.eup %5426  ;;  %v1983_v34 = vmul.f32 0.5, %v7752_v55  ;;  %v7758_v5 = vadd.f32 %v1717_v62, %v7419_v43  ;;  %v3744_v10 = vadd.f32 %v3743_v15, %v3441_v32 }
 0x3a1   : > { %v5429_v41 = vpop.eup %5428  ;;  %v3762_v50 = vadd.f32 %v3761_v59, %v3252_v63  ;;  %v2613_v45 = vadd.f32 1.0, %v5427_v2  ;;  %4091 = vmatpush.msrb.mxu3 %v3895_v48 }
 0x3a2   : > { %v2811_v60 = vadd.f32 1.0, %v5429_v41  ;;  %5432 = vtanh.f32 %v1983_v34  ;;  %v1992_v7 = vmul.f32 0.5, %v7758_v5  ;;  %v5431_v21 = vpop.eup %5430 }
 0x3a3   : > { %v2933_v19 = vmul.f32 0.5, %v2613_v45  ;;  %v2622_v39 = vadd.f32 1.0, %v5431_v21  ;;  %4092 = vmatpush.msrb.mxu3 %v3894_v53 }
 0x3a4   : > { %v3131_v20 = vmul.f32 0.5, %v2811_v60  ;;  %5434 = vtanh.f32 %v1992_v7 }
 0x3a5   : > { %v3253_v58 = vmul.f32 %v2933_v19, %v7727_v11  ;;  %v1806_v25 = vpop.f32.mrf.mxu2  ;;  %v2942_v8 = vmul.f32 0.5, %v2622_v39  ;;  %4093 = vmatpush.msrb.mxu3 %v3893_v18  ;;  %v3712_v11 = vadd.f32 %v3711_v42, %v3710_v44 }
 0x3a6   : > { %v3451_v13 = vmul.f32 %v3131_v20, %v7730_v57  ;;  %v1807_v12 = vadd.f32 %v1806_v25, %v7435_v33 }
 0x3a7   : > { %v3799_v46 = vadd.f32 %v3798_v38, %v3253_v58  ;;  %v1720_v28 = vpop.f32.mrf.mxu1  ;;  %v3262_v37 = vmul.f32 %v2942_v8, %v7740_v27  ;;  %4094 = vmatpush.msrb.mxu3 %v3892_v40  ;;  %v3713_v30 = vrot.slane %v3712_v11, 1  ;;  %v4032_v38 = vld [vmem:[#allocation3 + $0x4e0] sm:$0xff] }
 0x3a8   : > { %v5433_v3 = vpop.eup %5432  ;;  %v3745_v59 = vadd.f32 %v3744_v10, %v3451_v13  ;;  %v1993_v6 = vmul.f32 0.5, %v1807_v12  ;;  %v1721_v31 = vadd.f32 %v1720_v28, %v7419_v43  ;;  %4242 = vmatpush.msrb.mxu1 %v4032_v38  ;;  %v4015_v13 = vld [vmem:[#allocation3 + $0x458] sm:$0xff] }
 0x3a9   : > { %v2623_v47 = vadd.f32 1.0, %v5433_v3  ;;  %v3763_v54 = vadd.f32 %v3762_v50, %v3262_v37  ;;  %v3714_v34 = vadd.f32 %v3713_v30, %v3712_v11  ;;  %4223 = vmatpush.msrb.mxu0 %v4015_v13 }
 0x3aa   : > { %v5435_v51 = vpop.eup %5434  ;;  %v3746_v57 = vrot.slane %v3745_v59, 4  ;;  %5436 = vtanh.f32 %v1993_v6  ;;  %v2002_v4 = vmul.f32 0.5, %v1721_v31  ;;  %4677 = vmatmul.msk.bf16.gmra.mxu1 %vm458_vm0, %v6317_v16  ;;  %4693 = vmatmul.msk.bf16.gmra.mxu2 %vm458_vm0, %v6317_v16 }
 0x3ab   : > { %v2943_v24 = vmul.f32 0.5, %v2623_v47  ;;  %v2632_v27 = vadd.f32 1.0, %v5435_v51  ;;  %v3841_v60 = vrot.slane %v3714_v34, 2  ;;  %v3923_v51 = vld [vmem:[#allocation3 + $0x178] sm:$0xff] }
 0x3ac   : > { %v3747_v14 = vadd.f32 %v3746_v57, %v3745_v59  ;;  %5438 = vtanh.f32 %v2002_v4 }
 0x3ad   : > { %v3263_v35 = vmul.f32 %v2943_v24, %v7752_v55  ;;  %v2952_v26 = vmul.f32 0.5, %v2632_v27  ;;  %v1809_v1 = vpop.f32.mrf.mxu2 }
 0x3ae   : > { %v3748_v56 = vrot.slane %v3747_v14, 2  ;;  %v1810_v29 = vadd.f32 %v1809_v1, %v7435_v33 }
 0x3af   : > { %v3800_v52 = vadd.f32 %v3799_v46, %v3263_v35  ;;  %v3272_v0 = vmul.f32 %v2952_v26, %v7758_v5  ;;  %v1722_v36 = vpop.f32.mrf.mxu1 }
 0x3b0   : > { %v5437_v63 = vpop.eup %5436  ;;  %v3749_v16 = vadd.f32 %v3748_v56, %v3747_v14  ;;  %v2003_v62 = vmul.f32 0.5, %v1810_v29  ;;  %v1723_v17 = vadd.f32 %v1722_v36, %v7419_v43  ;;  %v3922_v14 = vld [vmem:[#allocation3 + $0x170] sm:$0xff]  ;;  %v3921_v56 = vld [vmem:[#allocation3 + $0x168] sm:$0xff]  ;;  %v3920_v36 = vld [vmem:[#allocation3 + $0x160] sm:$0xff] }
 0x3b1   : > { %v3764_v2 = vadd.f32 %v3763_v54, %v3272_v0  ;;  %v2633_v49 = vadd.f32 1.0, %v5437_v63 }
 0x3b2   : > { %v5439_v55 = vpop.eup %5438  ;;  %v3750_v48 = vrot.slane %v3749_v16, 1  ;;  %5440 = vtanh.f32 %v2003_v62  ;;  %v2012_v41 = vmul.f32 0.5, %v1723_v17 }
 0x3b3   : > { %v2953_v44 = vmul.f32 0.5, %v2633_v49  ;;  %v2642_v23 = vadd.f32 1.0, %v5439_v55 }
 0x3b4   : > { %v3751_v50 = vadd.f32 %v3750_v48, %v3749_v16  ;;  %5442 = vtanh.f32 %v2012_v41 }
 0x3b5   : > { %v3273_v5 = vmul.f32 %v2953_v44, %v1807_v12  ;;  %v2962_v45 = vmul.f32 0.5, %v2642_v23  ;;  %v1811_v32 = vpop.f32.mrf.mxu2  ;;  %v3918_v44 = vld [vmem:[#allocation3 + $0x150] sm:$0xff] }
 0x3b6   : > { %v3842_v7 = vrot.slane %v3751_v50, 1  ;;  %v1812_v53 = vadd.f32 %v1811_v32, %v7435_v33  ;;  %v4014_v23 = vld [vmem:[#allocation3 + $0x450] sm:$0xff] }
 0x3b7   : > { %v3801_v21 = vadd.f32 %v3800_v52, %v3273_v5  ;;  %v3282_v19 = vmul.f32 %v2962_v45, %v1721_v31  ;;  %v1725_v15 = vpop.f32.mrf.mxu1  ;;  %4224 = vmatpush.msrb.mxu0 %v4014_v23 }
 0x3b8   : > { %v5441_v20 = vpop.eup %5440  ;;  %v3853_v39 = vsel %vm3852_vm5, %v3841_v60, %v3842_v7  ;;  %v2013_v18 = vmul.f32 0.5, %v1812_v53  ;;  %v1726_v42 = vadd.f32 %v1725_v15, %v7419_v43  ;;  %v3917_v60 = vld [vmem:[#allocation3 + $0x148] sm:$0xff] }
 0x3b9   : > { %v3855_v58 = vsel %vm3854_vm6, %v7512_v22, %v3853_v39  ;;  %v3765_v25 = vadd.f32 %v3764_v2, %v3282_v19  ;;  %v2643_v10 = vadd.f32 1.0, %v5441_v20  ;;  %v3919_v2 = vld [vmem:[#allocation3 + $0x158] sm:$0xff]  ;;  %v3916_v19 = vld [vmem:[#allocation3 + $0x140] sm:$0xff] }
 0x3ba   : > { %v5443_v8 = vpop.eup %5442  ;;  %v3857_v12 = vsel %vm3856_vm7, %v7202_v9, %v3855_v58  ;;  %5444 = vtanh.f32 %v2013_v18  ;;  %v2022_v40 = vmul.f32 0.5, %v1726_v42  ;;  %v4031_v9 = vld [vmem:[#allocation3 + $0x4d8] sm:$0xff]  ;;  %v4030_v58 = vld [vmem:[#allocation3 + $0x4d0] sm:$0xff] }
 0x3bb   : > { %v2963_v46 = vmul.f32 0.5, %v2643_v10  ;;  %v2652_v28 = vadd.f32 1.0, %v5443_v8  ;;  %v7780_v6 = vmul.f32 0.00390625, %v3857_v12  ;;  %4243 = vmatpush.msrb.mxu1 %v4031_v9 }
 0x3bc   : > { %5446 = vtanh.f32 %v2022_v40  ;;  %v3914_v40 = vld [vmem:[#allocation3 + $0x130] sm:$0xff] }
 0x3bd   : > { %v3283_v3 = vmul.f32 %v2963_v46, %v1810_v29  ;;  %v2972_v59 = vmul.f32 0.5, %v2652_v28  ;;  %v1814_v37 = vpop.f32.mrf.mxu2  ;;  %v4039_v61 = vperm.slane %v7780_v6, 0  ;;  %4244 = vmatpush.msrb.mxu1 %v4030_v58 }
 0x3be   : > { %v1815_v31 = vadd.f32 %v1814_v37, %v7435_v33  ;;  %v3913_v37 = vld [vmem:[#allocation3 + $0x128] sm:$0xff] }
 0x3bf   : > { %v3802_v22 = vadd.f32 %v3801_v21, %v3283_v3  ;;  %v3292_v11 = vmul.f32 %v2972_v59, %v1723_v17  ;;  %v1727_v47 = vpop.f32.mrf.mxu1  ;;  %4075 = vmatmul.f32.vlgmr.msra.gmra.mxu3 %v4039_v61  ;;  %v4040_v17 = vperm.slane %v7780_v6, 1 }
 0x3c0   : > { %v5445_v57 = vpop.eup %5444  ;;  %v2023_v54 = vmul.f32 0.5, %v1815_v31  ;;  %v1728_v4 = vadd.f32 %v1727_v47, %v7419_v43  ;;  %4099 = vmatpush.msra.mxu3 %v3923_v51  ;;  %v3912_v47 = vld [vmem:[#allocation3 + $0x120] sm:$0xff] }
 0x3c1   : > { %v3766_v24 = vadd.f32 %v3765_v25, %v3292_v11  ;;  %v2653_v27 = vadd.f32 1.0, %v5445_v57 }
 0x3c2   : > { %v5447_v35 = vpop.eup %5446  ;;  %5448 = vtanh.f32 %v2023_v54  ;;  %v2032_v26 = vmul.f32 0.5, %v1728_v4  ;;  %4100 = vmatpush.msra.mxu3 %v3922_v14  ;;  %v3911_v54 = vld [vmem:[#allocation3 + $0x118] sm:$0xff] }
 0x3c3   : > { %v2973_v1 = vmul.f32 0.5, %v2653_v27  ;;  %v2662_v30 = vadd.f32 1.0, %v5447_v35 }
 0x3c4   : > { %5450 = vtanh.f32 %v2032_v26  ;;  %4101 = vmatpush.msra.mxu3 %v3921_v56  ;;  %v3910_v26 = vld [vmem:[#allocation3 + $0x110] sm:$0xff] }
 0x3c5   : > { %v3293_v29 = vmul.f32 %v2973_v1, %v1812_v53  ;;  %v2982_v52 = vmul.f32 0.5, %v2662_v30  ;;  %v1816_v0 = vpop.f32.mrf.mxu2  ;;  %v4013_v1 = vld [vmem:[#allocation3 + $0x448] sm:$0xff] }
 0x3c6   : > { %v1817_v38 = vadd.f32 %v1816_v0, %v7435_v33  ;;  %4102 = vmatpush.msra.mxu3 %v3920_v36  ;;  %4225 = vmatpush.msrb.mxu0 %v4013_v1  ;;  %v3909_v0 = vld [vmem:[#allocation3 + $0x108] sm:$0xff]  ;;  %v3955_v1 = vld [vmem:[#allocation3 + $0x278] sm:$0xff] }
 0x3c7   : > { %v3803_v63 = vadd.f32 %v3802_v22, %v3293_v29  ;;  %v3302_v16 = vmul.f32 %v2982_v52, %v1726_v42  ;;  %v1730_v62 = vpop.f32.mrf.mxu1  ;;  %4095 = vmatmul.f32.vlgmr.msrb.gmra.mxu3 %v4040_v17  ;;  %v3915_v42 = vld [vmem:[#allocation3 + $0x138] sm:$0xff] }
 0x3c8   : > { %v5449_v49 = vpop.eup %5448  ;;  %v2033_v55 = vmul.f32 0.5, %v1817_v38  ;;  %v1731_v34 = vadd.f32 %v1730_v62, %v7419_v43  ;;  %4103 = vmatpush.msra.mxu3 %v3919_v2 }
 0x3c9   : > { %v3767_v48 = vadd.f32 %v3766_v24, %v3302_v16  ;;  %v2663_v41 = vadd.f32 1.0, %v5449_v49  ;;  %v3908_v16 = vld [vmem:[#allocation3 + $0x100] sm:$0xff] }
 0x3ca   : > { %v5451_v50 = vpop.eup %5450  ;;  %5452 = vtanh.f32 %v2033_v55  ;;  %v2042_v5 = vmul.f32 0.5, %v1731_v34  ;;  %4104 = vmatpush.msra.mxu3 %v3918_v44  ;;  %v4041_v55 = vperm.slane %v7780_v6, 2 }
 0x3cb   : > { %v2983_v45 = vmul.f32 0.5, %v2663_v41  ;;  %v2672_v32 = vadd.f32 1.0, %v5451_v50 }
 0x3cc   : > { %5454 = vtanh.f32 %v2042_v5  ;;  %4105 = vmatpush.msra.mxu3 %v3917_v60  ;;  %v3938_v5 = vld [vmem:[#allocation3 + $0x1f0] sm:$0xff] }
 0x3cd   : > { %v3303_v7 = vmul.f32 %v2983_v45, %v1815_v31  ;;  %v2992_v53 = vmul.f32 0.5, %v2672_v32  ;;  %v1819_v21 = vpop.f32.mrf.mxu2 }
 0x3ce   : > { %v1820_v15 = vadd.f32 %v1819_v21, %v7435_v33  ;;  %4106 = vmatpush.msra.mxu3 %v3916_v19 }
 0x3cf   : > { %v3804_v20 = vadd.f32 %v3803_v63, %v3303_v7  ;;  %v3312_v39 = vmul.f32 %v2992_v53, %v1728_v4  ;;  %v1732_v18 = vpop.f32.mrf.mxu1  ;;  %v3937_v7 = vld [vmem:[#allocation3 + $0x1e8] sm:$0xff] }
 0x3d0   : > { %v5453_v25 = vpop.eup %5452  ;;  %v2043_v10 = vmul.f32 0.5, %v1820_v15  ;;  %v1733_v13 = vadd.f32 %v1732_v18, %v7419_v43  ;;  %4107 = vmatpush.msra.mxu3 %v3915_v42  ;;  %v3935_v42 = vld [vmem:[#allocation3 + $0x1d8] sm:$0xff] }
 0x3d1   : > { %v3768_v8 = vadd.f32 %v3767_v48, %v3312_v39  ;;  %v2673_v12 = vadd.f32 1.0, %v5453_v25  ;;  %v4029_v48 = vld [vmem:[#allocation3 + $0x4c8] sm:$0xff] }
 0x3d2   : > { %v5455_v46 = vpop.eup %5454  ;;  %5456 = vtanh.f32 %v2043_v10  ;;  %v2052_v28 = vmul.f32 0.5, %v1733_v13  ;;  %4108 = vmatpush.msra.mxu3 %v3914_v40  ;;  %4245 = vmatpush.msrb.mxu1 %v4029_v48  ;;  %v3933_v40 = vld [vmem:[#allocation3 + $0x1c8] sm:$0xff] }
 0x3d3   : > { %v2993_v3 = vmul.f32 0.5, %v2673_v12  ;;  %v2682_v59 = vadd.f32 1.0, %v5455_v46 }
 0x3d4   : > { %5458 = vtanh.f32 %v2052_v28  ;;  %4109 = vmatpush.msra.mxu3 %v3913_v37 }
 0x3d5   : > { %v3313_v31 = vmul.f32 %v2993_v3, %v1817_v38  ;;  %v3002_v22 = vmul.f32 0.5, %v2682_v59  ;;  %v1821_v11 = vpop.f32.mrf.mxu2  ;;  %v3932_v3 = vld [vmem:[#allocation3 + $0x1c0] sm:$0xff] }
 0x3d6   : > { %v1822_v61 = vadd.f32 %v1821_v11, %v7435_v33  ;;  %4110 = vmatpush.msra.mxu3 %v3912_v47  ;;  %v3930_v11 = vld [vmem:[#allocation3 + $0x1b0] sm:$0xff]  ;;  %v3929_v47 = vld [vmem:[#allocation3 + $0x1a8] sm:$0xff] }
 0x3d7   : > { %v3805_v51 = vadd.f32 %v3804_v20, %v3313_v31  ;;  %v3322_v9 = vmul.f32 %v3002_v22, %v1731_v34  ;;  %v1735_v57 = vpop.f32.mrf.mxu1  ;;  %v3939_v34 = vld [vmem:[#allocation3 + $0x1f8] sm:$0xff]  ;;  %v4028_v22 = vld [vmem:[#allocation3 + $0x4c0] sm:$0xff] }
 0x3d8   : > { %v5457_v4 = vpop.eup %5456  ;;  %v2053_v24 = vmul.f32 0.5, %v1822_v61  ;;  %v1736_v27 = vadd.f32 %v1735_v57, %v7419_v43  ;;  %4111 = vmatpush.msra.mxu3 %v3911_v54  ;;  %v3931_v31 = vld [vmem:[#allocation3 + $0x1b8] sm:$0xff]  ;;  %4246 = vmatpush.msrb.mxu1 %v4028_v22  ;;  %v3926_v54 = vld [vmem:[#allocation3 + $0x190] sm:$0xff] }
 0x3d9   : > { %v3769_v14 = vadd.f32 %v3768_v8, %v3322_v9  ;;  %v2683_v35 = vadd.f32 1.0, %v5457_v4  ;;  %v4012_v8 = vld [vmem:[#allocation3 + $0x440] sm:$0xff]  ;;  %v3927_v57 = vld [vmem:[#allocation3 + $0x198] sm:$0xff] }
 0x3da   : > { %v5459_v30 = vpop.eup %5458  ;;  %5460 = vtanh.f32 %v2053_v24  ;;  %v2062_v56 = vmul.f32 0.5, %v1736_v27  ;;  %4112 = vmatpush.msra.mxu3 %v3910_v26  ;;  %4226 = vmatpush.msrb.mxu0 %v4012_v8  ;;  %v4011_v4 = vld [vmem:[#allocation3 + $0x438] sm:$0xff]  ;;  %v3925_v24 = vld [vmem:[#allocation3 + $0x188] sm:$0xff]  ;;  %v4042_v26 = vperm.slane %v7780_v6, 3 }
 0x3db   : > { %v3003_v29 = vmul.f32 0.5, %v2683_v35  ;;  %v2692_v52 = vadd.f32 1.0, %v5459_v30  ;;  %v4027_v30 = vld [vmem:[#allocation3 + $0x4b8] sm:$0xff] }
 0x3dc   : > { %5462 = vtanh.f32 %v2062_v56  ;;  %4113 = vmatpush.msra.mxu3 %v3909_v0  ;;  %4227 = vmatpush.msrb.mxu0 %v4011_v4  ;;  %v3954_v56 = vld [vmem:[#allocation3 + $0x270] sm:$0xff]  ;;  %v3952_v0 = vld [vmem:[#allocation3 + $0x260] sm:$0xff] }
 0x3dd   : > { %v3323_v36 = vmul.f32 %v3003_v29, %v1820_v15  ;;  %v3012_v38 = vmul.f32 0.5, %v2692_v52  ;;  %v1824_v63 = vpop.f32.mrf.mxu2  ;;  %v3936_v15 = vld [vmem:[#allocation3 + $0x1e0] sm:$0xff]  ;;  %4247 = vmatpush.msrb.mxu1 %v4027_v30  ;;  %v3953_v29 = vld [vmem:[#allocation3 + $0x268] sm:$0xff] }
 0x3de   : > { %v1825_v62 = vadd.f32 %v1824_v63, %v7435_v33  ;;  %4114 = vmatpush.msra.mxu3 %v3908_v16  ;;  %v3950_v63 = vld [vmem:[#allocation3 + $0x250] sm:$0xff]  ;;  %v4025_v30 = vld [vmem:[#allocation3 + $0x4a8] sm:$0xff] }
 0x3df   : > { %v3806_v17 = vadd.f32 %v3805_v51, %v3323_v36  ;;  %v3332_v2 = vmul.f32 %v3012_v38, %v1733_v13  ;;  %v7793_v49 = vpop.f32.mrf.mxu1  ;;  %4115 = vmatmul.f32.vlgmr.msra.gmra.mxu3 %v4041_v55  ;;  %v3934_v13 = vld [vmem:[#allocation3 + $0x1d0] sm:$0xff]  ;;  %v3928_v51 = vld [vmem:[#allocation3 + $0x1a0] sm:$0xff]  ;;  %v3951_v38 = vld [vmem:[#allocation3 + $0x258] sm:$0xff] }
 0x3e0   : > { %v5461_v41 = vpop.eup %5460  ;;  %v2063_v44 = vmul.f32 0.5, %v1825_v62  ;;  %4119 = vmatpush.msrb.mxu3 %v3939_v34  ;;  %v4010_v16 = vld [vmem:[#allocation3 + $0x430] sm:$0xff]  ;;  %v3948_v55 = vld [vmem:[#allocation3 + $0x240] sm:$0xff] }
 0x3e1   : > { %v3770_v23 = vadd.f32 %v3769_v14, %v3332_v2  ;;  %v2693_v50 = vadd.f32 1.0, %v5461_v41  ;;  %v3924_v14 = vld [vmem:[#allocation3 + $0x180] sm:$0xff]  ;;  %4228 = vmatpush.msrb.mxu0 %v4010_v16 }
 0x3e2   : > { %v5463_v45 = vpop.eup %5462  ;;  %5464 = vtanh.f32 %v2063_v44  ;;  %4120 = vmatpush.msrb.mxu3 %v3938_v5  ;;  %v3947_v44 = vld [vmem:[#allocation3 + $0x238] sm:$0xff]  ;;  %v3946_v5 = vld [vmem:[#allocation3 + $0x230] sm:$0xff] }
 0x3e3   : > { %v3013_v32 = vmul.f32 0.5, %v2693_v50  ;;  %v2702_v60 = vadd.f32 1.0, %v5463_v45 }
 0x3e4   : > { %4121 = vmatpush.msrb.mxu3 %v3937_v7  ;;  %v3945_v7 = vld [vmem:[#allocation3 + $0x228] sm:$0xff] }
 0x3e5   : > { %v3333_v53 = vmul.f32 %v3013_v32, %v1822_v61  ;;  %v3022_v21 = vmul.f32 0.5, %v2702_v60  ;;  %v7796_v19 = vpop.f32.mrf.mxu2 }
 0x3e6   : > { %4122 = vmatpush.msrb.mxu3 %v3936_v15  ;;  %v7821_v34 = vadd.f32 %v7796_v19, %v7435_v33  ;;  %v3944_v19 = vld [vmem:[#allocation3 + $0x220] sm:$0xff] }
 0x3e7   : > { %v3807_v20 = vadd.f32 %v3806_v17, %v3333_v53  ;;  %v3342_v39 = vmul.f32 %v3022_v21, %v1736_v27  ;;  %v7798_v18 = vpop.f32.mrf.mxu1  ;;  %v7815_v17 = vadd.f32 %v7793_v49, %v7419_v43 }
 0x3e8   : > { %v5465_v58 = vpop.eup %5464  ;;  %4123 = vmatpush.msrb.mxu3 %v3935_v42  ;;  %v7825_v48 = vadd.f32 %v7798_v18, %v7419_v43  ;;  %v2073_v45 = vmul.f32 0.5, %v7821_v34  ;;  %v3943_v42 = vld [vmem:[#allocation3 + $0x218] sm:$0xff] }
 0x3e9   : > { %v7800_v25 = vadd.f32 %v3770_v23, %v3342_v39  ;;  %v2703_v10 = vadd.f32 1.0, %v5465_v58  ;;  %v4026_v23 = vld [vmem:[#allocation3 + $0x4b0] sm:$0xff]  ;;  %v2072_v49 = vmul.f32 0.5, %v7815_v17 }
 0x3ea   : > { %4124 = vmatpush.msrb.mxu3 %v3934_v13  ;;  %4248 = vmatpush.msrb.mxu1 %v4026_v23  ;;  %v2082_v32 = vmul.f32 0.5, %v7825_v48  ;;  %v4009_v13 = vld [vmem:[#allocation3 + $0x428] sm:$0xff] }
 0x3eb   : > { %v3023_v12 = vmul.f32 0.5, %v2703_v10  ;;  %5466 = vtanh.f32 %v2072_v49  ;;  %v3942_v10 = vld [vmem:[#allocation3 + $0x210] sm:$0xff]  ;;  %4229 = vmatpush.msrb.mxu0 %v4009_v13  ;;  %v3969_v23 = vld [vmem:[#allocation3 + $0x2e8] sm:$0xff] }
 0x3ec   : > { %4125 = vmatpush.msrb.mxu3 %v3933_v40  ;;  %5468 = vtanh.f32 %v2073_v45  ;;  %4249 = vmatpush.msrb.mxu1 %v4025_v30 }
 0x3ed   : > { %v3343_v46 = vmul.f32 %v3023_v12, %v1825_v62  ;;  %v7802_v28 = vpop.f32.mrf.mxu2  ;;  %v3949_v62 = vld [vmem:[#allocation3 + $0x248] sm:$0xff]  ;;  %5470 = vtanh.f32 %v2082_v32 }
 0x3ee   : > { %4126 = vmatpush.msrb.mxu3 %v3932_v3  ;;  %v7835_v60 = vadd.f32 %v7802_v28, %v7435_v33  ;;  %v3941_v3 = vld [vmem:[#allocation3 + $0x208] sm:$0xff] }
 0x3ef   : > { %v7804_v59 = vadd.f32 %v3807_v20, %v3343_v46  ;;  %v1742_v37 = vpop.f32.mrf.mxu1 }
 0x3f0   : > { %4127 = vmatpush.msrb.mxu3 %v3931_v31  ;;  %v7829_v50 = vadd.f32 %v1742_v37, %v7419_v43  ;;  %v2083_v20 = vmul.f32 0.5, %v7835_v60 }
 0x3f1   : > { %v5467_v40 = vpop.eup %5466 }
 0x3f2   : > { %4128 = vmatpush.msrb.mxu3 %v3930_v11  ;;  %v2092_v53 = vmul.f32 0.5, %v7829_v50  ;;  %v5469_v37 = vpop.eup %5468 }
 0x3f3   : > { %v5471_v11 = vpop.eup %5470 }
 0x3f4   : > { %4129 = vmatpush.msrb.mxu3 %v3929_v47  ;;  %5472 = vtanh.f32 %v2092_v53 }
 0x3f5   : > { %v7806_v61 = vpop.f32.mrf.mxu2  ;;  %5474 = vtanh.f32 %v2083_v20 }
 0x3f6   : > { %4130 = vmatpush.msrb.mxu3 %v3928_v51  ;;  %v7844_v39 = vadd.f32 %v7806_v61, %v7435_v33  ;;  %v3940_v51 = vld [vmem:[#allocation3 + $0x200] sm:$0xff] }
 0x3f7   : > { %v1745_v9 = vpop.f32.mrf.mxu1 }
 0x3f8   : > { %4131 = vmatpush.msrb.mxu3 %v3927_v57  ;;  %v7839_v15 = vadd.f32 %v1745_v9, %v7419_v43  ;;  %v2093_v46 = vmul.f32 0.5, %v7844_v39  ;;  %v4043_v9 = vperm.slane %v7780_v6, 4  ;;  %v2712_v57 = vadd.f32 1.0, %v5467_v40 }
 0x3fa   : > { %4132 = vmatpush.msrb.mxu3 %v3926_v54  ;;  %v2102_v8 = vmul.f32 0.5, %v7839_v15  ;;  %v3032_v16 = vmul.f32 0.5, %v2712_v57 }
 0x3fc   : > { %4133 = vmatpush.msrb.mxu3 %v3925_v24  ;;  %5476 = vtanh.f32 %v2102_v8  ;;  %v5473_v24 = vpop.eup %5472 }
 0x3fd   : > { %v7808_v27 = vpop.f32.mrf.mxu2  ;;  %5478 = vtanh.f32 %v2093_v46 }
 0x3fe   : > { %4134 = vmatpush.msrb.mxu3 %v3924_v14  ;;  %v7856_v28 = vadd.f32 %v7808_v27, %v7435_v33  ;;  %v2713_v27 = vadd.f32 1.0, %v5469_v37 }
 0x3ff   : > { %v1747_v35 = vpop.f32.mrf.mxu1  ;;  %4135 = vmatmul.f32.vlgmr.msrb.gmra.mxu3 %v4042_v26 }
 0x400   : > { %4139 = vmatpush.msra.mxu3 %v3955_v1  ;;  %v7847_v58 = vadd.f32 %v1747_v35, %v7419_v43  ;;  %v2103_v14 = vmul.f32 0.5, %v7856_v28  ;;  %v3971_v1 = vld [vmem:[#allocation3 + $0x2f8] sm:$0xff] }
 0x402   : > { %4140 = vmatpush.msra.mxu3 %v3954_v56  ;;  %v2112_v31 = vmul.f32 0.5, %v7847_v58  ;;  %v2722_v56 = vadd.f32 1.0, %v5471_v11 }
 0x404   : > { %4141 = vmatpush.msra.mxu3 %v3953_v29  ;;  %5480 = vtanh.f32 %v2112_v31 }
 0x405   : > { %v7811_v52 = vpop.f32.mrf.mxu2 }
 0x406   : > { %4142 = vmatpush.msra.mxu3 %v3952_v0  ;;  %v7864_v47 = vadd.f32 %v7811_v52, %v7435_v33  ;;  %v5475_v0 = vpop.eup %5474 }
 0x407   : > { %v1750_v36 = vpop.f32.mrf.mxu1  ;;  %v5477_v49 = vpop.eup %5476  ;;  %v2723_v45 = vadd.f32 1.0, %v5475_v0 }
 0x408   : > { %4143 = vmatpush.msra.mxu3 %v3951_v38  ;;  %v7851_v12 = vadd.f32 %v1750_v36, %v7419_v43  ;;  %v2113_v36 = vmul.f32 0.5, %v7864_v47  ;;  %v2742_v8 = vadd.f32 1.0, %v5477_v49 }
 0x409   : > { %v3043_v11 = vmul.f32 0.5, %v2723_v45 }
 0x40a   : > { %4144 = vmatpush.msra.mxu3 %v3950_v63  ;;  %v2122_v54 = vmul.f32 0.5, %v7851_v12  ;;  %v3970_v63 = vld [vmem:[#allocation3 + $0x2f0] sm:$0xff] }
 0x40c   : > { %4145 = vmatpush.msra.mxu3 %v3949_v62  ;;  %v2732_v62 = vadd.f32 1.0, %v5473_v24  ;;  %5482 = vtanh.f32 %v2122_v54 }
 0x40d   : > { %v7817_v2 = vpop.f32.mrf.mxu2  ;;  %5484 = vtanh.f32 %v2103_v14 }
 0x40e   : > { %4146 = vmatpush.msra.mxu3 %v3948_v55  ;;  %v7874_v35 = vadd.f32 %v7817_v2, %v7435_v33  ;;  %v3033_v55 = vmul.f32 0.5, %v2713_v27 }
 0x40f   : > { %v1752_v41 = vpop.f32.mrf.mxu1 }
 0x410   : > { %4147 = vmatpush.msra.mxu3 %v3947_v44  ;;  %v7860_v22 = vadd.f32 %v1752_v41, %v7419_v43  ;;  %v2123_v41 = vmul.f32 0.5, %v7874_v35  ;;  %v3353_v13 = vmul.f32 %v3033_v55, %v7821_v34  ;;  %v3966_v34 = vld [vmem:[#allocation3 + $0x2d0] sm:$0xff]  ;;  %v3964_v55 = vld [vmem:[#allocation3 + $0x2c0] sm:$0xff] }
 0x412   : > { %4148 = vmatpush.msra.mxu3 %v3946_v5  ;;  %v2132_v29 = vmul.f32 0.5, %v7860_v22  ;;  %v3042_v5 = vmul.f32 0.5, %v2722_v56  ;;  %v3965_v56 = vld [vmem:[#allocation3 + $0x2c8] sm:$0xff] }
 0x414   : > { %4149 = vmatpush.msra.mxu3 %v3945_v7  ;;  %5486 = vtanh.f32 %v2132_v29  ;;  %v5479_v7 = vpop.eup %5478  ;;  %v3362_v31 = vmul.f32 %v3042_v5, %v7825_v48 }
 0x415   : > { %v1841_v21 = vpop.f32.mrf.mxu2  ;;  %5488 = vtanh.f32 %v2113_v36  ;;  %v5481_v20 = vpop.eup %5480  ;;  %v3363_v36 = vmul.f32 %v3043_v11, %v7835_v60 }
 0x416   : > { %4150 = vmatpush.msra.mxu3 %v3944_v19  ;;  %v7882_v38 = vadd.f32 %v1841_v21, %v7435_v33  ;;  %v3968_v19 = vld [vmem:[#allocation3 + $0x2e0] sm:$0xff]  ;;  %v5483_v37 = vpop.eup %5482 }
 0x417   : > { %v1755_v18 = vpop.f32.mrf.mxu1  ;;  %v2762_v30 = vadd.f32 1.0, %v5483_v37 }
 0x418   : > { %4151 = vmatpush.msra.mxu3 %v3943_v42  ;;  %v7869_v4 = vadd.f32 %v1755_v18, %v7419_v43  ;;  %v2133_v53 = vmul.f32 0.5, %v7882_v38  ;;  %v3352_v18 = vmul.f32 %v3032_v16, %v7815_v17  ;;  %v3052_v42 = vmul.f32 0.5, %v2732_v62 }
 0x41a   : > { %4152 = vmatpush.msra.mxu3 %v3942_v10  ;;  %v2142_v2 = vmul.f32 0.5, %v7869_v4  ;;  %v3772_v54 = vadd.f32 %v7800_v25, %v3352_v18  ;;  %v3372_v24 = vmul.f32 %v3052_v42, %v7829_v50 }
 0x41c   : > { %4153 = vmatpush.msra.mxu3 %v3941_v3  ;;  %5490 = vtanh.f32 %v2142_v2  ;;  %v3967_v3 = vld [vmem:[#allocation3 + $0x2d8] sm:$0xff]  ;;  %v3773_v0 = vadd.f32 %v3772_v54, %v3362_v31  ;;  %v3962_v31 = vld [vmem:[#allocation3 + $0x2b0] sm:$0xff] }
 0x41d   : > { %v1844_v61 = vpop.f32.mrf.mxu2  ;;  %5492 = vtanh.f32 %v2123_v41  ;;  %v321_v41 = vlaneseq }
 0x41e   : > { %4154 = vmatpush.msra.mxu3 %v3940_v51  ;;  %v7887_v44 = vadd.f32 %v1844_v61, %v7435_v33  ;;  %v5485_v61 = vpop.eup %5484  ;;  %v2733_v51 = vadd.f32 1.0, %v5479_v7 }
 0x41f   : > { %v1757_v26 = vpop.f32.mrf.mxu1  ;;  %4155 = vmatmul.f32.vlgmr.msra.gmra.mxu3 %v4043_v9  ;;  %v2752_v9 = vadd.f32 1.0, %v5481_v20  ;;  %v5487_v57 = vpop.eup %5486  ;;  %vm7911_vm8 = vcmp.lt.s32.totalorder %v321_v41, 256 }
 0x420   : > { %v7878_v52 = vadd.f32 %v1757_v26, %v7419_v43  ;;  %4159 = vmatpush.msrb.mxu3 %v3971_v1  ;;  %v2143_v40 = vmul.f32 0.5, %v7887_v44  ;;  %v5489_v14 = vpop.eup %5488  ;;  %v3809_v26 = vadd.f32 %v7804_v59, %v3353_v13  ;;  %v3062_v1 = vmul.f32 0.5, %v2742_v8 }
 0x421   : > { %v3053_v50 = vmul.f32 0.5, %v2733_v51  ;;  %v3072_v16 = vmul.f32 0.5, %v2752_v9  ;;  %v2772_v62 = vadd.f32 1.0, %v5487_v57  ;;  %v3774_v59 = vadd.f32 %v3773_v0, %v3372_v24  ;;  %v3961_v24 = vld [vmem:[#allocation3 + $0x2a8] sm:$0xff]  ;;  %v3960_v0 = vld [vmem:[#allocation3 + $0x2a0] sm:$0xff] }
 0x422   : > { %v2152_v32 = vmul.f32 0.5, %v7878_v52  ;;  %4160 = vmatpush.msrb.mxu3 %v3970_v63  ;;  %v5491_v29 = vpop.eup %5490  ;;  %v2743_v63 = vadd.f32 1.0, %v5485_v61  ;;  %v2753_v49 = vadd.f32 1.0, %v5489_v14  ;;  %v3382_v60 = vmul.f32 %v3062_v1, %v7839_v15 }
 0x423   : > { %v5493_v25 = vpop.eup %5492  ;;  %v2782_v7 = vadd.f32 1.0, %v5491_v29  ;;  %v5629_v8 = vmov 0.0  }
 0x424   : > { %4161 = vmatpush.msrb.mxu3 %v3969_v23  ;;  %5494 = vtanh.f32 %v2152_v32  ;;  %v3082_v32 = vmul.f32 0.5, %v2762_v30  ;;  %v3063_v20 = vmul.f32 0.5, %v2743_v63  ;;  %v2763_v18 = vadd.f32 1.0, %v5493_v25  ;;  %325 = vst.msk [vmem:[#allocation2 + $0x8] sm:$0x3] %vm7911_vm8, %v5629_v8 }
 0x425   : > { %v1846_v21 = vpop.f32.mrf.mxu2  ;;  %5496 = vtanh.f32 %v2133_v53  ;;  %v3073_v61 = vmul.f32 0.5, %v2753_v49  ;;  %v3775_v9 = vadd.f32 %v3774_v59, %v3382_v60  ;;  %v3102_v57 = vmul.f32 0.5, %v2782_v7  ;;  %v3958_v49 = vld [vmem:[#allocation3 + $0x290] sm:$0xff]  ;;  %v4024_v7 = vld [vmem:[#allocation3 + $0x4a0] sm:$0xff] }
 0x426   : > { %v7893_v10 = vadd.f32 %v1846_v21, %v7435_v33  ;;  %4162 = vmatpush.msrb.mxu3 %v3968_v19  ;;  %5498 = vtanh.f32 %v2143_v40  ;;  %v3963_v19 = vld [vmem:[#allocation3 + $0x2b8] sm:$0xff]  ;;  %v3373_v40 = vmul.f32 %v3053_v50, %v7844_v39  ;;  %v3810_v39 = vadd.f32 %v3809_v26, %v3363_v36  ;;  %4250 = vmatpush.msrb.mxu1 %v4024_v7  ;;  %v4000_v21 = vld [vmem:[#allocation3 + $0x3e0] sm:$0xff] }
 0x427   : > { %v1760_v46 = vpop.f32.mrf.mxu1  ;;  %v3975_v7 = vld [vmem:[#allocation3 + $0x318] sm:$0xff] }
 0x428   : > { %v7899_v17 = vadd.f32 %v1760_v46, %v7419_v43  ;;  %v2153_v27 = vmul.f32 0.5, %v7893_v10  ;;  %4163 = vmatpush.msrb.mxu3 %v3967_v3  ;;  %v3392_v46 = vmul.f32 %v3072_v16, %v7847_v58  ;;  %v3092_v3 = vmul.f32 0.5, %v2772_v62  ;;  %v3959_v62 = vld [vmem:[#allocation3 + $0x298] sm:$0xff] }
 0x429   : > { %v3383_v58 = vmul.f32 %v3063_v20, %v7856_v28  ;;  %v3811_v63 = vadd.f32 %v3810_v39, %v3373_v40  ;;  %v3422_v28 = vmul.f32 %v3102_v57, %v7869_v4  ;;  %v4022_v40 = vld [vmem:[#allocation3 + $0x490] sm:$0xff]  ;;  %v4021_v57 = vld [vmem:[#allocation3 + $0x488] sm:$0xff] }
 0x42a   : > { %v2162_v48 = vmul.f32 0.5, %v7899_v17  ;;  %4164 = vmatpush.msrb.mxu3 %v3966_v34  ;;  %v5495_v23 = vpop.eup %5494  ;;  %v3402_v34 = vmul.f32 %v3082_v32, %v7851_v12  ;;  %v3776_v14 = vadd.f32 %v3775_v9, %v3392_v46  ;;  %v3412_v1 = vmul.f32 %v3092_v3, %v7860_v22  ;;  %v4008_v32 = vld [vmem:[#allocation3 + $0x420] sm:$0xff]  ;;  %v3987_v9 = vld [vmem:[#allocation3 + $0x378] sm:$0xff] }
 0x42b   : > { %v5497_v45 = vpop.eup %5496  ;;  %v2792_v37 = vadd.f32 1.0, %v5495_v23  ;;  %v3393_v12 = vmul.f32 %v3073_v61, %v7864_v47  ;;  %v3812_v22 = vadd.f32 %v3811_v63, %v3383_v58  ;;  %4230 = vmatpush.msrb.mxu0 %v4008_v32  ;;  %v3986_v58 = vld [vmem:[#allocation3 + $0x370] sm:$0xff] }
 0x42c   : > { %5500 = vtanh.f32 %v2162_v48  ;;  %4165 = vmatpush.msrb.mxu3 %v3965_v56  ;;  %v5499_v15 = vpop.eup %5498  ;;  %v2773_v51 = vadd.f32 1.0, %v5497_v45  ;;  %v3083_v48 = vmul.f32 0.5, %v2763_v18  ;;  %v3777_v26 = vadd.f32 %v3776_v14, %v3402_v34 }
 0x42d   : > { %v1849_v2 = vpop.f32.mrf.mxu2  ;;  %5502 = vtanh.f32 %v2153_v27  ;;  %v2783_v30 = vadd.f32 1.0, %v5499_v15  ;;  %v3112_v56 = vmul.f32 0.5, %v2792_v37  ;;  %v3813_v60 = vadd.f32 %v3812_v22, %v3393_v12  ;;  %v4006_v15 = vld [vmem:[#allocation3 + $0x410] sm:$0xff]  ;;  %v3983_v12 = vld [vmem:[#allocation3 + $0x358] sm:$0xff]  ;;  %v3980_v22 = vld [vmem:[#allocation3 + $0x340] sm:$0xff] }
 0x42e   : > { %v7908_v5 = vadd.f32 %v1849_v2, %v7435_v33  ;;  %4166 = vmatpush.msrb.mxu3 %v3964_v55  ;;  %v3093_v25 = vmul.f32 0.5, %v2773_v51  ;;  %v3403_v55 = vmul.f32 %v3083_v48, %v7874_v35  ;;  %v3778_v23 = vadd.f32 %v3777_v26, %v3412_v1 }
 0x42f   : > { %v1762_v53 = vpop.f32.mrf.mxu1  ;;  %v3103_v47 = vmul.f32 0.5, %v2783_v30  ;;  %v3432_v59 = vmul.f32 %v3112_v56, %v7878_v52  ;;  %v4023_v52 = vld [vmem:[#allocation3 + $0x498] sm:$0xff]  ;;  %v3985_v30 = vld [vmem:[#allocation3 + $0x368] sm:$0xff] }
 0x430   : > { %v2163_v42 = vmul.f32 0.5, %v7908_v5  ;;  %v7917_v13 = vadd.f32 %v1762_v53, %v7419_v43  ;;  %4167 = vmatpush.msrb.mxu3 %v3963_v19  ;;  %v3413_v4 = vmul.f32 %v3093_v25, %v7882_v38  ;;  %v4007_v53 = vld [vmem:[#allocation3 + $0x418] sm:$0xff]  ;;  %v3779_v19 = vadd.f32 %v3778_v23, %v3422_v28  ;;  %4251 = vmatpush.msrb.mxu1 %v4023_v52  ;;  %v3982_v28 = vld [vmem:[#allocation3 + $0x350] sm:$0xff] }
 0x431   : > { %v3814_v8 = vadd.f32 %v3813_v60, %v3403_v55  ;;  %v3423_v38 = vmul.f32 %v3103_v47, %v7887_v44  ;;  %4231 = vmatpush.msrb.mxu0 %v4007_v53  ;;  %v4005_v44 = vld [vmem:[#allocation3 + $0x408] sm:$0xff]  ;;  %v3978_v47 = vld [vmem:[#allocation3 + $0x330] sm:$0xff] }
 0x432   : > { %v5501_v11 = vpop.eup %5500  ;;  %5504 = vtanh.f32 %v2163_v42  ;;  %v2172_v43 = vmul.f32 0.5, %v7917_v13  ;;  %4168 = vmatpush.msrb.mxu3 %v3962_v31  ;;  %v3957_v42 = vld [vmem:[#allocation3 + $0x288] sm:$0xff]  ;;  %v3780_v46 = vadd.f32 %v3779_v19, %v3432_v59  ;;  %v3956_v31 = vld [vmem:[#allocation3 + $0x280] sm:$0xff]  ;;  %4252 = vmatpush.msrb.mxu1 %v4022_v40  ;;  %v3974_v19 = vld [vmem:[#allocation3 + $0x310] sm:$0xff] }
 0x433   : > { %v2802_v54 = vadd.f32 1.0, %v5501_v11  ;;  %v5503_v27 = vpop.eup %5502  ;;  %v3815_v11 = vadd.f32 %v3814_v8, %v3413_v4  ;;  %4232 = vmatpush.msrb.mxu0 %v4006_v15  ;;  %v3976_v4 = vld [vmem:[#allocation3 + $0x320] sm:$0xff]  ;;  %v4002_v52 = vld [vmem:[#allocation3 + $0x3f0] sm:$0xff] }
 0x434   : > { %5506 = vtanh.f32 %v2172_v43  ;;  %4169 = vmatpush.msrb.mxu3 %v3961_v24  ;;  %v2793_v36 = vadd.f32 1.0, %v5503_v27  ;;  %v4044_v43 = vperm.slane %v7780_v6, 5  ;;  %4253 = vmatpush.msrb.mxu1 %v4021_v57  ;;  %v3988_v57 = vld [vmem:[#allocation3 + $0x380] sm:$0xff] }
 0x435   : > { %v1851_v29 = vpop.f32.mrf.mxu2  ;;  %v3122_v16 = vmul.f32 0.5, %v2802_v54  ;;  %v3816_v54 = vadd.f32 %v3815_v11, %v3423_v38  ;;  %4233 = vmatpush.msrb.mxu0 %v4005_v44  ;;  %v3996_v11 = vld [vmem:[#allocation3 + $0x3c0] sm:$0xff]  ;;  %v3989_v44 = vld [vmem:[#allocation3 + $0x388] sm:$0xff] }
 0x436   : > { %v7929_v50 = vadd.f32 %v1851_v29, %v7435_v33  ;;  %4170 = vmatpush.msrb.mxu3 %v3960_v0  ;;  %v3113_v35 = vmul.f32 0.5, %v2793_v36  ;;  %v3984_v0 = vld [vmem:[#allocation3 + $0x360] sm:$0xff] }
 0x437   : > { %v3442_v20 = vmul.f32 %v3122_v16, %v7899_v17  ;;  %v3981_v16 = vld [vmem:[#allocation3 + $0x348] sm:$0xff] }
 0x438   : > { %v5505_v2 = vpop.eup %5504  ;;  %v2173_v41 = vmul.f32 0.5, %v7929_v50  ;;  %4171 = vmatpush.msrb.mxu3 %v3959_v62  ;;  %v3433_v17 = vmul.f32 %v3113_v35, %v7893_v10  ;;  %v4004_v10 = vld [vmem:[#allocation3 + $0x400] sm:$0xff]  ;;  %v3973_v35 = vld [vmem:[#allocation3 + $0x308] sm:$0xff] }
 0x439   : > { %v2803_v33 = vadd.f32 1.0, %v5505_v2  ;;  %v3781_v61 = vadd.f32 %v3780_v46, %v3442_v20  ;;  %4234 = vmatpush.msrb.mxu0 %v4004_v10  ;;  %v3972_v20 = vld [vmem:[#allocation3 + $0x300] sm:$0xff]  ;;  %v4001_v46 = vld [vmem:[#allocation3 + $0x3e8] sm:$0xff] }
 0x43a   : > { %v5507_v45 = vpop.eup %5506  ;;  %5508 = vtanh.f32 %v2173_v41  ;;  %4172 = vmatpush.msrb.mxu3 %v3958_v49  ;;  %v3817_v48 = vadd.f32 %v3816_v54, %v3433_v17  ;;  %v3979_v41 = vld [vmem:[#allocation3 + $0x338] sm:$0xff]  ;;  %v4046_v54 = vperm.slane %v7780_v6, 7 }
 0x43b   : > { %v2812_v18 = vadd.f32 1.0, %v5507_v45  ;;  %v3123_v3 = vmul.f32 0.5, %v2803_v33  ;;  %v3977_v33 = vld [vmem:[#allocation3 + $0x328] sm:$0xff]  ;;  %v3455_v45 = vld [vmem:[#allocation2 + $0x8] sm:$0x3] }
 0x43c   : > { %4173 = vmatpush.msrb.mxu3 %v3957_v42  ;;  %v4003_v42 = vld [vmem:[#allocation3 + $0x3f8] sm:$0xff] }
 0x43d   : > { %v3132_v37 = vmul.f32 0.5, %v2812_v18  ;;  %v3443_v24 = vmul.f32 %v3123_v3, %v7908_v5  ;;  %v4045_v18 = vperm.slane %v7780_v6, 6  ;;  %v3999_v3 = vld [vmem:[#allocation3 + $0x3d8] sm:$0xff] }
 0x43e   : > { %4174 = vmatpush.msrb.mxu3 %v3956_v31  ;;  %v3997_v31 = vld [vmem:[#allocation3 + $0x3c8] sm:$0xff]  ;;  %v3995_v17 = vld [vmem:[#allocation3 + $0x3b8] sm:$0xff] }
 0x43f   : > { %v3452_v51 = vmul.f32 %v3132_v37, %v7917_v13  ;;  %4175 = vmatmul.f32.vlgmr.msrb.gmra.mxu3 %v4044_v43  ;;  %v4020_v13 = vld [vmem:[#allocation3 + $0x480] sm:$0xff]  ;;  %v3818_v56 = vadd.f32 %v3817_v48, %v3443_v24  ;;  %v3998_v37 = vld [vmem:[#allocation3 + $0x3d0] sm:$0xff] }
 0x440   : > { %v5509_v34 = vpop.eup %5508  ;;  %4179 = vmatpush.msra.mxu3 %v3987_v9  ;;  %4254 = vmatpush.msrb.mxu1 %v4020_v13  ;;  %v3992_v43 = vld [vmem:[#allocation3 + $0x3a0] sm:$0xff]  ;;  %v3991_v9 = vld [vmem:[#allocation3 + $0x398] sm:$0xff]  ;;  %v4036_v13 = vld [vmem:[%s7994_s6] sm:$0x1] }
 0x441   : > { %v3782_v27 = vadd.f32 %v3781_v61, %v3452_v51  ;;  %v2813_v39 = vadd.f32 1.0, %v5509_v34  ;;  %v3994_v61 = vld [vmem:[#allocation3 + $0x3b0] sm:$0xff]  ;;  %v3993_v51 = vld [vmem:[#allocation3 + $0x3a8] sm:$0xff] }
 0x442   : > { %4180 = vmatpush.msra.mxu3 %v3986_v58  ;;  %v3990_v34 = vld [vmem:[#allocation3 + $0x390] sm:$0xff]  ;;  %v4076_v24 = vpop.f32.mrf.mxu3 }
 0x443   : > { %v3783_v14 = vrot.slane %v3782_v27, 4  ;;  %v3133_v1 = vmul.f32 0.5, %v2813_v39 }
 0x444   : > { %4181 = vmatpush.msra.mxu3 %v3985_v30 }
 0x445   : > { %v3784_v29 = vadd.f32 %v3783_v14, %v3782_v27  ;;  %v3453_v5 = vmul.f32 %v3133_v1, %v7929_v50  ;;  %v4077_v14 = vadd.f32 %v4076_v24, %v4036_v13 }
 0x446   : > { %4182 = vmatpush.msra.mxu3 %v3984_v0 }
 0x447   : > { %v3819_v63 = vadd.f32 %v3818_v56, %v3453_v5  ;;  %v3785_v25 = vrot.slane %v3784_v29, 2 }
 0x448   : > { %4183 = vmatpush.msra.mxu3 %v3983_v12 }
 0x449   : > { %v3820_v26 = vrot.slane %v3819_v63, 4  ;;  %v3786_v62 = vadd.f32 %v3785_v25, %v3784_v29 }
 0x44a   : > { %4184 = vmatpush.msra.mxu3 %v3982_v28  ;;  %v4096_v27 = vpop.f32.mrf.mxu3 }
 0x44b   : > { %v3821_v36 = vadd.f32 %v3820_v26, %v3819_v63  ;;  %v3787_v50 = vrot.slane %v3786_v62, 1  ;;  %v4097_v1 = vadd.f32 %v4096_v27, %v4077_v14 }
 0x44c   : > { %4185 = vmatpush.msra.mxu3 %v3981_v16 }
 0x44d   : > { %v3822_v2 = vrot.slane %v3821_v36, 2  ;;  %v3788_v49 = vadd.f32 %v3787_v50, %v3786_v62 }
 0x44e   : > { %4186 = vmatpush.msra.mxu3 %v3980_v22 }
 0x44f   : > { %v3823_v55 = vadd.f32 %v3822_v2, %v3821_v36 }
 0x450   : > { %4187 = vmatpush.msra.mxu3 %v3979_v41 }
 0x451   : > { %v3824_v23 = vrot.slane %v3823_v55, 1 }
 0x452   : > { %4188 = vmatpush.msra.mxu3 %v3978_v47 }
 0x453   : > { %v3825_v59 = vadd.f32 %v3824_v23, %v3823_v55 }
 0x454   : > { %4189 = vmatpush.msra.mxu3 %v3977_v33 }
 0x455   : > { %v3843_v60 = vrot.slane %v3825_v59, 7 }
 0x456   : > { %4190 = vmatpush.msra.mxu3 %v3976_v4 }
 0x457   : > { %v3858_v32 = vsel %vm3844_vm1, %v3788_v49, %v3843_v60 }
 0x458   : > { %v3862_v53 = vadd.f32 %v3858_v32, %v3455_v45  ;;  %4191 = vmatpush.msra.mxu3 %v3975_v7 }
 0x45a   : > { %3868 = vst.msk [vmem:[#allocation2 + $0x8] sm:$0x3] %vm7911_vm8, %v3862_v53  ;;  %4192 = vmatpush.msra.mxu3 %v3974_v19 }
 0x45c   : > { %4193 = vmatpush.msra.mxu3 %v3973_v35 }
 0x45e   : > { %4194 = vmatpush.msra.mxu3 %v3972_v20 }
 0x45f   : > { %4195 = vmatmul.f32.vlgmr.msra.gmra.mxu3 %v4045_v18 }
 0x460   : > { %4199 = vmatpush.msrb.mxu3 %v4003_v42 }
 0x461   : > { %v3873_v8 = vld [vmem:[#allocation2 + $0x8] sm:$0x3] }
 0x462   : > { %v3875_v15 = vmul.f32 0.00390625, %v3873_v8  ;;  %4200 = vmatpush.msrb.mxu3 %v4002_v52  ;;  %v4116_v39 = vpop.f32.mrf.mxu3 }
 0x463   : > { %v4117_v30 = vadd.f32 %v4116_v39, %v4097_v1 }
 0x464   : > { %v4047_v40 = vperm.slane %v3875_v15, 0  ;;  %v4048_v38 = vperm.slane %v3875_v15, 1  ;;  %4201 = vmatpush.msrb.mxu3 %v4001_v46 }
 0x466   : > { %4235 = vmatmul.f32.vlgmr.msrb.gmra.mxu0 %v4047_v40  ;;  %4255 = vmatmul.f32.vlgmr.msrb.gmra.mxu1 %v4048_v38 }
 0x467   : > { %4202 = vmatpush.msrb.mxu3 %v4000_v21 }
 0x469   : > { %4203 = vmatpush.msrb.mxu3 %v3999_v3 }
 0x46b   : > { %4204 = vmatpush.msrb.mxu3 %v3998_v37 }
 0x46d   : > { %4205 = vmatpush.msrb.mxu3 %v3997_v31 }
 0x46f   : > { %4206 = vmatpush.msrb.mxu3 %v3996_v11 }
 0x471   : > { %4207 = vmatpush.msrb.mxu3 %v3995_v17 }
 0x473   : > { %4208 = vmatpush.msrb.mxu3 %v3994_v61 }
 0x475   : > { %4209 = vmatpush.msrb.mxu3 %v3993_v51 }
 0x477   : > { %4210 = vmatpush.msrb.mxu3 %v3992_v43 }
 0x479   : > { %4211 = vmatpush.msrb.mxu3 %v3991_v9 }
 0x47b   : > { %4212 = vmatpush.msrb.mxu3 %v3990_v34 }
 0x47d   : > { %4213 = vmatpush.msrb.mxu3 %v3989_v44 }
 0x47f   : > { %4214 = vmatpush.msrb.mxu3 %v3988_v57 }
 0x480   : > { %4215 = vmatmul.f32.vlgmr.msrb.gmra.mxu3 %v4046_v54 }
 0x482   : > { %v4136_v58 = vpop.f32.mrf.mxu3 }
 0x483   : > { %v4137_v29 = vadd.f32 %v4136_v58, %v4117_v30 }
 0x4a2   : > { %v4156_v10 = vpop.f32.mrf.mxu3 }
 0x4a3   : > { %v4157_v6 = vadd.f32 %v4156_v10, %v4137_v29 }
 0x4c2   : > { %v4176_v48 = vpop.f32.mrf.mxu3 }
 0x4c3   : > { %v4177_v5 = vadd.f32 %v4176_v48, %v4157_v6 }
 0x4e2   : > { %v4196_v56 = vpop.f32.mrf.mxu3 }
 0x4e3   : > { %v4197_v0 = vadd.f32 %v4196_v56, %v4177_v5  ;;  %v4236_v25 = vpop.f32.mrf.mxu0  ;;  %v4256_v28 = vpop.f32.mrf.mxu1 }
 0x503   : > { %v4216_v63 = vpop.f32.mrf.mxu3 }
 0x504   : > { %v4217_v12 = vadd.f32 %v4216_v63, %v4197_v0 }
 0x506   : > { %v4237_v26 = vadd.f32 %v4236_v25, %v4217_v12 }
 0x508   : > { %v4257_v36 = vadd.f32 %v4256_v28, %v4237_v26 }
 0x50a   : > { %v4259_v16 = vperm.slane %v4257_v36, 0 }
 0x50c   : > { %4260 = vst [vmem:[%s306_s12] sm:$0xff] %v4259_v16 }
 0x50d   : > { %5569 = shalt.err (!%p5566_p9)
}
 0x50e   : > { %4740 = dma.vmem_to_hbm [thread:$0]  (%p5710_p4), %s4275_s15, 128, %s4277_s16, %s4262_s27  }
 0x50f PF: > { %p4752_p10 = scmp.ge.s32.totalorder %s5624_s29, 2  ;;  %s4288_s22 = sand.u32 1, %s5604_s24  }
 0x510   : > { %s4289_s8 = scalar_lea.sflag [#allocation5], %s4288_s22 }
 0x511   : > { %p4747_p11 = pnand %p4752_p10, %p5717_p8 }
 0x513   : > { %p4748_p12 = pneg %p4747_p11 }
 0x515   : > { %5599 = dma.done.wait (%p4748_p12), %s4289_s8, 128  }
 0x516   : > { %5601 = vsyncadd (%p4748_p12), %s4289_s8, 4294967168  ;;  %s21_s29 = sadd.s32 1, %s5624_s29   ;;  %s8000_s24 = smov %s5608_s25 }
 0x517   : > { %p18_p13 = scmp.ge.s32.totalorder %s21_s29, 4   ;;  %s8001_s25 = smov %s5612_s26 }
 0x518   : > { %s8002_s26 = smov %s5723_s14  ;;  %s8003_s27 = smov %s5620_s28 }
 0x519   : > { %s8004_s28 = smov %s8006_s9  ;;  %20 = sbr.rel (!%p18_p13) target bundleno = 5 (0x5), region = 96 }
 0x51e   :  { %4295 = vsyncpa [#allocation4], 1 }
 0x51f   :  { %4297 = vsyncpa [#allocation4 + $0x1], 1 }
 0x520   :  { %4298 = vsyncpa [#allocation5], 1 }
 0x521   :  { %4300 = vsyncpa [#allocation5 + $0x1], 1 }

</bundles_post_ra>
